<compile_context>
chip_gen: v5e
topology: v5e:2x2
jax: 0.10.0
libtpu: 0.0.40
codegen_flags: <defaults>
</compile_context>

<pallas_src>
import functools

import jax
import jax.numpy as jnp
from jax import lax
from jax.experimental import pallas as pl
from jax.experimental.pallas import tpu as pltpu

BN_EPS = 1e-5
LANE = 128  # TPU lane width; channel dims are zero-padded to a multiple of this


def _round_up(n, m):
    return ((n + m - 1) // m) * m


def _pad_axis(a, size, axis):
    if a.shape[axis] == size:
        return a
    pad = [(0, 0)] * a.ndim
    pad[axis] = (0, size - a.shape[axis])
    return jnp.pad(a, pad)


# ---------------------------------------------------------------------------
# Fused PreActBottleneck kernel (one grid step == one image)
# ---------------------------------------------------------------------------
def _make_block_kernel(Hs, Ws, identity_shortcut, compute_dtype):
    HW = Hs * Ws
    PADR = _round_up(Ws + 1, 8)  # zero halo rows above/below the flattened image

    def kernel(*refs):
        if identity_shortcut:
            (xs_ref, w1_ref, w2_ref, w3_ref,
             s1_ref, t1_ref, s2_ref, t2_ref, s3_ref, t3_ref,
             o_ref, a2buf) = refs
            wsc_ref = bsc_ref = None
        else:
            (xs_ref, w1_ref, w2_ref, w3_ref,
             s1_ref, t1_ref, s2_ref, t2_ref, s3_ref, t3_ref,
             wsc_ref, bsc_ref, o_ref, a2buf) = refs

        cbp = w2_ref.shape[-1]

        x_in = xs_ref[0]                        # (HW, Cinp), compute dtype
        x_f32 = x_in.astype(jnp.float32)

        # ---- bn1 + relu (prologue) -> conv1 (1x1) -> bn2 + relu (epilogue) ----
        a1 = jnp.maximum(x_f32 * s1_ref[...] + t1_ref[...], 0.0)
        h1 = jnp.dot(a1.astype(compute_dtype), w1_ref[...],
                     preferred_element_type=jnp.float32)
        a2 = jnp.maximum(h1 * s2_ref[...] + t2_ref[...], 0.0)   # (HW, Cbp) f32

        # ---- conv2 (3x3, pad 1): zero-haloed VMEM slab, 3 wide MXU dots ----
        # Halos are re-zeroed every step: scratch is per-core and persists, but
        # with "parallel" grid sharding not every core runs step 0.
        a2buf[0:PADR, :] = jnp.zeros((PADR, cbp), jnp.float32)
        a2buf[PADR + HW:PADR + HW + PADR, :] = jnp.zeros((PADR, cbp), jnp.float32)
        a2buf[PADR:PADR + HW, :] = a2

        row = lax.broadcasted_iota(jnp.int32, (HW, cbp), 0)
        w_pos = row % Ws
        m_left = (w_pos >= 1).astype(jnp.float32)         # dj = -1 stays in row
        m_right = (w_pos <= Ws - 2).astype(jnp.float32)   # dj = +1 stays in row

        acc = jnp.zeros((HW, cbp), jnp.float32)
        for kh in range(3):
            base = PADR + (kh - 1) * Ws
            left = a2buf[base - 1:base - 1 + HW, :] * m_left    # kw = 0
            mid = a2buf[base:base + HW, :]                      # kw = 1
            right = a2buf[base + 1:base + 1 + HW, :] * m_right  # kw = 2
            a_cat = jnp.concatenate([left, mid, right], axis=1)  # (HW, 3*Cbp)
            acc = acc + jnp.dot(a_cat.astype(compute_dtype), w2_ref[kh],
                                preferred_element_type=jnp.float32)

        # ---- bn3 + relu (prologue) -> conv3 (1x1) -> shortcut + residual ----
        a3 = jnp.maximum(acc * s3_ref[...] + t3_ref[...], 0.0)
        out = jnp.dot(a3.astype(compute_dtype), w3_ref[...],
                      preferred_element_type=jnp.float32)
        if identity_shortcut:
            out = out + x_f32
        else:
            out = (out
                   + jnp.dot(x_in, wsc_ref[...], preferred_element_type=jnp.float32)
                   + bsc_ref[...])
        o_ref[0] = out

    return kernel


# ---------------------------------------------------------------------------
# PreActBottleneck forward (Pallas hot path + thin JAX layout glue)
# ---------------------------------------------------------------------------
def _bn_scale_shift(gamma, beta, mean, var):
    scale = gamma / jnp.sqrt(var + BN_EPS)
    shift = beta - mean * scale
    return scale, shift


def preact_bottleneck_forward(x_nchw, params, stride=1,
                              compute_dtype=jnp.float32):
    """x_nchw: (N, Cin, H, W) f32 -> (N, Cout, Ho, Wo) f32 (eval-mode BN)."""
    p = params
    x = jnp.transpose(x_nchw, (0, 2, 3, 1))                 # NHWC
    Cin = x.shape[-1]
    Cb = p["w1"].shape[0]
    Cout = p["w3"].shape[0]
    identity_shortcut = (stride == 1) and (Cin == Cout)

    # conv1 / shortcut are 1x1 with stride s -> subsample spatially up front
    # (BN+ReLU is pointwise so strided-slice-then-BN == BN-then-strided-slice).
    xs = x[:, ::stride, ::stride, :]
    Ns, Hs, Ws, _ = xs.shape
    HW = Hs * Ws

    Cinp = _round_up(Cin, LANE)
    Cbp = _round_up(Cb, LANE)
    Coutp = _round_up(Cout, LANE)

    # Flatten spatially, zero-pad channels to lane width, cast matmul inputs.
    xs_p = _pad_axis(xs.reshape(Ns, HW, Cin), Cinp, 2).astype(compute_dtype)

    w1 = _pad_axis(_pad_axis(jnp.transpose(p["w1"][:, :, 0, 0], (1, 0)), Cinp, 0), Cbp, 1)
    # w2: OIHW -> (kh, kw, cin, cout), pad channels, stack kw along rows so each
    # kh is a single (3*Cbp, Cbp) matmul operand.
    w2 = jnp.transpose(p["w2"], (2, 3, 1, 0))                          # (3,3,Cb,Cb)
    w2 = _pad_axis(_pad_axis(w2, Cbp, 2), Cbp, 3).reshape(3, 3 * Cbp, Cbp)
    w3 = _pad_axis(_pad_axis(jnp.transpose(p["w3"][:, :, 0, 0], (1, 0)), Cbp, 0), Coutp, 1)
    w1 = w1.astype(compute_dtype)
    w2 = w2.astype(compute_dtype)
    w3 = w3.astype(compute_dtype)

    s1, t1 = _bn_scale_shift(p["bn1_g"], p["bn1_b"], p["bn1_m"], p["bn1_v"])
    s2, t2 = _bn_scale_shift(p["bn2_g"], p["bn2_b"], p["bn2_m"], p["bn2_v"])
    s3, t3 = _bn_scale_shift(p["bn3_g"], p["bn3_b"], p["bn3_m"], p["bn3_v"])
    s1 = _pad_axis(s1.reshape(1, Cin), Cinp, 1)
    t1 = _pad_axis(t1.reshape(1, Cin), Cinp, 1)
    s2 = _pad_axis(s2.reshape(1, Cb), Cbp, 1)
    t2 = _pad_axis(t2.reshape(1, Cb), Cbp, 1)
    s3 = _pad_axis(s3.reshape(1, Cb), Cbp, 1)
    t3 = _pad_axis(t3.reshape(1, Cb), Cbp, 1)

    in_specs = [
        pl.BlockSpec((1, HW, Cinp), lambda n: (n, 0, 0)),       # xs (per image)
        pl.BlockSpec((Cinp, Cbp), lambda n: (0, 0)),            # w1 (resident)
        pl.BlockSpec((3, 3 * Cbp, Cbp), lambda n: (0, 0, 0)),   # w2 (resident)
        pl.BlockSpec((Cbp, Coutp), lambda n: (0, 0)),           # w3 (resident)
        pl.BlockSpec((1, Cinp), lambda n: (0, 0)),              # bn1 scale
        pl.BlockSpec((1, Cinp), lambda n: (0, 0)),              # bn1 shift
        pl.BlockSpec((1, Cbp), lambda n: (0, 0)),               # bn2 scale
        pl.BlockSpec((1, Cbp), lambda n: (0, 0)),               # bn2 shift
        pl.BlockSpec((1, Cbp), lambda n: (0, 0)),               # bn3 scale
        pl.BlockSpec((1, Cbp), lambda n: (0, 0)),               # bn3 shift
    ]
    args = [xs_p, w1, w2, w3, s1, t1, s2, t2, s3, t3]
    if not identity_shortcut:
        wsc = _pad_axis(_pad_axis(jnp.transpose(p["w_sc"][:, :, 0, 0], (1, 0)), Cinp, 0),
                        Coutp, 1).astype(compute_dtype)
        bsc = _pad_axis(p["b_sc"].reshape(1, Cout), Coutp, 1)   # bias stays f32
        in_specs += [pl.BlockSpec((Cinp, Coutp), lambda n: (0, 0)),
                     pl.BlockSpec((1, Coutp), lambda n: (0, 0))]
        args += [wsc, bsc]

    PADR = _round_up(Ws + 1, 8)
    kernel = _make_block_kernel(Hs, Ws, identity_shortcut, compute_dtype)

    # NOTE: per-step VMEM here is ~a few MiB, well under the default scoped
    # limit on v5e/v6e/v7x; raise vmem_limit_bytes via pltpu.CompilerParams if
    # images / channel counts grow.
    out_flat = pl.pallas_call(
        kernel,
        out_shape=jax.ShapeDtypeStruct((Ns, HW, Coutp), jnp.float32),
        grid=(Ns,),
        in_specs=in_specs,
        out_specs=pl.BlockSpec((1, HW, Coutp), lambda n: (n, 0, 0)),
        scratch_shapes=[pltpu.VMEM((HW + 2 * PADR, Cbp), jnp.float32)],
        compiler_params=pltpu.CompilerParams(
            dimension_semantics=("parallel",)),
    )(*args)

    out = out_flat.reshape(Ns, Hs, Ws, Coutp)[..., :Cout]
    return jnp.transpose(out, (0, 3, 1, 2))                    # back to NCHW


# ---------------------------------------------------------------------------
# Pure-JAX reference (mirrors the PyTorch NCHW forward, eval-mode BN)
# ---------------------------------------------------------------------------
def _conv2d_nchw(x, w, stride=1, padding=0, bias=None):
    out = lax.conv_general_dilated(
        x, w,
        window_strides=(stride, stride),
        padding=[(padding, padding), (padding, padding)],
        dimension_numbers=("NCHW", "OIHW", "NCHW"),
    )
    if bias is not None:
        out = out + bias.reshape(1, -1, 1, 1)
    return out


def _bn_eval_nchw(x, g, b, m, v):
    g = g.reshape(1, -1, 1, 1)
    b = b.reshape(1, -1, 1, 1)
    m = m.reshape(1, -1, 1, 1)
    v = v.reshape(1, -1, 1, 1)
    return (x - m) / jnp.sqrt(v + BN_EPS) * g + b


def reference_forward(x, p, stride=1):
    Cin = x.shape[1]
    Cout = p["w3"].shape[0]
    if stride == 1 and Cin == Cout:
        shortcut = x
    else:
        shortcut = _conv2d_nchw(x, p["w_sc"], stride=stride, bias=p["b_sc"])
    out = _conv2d_nchw(
        jax.nn.relu(_bn_eval_nchw(x, p["bn1_g"], p["bn1_b"], p["bn1_m"], p["bn1_v"])),
        p["w1"], stride=stride)
    out = _conv2d_nchw(
        jax.nn.relu(_bn_eval_nchw(out, p["bn2_g"], p["bn2_b"], p["bn2_m"], p["bn2_v"])),
        p["w2"], padding=1)
    out = _conv2d_nchw(
        jax.nn.relu(_bn_eval_nchw(out, p["bn3_g"], p["bn3_b"], p["bn3_m"], p["bn3_v"])),
        p["w3"])
    return out + shortcut


# ---------------------------------------------------------------------------
# Deterministic parameter construction
# ---------------------------------------------------------------------------
def make_params(key, in_channels, out_channels, bottleneck_factor=0.25):
    cb = int(round(out_channels * bottleneck_factor))
    ks = jax.random.split(key, 16)

    def nrm(k, shape, s=0.1):
        return (s * jax.random.normal(k, shape)).astype(jnp.float32)

    return {
        "w1": nrm(ks[0], (cb, in_channels, 1, 1)),
        "w2": nrm(ks[1], (cb, cb, 3, 3)),
        "w3": nrm(ks[2], (out_channels, cb, 1, 1)),
        "w_sc": nrm(ks[3], (out_channels, in_channels, 1, 1)),
        "b_sc": nrm(ks[4], (out_channels,)),
        "bn1_g": 1.0 + nrm(ks[5], (in_channels,)),
        "bn1_b": nrm(ks[6], (in_channels,)),
        "bn1_m": nrm(ks[7], (in_channels,)),
        "bn1_v": 0.5 + jnp.abs(nrm(ks[8], (in_channels,))),
        "bn2_g": 1.0 + nrm(ks[9], (cb,)),
        "bn2_b": nrm(ks[10], (cb,)),
        "bn2_m": nrm(ks[11], (cb,)),
        "bn2_v": 0.5 + jnp.abs(nrm(ks[12], (cb,))),
        "bn3_g": 1.0 + nrm(ks[13], (cb,)),
        "bn3_b": nrm(ks[14], (cb,)),
        "bn3_m": nrm(ks[15], (cb,)),
        "bn3_v": jnp.full((cb,), 1.0, jnp.float32),
    }


# ---------------------------------------------------------------------------
if __name__ == "__main__":
    key = jax.random.PRNGKey(0)
    k_x, k_p, k_x2, k_p2, k_x3, k_p3 = jax.random.split(key, 6)

    # --- config A: non-identity shortcut (Cin != Cout), stride 1 ---
    N, Cin, H, W, Cout, stride = 2, 4, 16, 16, 8, 1
    x = jax.random.normal(k_x, (N, Cin, H, W), dtype=jnp.float32)
    params = make_params(k_p, Cin, Cout)
    ref = jax.block_until_ready(reference_forward(x, params, stride=stride))

    fwd = jax.jit(functools.partial(preact_bottleneck_forward, stride=stride))
    out = jax.block_until_ready(fwd(x, params))
    assert out.shape == (N, Cout, H, W), out.shape
    assert jnp.allclose(out, ref, rtol=2e-3, atol=1e-3), (
        float(jnp.max(jnp.abs(out - ref))))

    # bf16 matmul-input path (f32 accumulation / residual) -> looser tolerance.
    fwd_bf16 = jax.jit(functools.partial(
        preact_bottleneck_forward, stride=stride, compute_dtype=jnp.bfloat16))
    out_bf16 = jax.block_until_ready(fwd_bf16(x, params))
    assert jnp.allclose(out_bf16, ref, rtol=3e-2, atol=3e-2), (
        float(jnp.max(jnp.abs(out_bf16 - ref))))

    # --- config B: identity shortcut (Cin == Cout, stride 1), f32 ---
    x2 = jax.random.normal(k_x2, (2, 8, 16, 16), dtype=jnp.float32)
    params2 = make_params(k_p2, 8, 8)
    ref2 = jax.block_until_ready(reference_forward(x2, params2, stride=1))
    out2 = jax.block_until_ready(jax.jit(preact_bottleneck_forward)(x2, params2))
    assert out2.shape == (2, 8, 16, 16), out2.shape
    assert jnp.allclose(out2, ref2, rtol=2e-3, atol=1e-3), (
        float(jnp.max(jnp.abs(out2 - ref2))))

    # --- config C: strided, non-identity shortcut, f32 ---
    x3 = jax.random.normal(k_x3, (2, 8, 16, 16), dtype=jnp.float32)
    params3 = make_params(k_p3, 8, 16)
    ref3 = jax.block_until_ready(reference_forward(x3, params3, stride=2))
    out3 = jax.block_until_ready(
        jax.jit(functools.partial(preact_bottleneck_forward, stride=2))(x3, params3))
    assert out3.shape == (2, 16, 8, 8), out3.shape
    assert jnp.allclose(out3, ref3, rtol=2e-3, atol=1e-3), (
        float(jnp.max(jnp.abs(out3 - ref3))))

    print("KERNEL_OK")
</pallas_src>

<mosaic_0001>
module attributes {stable_mosaic.version = 11 : i64} {
  func.func @kernel(%arg0: i32, %arg1: memref<1x256x128xf32, #tpu.memory_space<vmem>>, %arg2: memref<128x128xf32, #tpu.memory_space<vmem>>, %arg3: memref<3x384x128xf32, #tpu.memory_space<vmem>>, %arg4: memref<128x128xf32, #tpu.memory_space<vmem>>, %arg5: memref<1x128xf32, #tpu.memory_space<vmem>>, %arg6: memref<1x128xf32, #tpu.memory_space<vmem>>, %arg7: memref<1x128xf32, #tpu.memory_space<vmem>>, %arg8: memref<1x128xf32, #tpu.memory_space<vmem>>, %arg9: memref<1x128xf32, #tpu.memory_space<vmem>>, %arg10: memref<1x128xf32, #tpu.memory_space<vmem>>, %arg11: memref<128x128xf32, #tpu.memory_space<vmem>>, %arg12: memref<1x128xf32, #tpu.memory_space<vmem>>, %arg13: memref<1x256x128xf32, #tpu.memory_space<vmem>>, %arg14: memref<304x128xf32, #tpu.memory_space<vmem>>) attributes {dimension_semantics = [#tpu.dimension_semantics<parallel>], iteration_bounds = array<i64: 2>, scalar_prefetch = 0 : i64, scratch_operands = 1 : i64, tpu.core_type = #tpu.core_type<tc>, window_params = [{transform_indices = @transform_0, window_bounds = array<i64: 1, 256, 128>}, {pipeline_mode = #tpu.pipeline_mode<synchronous>, transform_indices = @transform_1, window_bounds = array<i64: 128, 128>}, {pipeline_mode = #tpu.pipeline_mode<synchronous>, transform_indices = @transform_2, window_bounds = array<i64: 3, 384, 128>}, {pipeline_mode = #tpu.pipeline_mode<synchronous>, transform_indices = @transform_3, window_bounds = array<i64: 128, 128>}, {pipeline_mode = #tpu.pipeline_mode<synchronous>, transform_indices = @transform_4, window_bounds = array<i64: 1, 128>}, {pipeline_mode = #tpu.pipeline_mode<synchronous>, transform_indices = @transform_5, window_bounds = array<i64: 1, 128>}, {pipeline_mode = #tpu.pipeline_mode<synchronous>, transform_indices = @transform_6, window_bounds = array<i64: 1, 128>}, {pipeline_mode = #tpu.pipeline_mode<synchronous>, transform_indices = @transform_7, window_bounds = array<i64: 1, 128>}, {pipeline_mode = #tpu.pipeline_mode<synchronous>, transform_indices = @transform_8, window_bounds = array<i64: 1, 128>}, {pipeline_mode = #tpu.pipeline_mode<synchronous>, transform_indices = @transform_9, window_bounds = array<i64: 1, 128>}, {pipeline_mode = #tpu.pipeline_mode<synchronous>, transform_indices = @transform_10, window_bounds = array<i64: 128, 128>}, {pipeline_mode = #tpu.pipeline_mode<synchronous>, transform_indices = @transform_11, window_bounds = array<i64: 1, 128>}, {transform_indices = @transform_12, window_bounds = array<i64: 1, 256, 128>}]} {
    %c0 = arith.constant 0 : index
    %c0_0 = arith.constant 0 : index
    %c0_1 = arith.constant 0 : index
    %0 = vector.load %arg1[%c0, %c0_0, %c0_1] : memref<1x256x128xf32, #tpu.memory_space<vmem>>, vector<1x256x128xf32>
    %1 = vector.shape_cast %0 : vector<1x256x128xf32> to vector<256x128xf32>
    %c0_2 = arith.constant 0 : index
    %c0_3 = arith.constant 0 : index
    %2 = vector.load %arg5[%c0_2, %c0_3] : memref<1x128xf32, #tpu.memory_space<vmem>>, vector<1x128xf32>
    %3 = vector.broadcast %2 : vector<1x128xf32> to vector<256x128xf32>
    %4 = arith.mulf %1, %3 : vector<256x128xf32>
    %c0_4 = arith.constant 0 : index
    %c0_5 = arith.constant 0 : index
    %5 = vector.load %arg6[%c0_4, %c0_5] : memref<1x128xf32, #tpu.memory_space<vmem>>, vector<1x128xf32>
    %6 = vector.broadcast %5 : vector<1x128xf32> to vector<256x128xf32>
    %7 = arith.addf %4, %6 : vector<256x128xf32>
    %cst = arith.constant 0.000000e+00 : f32
    %8 = vector.broadcast %cst : f32 to vector<256x128xf32>
    %9 = arith.maximumf %7, %8 : vector<256x128xf32>
    %c0_6 = arith.constant 0 : index
    %c0_7 = arith.constant 0 : index
    %10 = vector.load %arg2[%c0_6, %c0_7] : memref<128x128xf32, #tpu.memory_space<vmem>>, vector<128x128xf32>
    %cst_8 = arith.constant dense<0.000000e+00> : vector<256x128xf32>
    %11 = tpu.matmul %9, %10, %cst_8 {dimension_numbers = #tpu.dot_dimension_numbers<[1], [0], [0], [1], [0, 0, 1, 1], [], []>} : vector<256x128xf32>, vector<128x128xf32>, vector<256x128xf32> -> vector<256x128xf32>
    %c0_9 = arith.constant 0 : index
    %c0_10 = arith.constant 0 : index
    %12 = vector.load %arg7[%c0_9, %c0_10] : memref<1x128xf32, #tpu.memory_space<vmem>>, vector<1x128xf32>
    %13 = vector.broadcast %12 : vector<1x128xf32> to vector<256x128xf32>
    %14 = arith.mulf %11, %13 : vector<256x128xf32>
    %c0_11 = arith.constant 0 : index
    %c0_12 = arith.constant 0 : index
    %15 = vector.load %arg8[%c0_11, %c0_12] : memref<1x128xf32, #tpu.memory_space<vmem>>, vector<1x128xf32>
    %16 = vector.broadcast %15 : vector<1x128xf32> to vector<256x128xf32>
    %17 = arith.addf %14, %16 : vector<256x128xf32>
    %cst_13 = arith.constant 0.000000e+00 : f32
    %18 = vector.broadcast %cst_13 : f32 to vector<256x128xf32>
    %19 = arith.maximumf %17, %18 : vector<256x128xf32>
    %cst_14 = arith.constant 0.000000e+00 : f32
    %20 = vector.broadcast %cst_14 : f32 to vector<24x128xf32>
    %c0_15 = arith.constant 0 : index
    %c0_16 = arith.constant 0 : index
    %21 = vector.load %arg14[%c0_15, %c0_16] : memref<304x128xf32, #tpu.memory_space<vmem>>, vector<24x128xf32>
    tpu.vector_store %arg14[%c0_15, %c0_16], %20 {strides = array<i32>} : memref<304x128xf32, #tpu.memory_space<vmem>>, vector<24x128xf32>,
    %cst_17 = arith.constant 0.000000e+00 : f32
    %22 = vector.broadcast %cst_17 : f32 to vector<24x128xf32>
    %c280 = arith.constant 280 : index
    %c0_18 = arith.constant 0 : index
    %23 = vector.load %arg14[%c280, %c0_18] : memref<304x128xf32, #tpu.memory_space<vmem>>, vector<24x128xf32>
    tpu.vector_store %arg14[%c280, %c0_18], %22 {strides = array<i32>} : memref<304x128xf32, #tpu.memory_space<vmem>>, vector<24x128xf32>,
    %c24 = arith.constant 24 : index
    %c0_19 = arith.constant 0 : index
    %24 = vector.load %arg14[%c24, %c0_19] : memref<304x128xf32, #tpu.memory_space<vmem>>, vector<256x128xf32>
    tpu.vector_store %arg14[%c24, %c0_19], %19 {strides = array<i32>} : memref<304x128xf32, #tpu.memory_space<vmem>>, vector<256x128xf32>,
    %25 = tpu.iota {dimensions = array<i32: 0>} : vector<256x128xi32>
    %c16_i32 = arith.constant 16 : i32
    %c0_i32 = arith.constant 0 : i32
    %26 = arith.cmpi eq, %c16_i32, %c0_i32 : i32
    %c1_i32 = arith.constant 1 : i32
    %27 = arith.select %26, %c1_i32, %c16_i32 : i32
    %28 = vector.broadcast %27 : i32 to vector<256x128xi32>
    %29 = arith.remsi %25, %28 : vector<256x128xi32>
    %c0_i32_20 = arith.constant 0 : i32
    %30 = vector.broadcast %c0_i32_20 : i32 to vector<256x128xi32>
    %31 = arith.cmpi ne, %29, %30 : vector<256x128xi32>
    %c0_i32_21 = arith.constant 0 : i32
    %32 = vector.broadcast %c0_i32_21 : i32 to vector<256x128xi32>
    %33 = arith.cmpi slt, %29, %32 : vector<256x128xi32>
    %c0_i32_22 = arith.constant 0 : i32
    %34 = arith.cmpi slt, %27, %c0_i32_22 : i32
    %35 = vector.broadcast %34 : i1 to vector<256x128xi1>
    %36 = vector.broadcast %35 : vector<256x128xi1> to vector<256x128xi1>
    %37 = arith.xori %33, %36 : vector<256x128xi1>
    %38 = arith.andi %37, %31 : vector<256x128xi1>
    %39 = vector.broadcast %27 : i32 to vector<256x128xi32>
    %40 = arith.addi %29, %39 : vector<256x128xi32>
    %41 = arith.select %38, %40, %29 : vector<256x128xi1>, vector<256x128xi32>
    %c1_i32_23 = arith.constant 1 : i32
    %42 = vector.broadcast %c1_i32_23 : i32 to vector<256x128xi32>
    %43 = arith.cmpi sge, %41, %42 : vector<256x128xi32>
    %44 = arith.extui %43 : vector<256x128xi1> to vector<256x128xi32>
    %45 = arith.sitofp %44 : vector<256x128xi32> to vector<256x128xf32>
    %c14_i32 = arith.constant 14 : i32
    %46 = vector.broadcast %c14_i32 : i32 to vector<256x128xi32>
    %47 = arith.cmpi sle, %41, %46 : vector<256x128xi32>
    %48 = arith.extui %47 : vector<256x128xi1> to vector<256x128xi32>
    %49 = arith.sitofp %48 : vector<256x128xi32> to vector<256x128xf32>
    %cst_24 = arith.constant 0.000000e+00 : f32
    %50 = vector.broadcast %cst_24 : f32 to vector<256x128xf32>
    %c7 = arith.constant 7 : index
    %c0_25 = arith.constant 0 : index
    %51 = vector.load %arg14[%c7, %c0_25] : memref<304x128xf32, #tpu.memory_space<vmem>>, vector<256x128xf32>
    %52 = arith.mulf %51, %45 : vector<256x128xf32>
    %c8 = arith.constant 8 : index
    %c0_26 = arith.constant 0 : index
    %53 = vector.load %arg14[%c8, %c0_26] : memref<304x128xf32, #tpu.memory_space<vmem>>, vector<256x128xf32>
    %c9 = arith.constant 9 : index
    %c0_27 = arith.constant 0 : index
    %54 = vector.load %arg14[%c9, %c0_27] : memref<304x128xf32, #tpu.memory_space<vmem>>, vector<256x128xf32>
    %55 = arith.mulf %54, %49 : vector<256x128xf32>
    %56 = tpu.concatenate %52, %53, %55 in 1 : vector<256x128xf32>, vector<256x128xf32>, vector<256x128xf32> -> vector<256x384xf32>
    %c0_28 = arith.constant 0 : index
    %c0_29 = arith.constant 0 : index
    %c0_30 = arith.constant 0 : index
    %57 = vector.load %arg3[%c0_28, %c0_29, %c0_30] : memref<3x384x128xf32, #tpu.memory_space<vmem>>, vector<1x384x128xf32>
    %58 = vector.shape_cast %57 : vector<1x384x128xf32> to vector<384x128xf32>
    %cst_31 = arith.constant dense<0.000000e+00> : vector<256x128xf32>
    %59 = tpu.matmul %56, %58, %cst_31 {dimension_numbers = #tpu.dot_dimension_numbers<[1], [0], [0], [1], [0, 0, 1, 1], [], []>} : vector<256x384xf32>, vector<384x128xf32>, vector<256x128xf32> -> vector<256x128xf32>
    %60 = arith.addf %50, %59 : vector<256x128xf32>
    %c23 = arith.constant 23 : index
    %c0_32 = arith.constant 0 : index
    %61 = vector.load %arg14[%c23, %c0_32] : memref<304x128xf32, #tpu.memory_space<vmem>>, vector<256x128xf32>
    %62 = arith.mulf %61, %45 : vector<256x128xf32>
    %c24_33 = arith.constant 24 : index
    %c0_34 = arith.constant 0 : index
    %63 = vector.load %arg14[%c24_33, %c0_34] : memref<304x128xf32, #tpu.memory_space<vmem>>, vector<256x128xf32>
    %c25 = arith.constant 25 : index
    %c0_35 = arith.constant 0 : index
    %64 = vector.load %arg14[%c25, %c0_35] : memref<304x128xf32, #tpu.memory_space<vmem>>, vector<256x128xf32>
    %65 = arith.mulf %64, %49 : vector<256x128xf32>
    %66 = tpu.concatenate %62, %63, %65 in 1 : vector<256x128xf32>, vector<256x128xf32>, vector<256x128xf32> -> vector<256x384xf32>
    %c1 = arith.constant 1 : index
    %c0_36 = arith.constant 0 : index
    %c0_37 = arith.constant 0 : index
    %67 = vector.load %arg3[%c1, %c0_36, %c0_37] : memref<3x384x128xf32, #tpu.memory_space<vmem>>, vector<1x384x128xf32>
    %68 = vector.shape_cast %67 : vector<1x384x128xf32> to vector<384x128xf32>
    %cst_38 = arith.constant dense<0.000000e+00> : vector<256x128xf32>
    %69 = tpu.matmul %66, %68, %cst_38 {dimension_numbers = #tpu.dot_dimension_numbers<[1], [0], [0], [1], [0, 0, 1, 1], [], []>} : vector<256x384xf32>, vector<384x128xf32>, vector<256x128xf32> -> vector<256x128xf32>
    %70 = arith.addf %60, %69 : vector<256x128xf32>
    %c39 = arith.constant 39 : index
    %c0_39 = arith.constant 0 : index
    %71 = vector.load %arg14[%c39, %c0_39] : memref<304x128xf32, #tpu.memory_space<vmem>>, vector<256x128xf32>
    %72 = arith.mulf %71, %45 : vector<256x128xf32>
    %c40 = arith.constant 40 : index
    %c0_40 = arith.constant 0 : index
    %73 = vector.load %arg14[%c40, %c0_40] : memref<304x128xf32, #tpu.memory_space<vmem>>, vector<256x128xf32>
    %c41 = arith.constant 41 : index
    %c0_41 = arith.constant 0 : index
    %74 = vector.load %arg14[%c41, %c0_41] : memref<304x128xf32, #tpu.memory_space<vmem>>, vector<256x128xf32>
    %75 = arith.mulf %74, %49 : vector<256x128xf32>
    %76 = tpu.concatenate %72, %73, %75 in 1 : vector<256x128xf32>, vector<256x128xf32>, vector<256x128xf32> -> vector<256x384xf32>
    %c2 = arith.constant 2 : index
    %c0_42 = arith.constant 0 : index
    %c0_43 = arith.constant 0 : index
    %77 = vector.load %arg3[%c2, %c0_42, %c0_43] : memref<3x384x128xf32, #tpu.memory_space<vmem>>, vector<1x384x128xf32>
    %78 = vector.shape_cast %77 : vector<1x384x128xf32> to vector<384x128xf32>
    %cst_44 = arith.constant dense<0.000000e+00> : vector<256x128xf32>
    %79 = tpu.matmul %76, %78, %cst_44 {dimension_numbers = #tpu.dot_dimension_numbers<[1], [0], [0], [1], [0, 0, 1, 1], [], []>} : vector<256x384xf32>, vector<384x128xf32>, vector<256x128xf32> -> vector<256x128xf32>
    %80 = arith.addf %70, %79 : vector<256x128xf32>
    %c0_45 = arith.constant 0 : index
    %c0_46 = arith.constant 0 : index
    %81 = vector.load %arg9[%c0_45, %c0_46] : memref<1x128xf32, #tpu.memory_space<vmem>>, vector<1x128xf32>
    %82 = vector.broadcast %81 : vector<1x128xf32> to vector<256x128xf32>
    %83 = arith.mulf %80, %82 : vector<256x128xf32>
    %c0_47 = arith.constant 0 : index
    %c0_48 = arith.constant 0 : index
    %84 = vector.load %arg10[%c0_47, %c0_48] : memref<1x128xf32, #tpu.memory_space<vmem>>, vector<1x128xf32>
    %85 = vector.broadcast %84 : vector<1x128xf32> to vector<256x128xf32>
    %86 = arith.addf %83, %85 : vector<256x128xf32>
    %cst_49 = arith.constant 0.000000e+00 : f32
    %87 = vector.broadcast %cst_49 : f32 to vector<256x128xf32>
    %88 = arith.maximumf %86, %87 : vector<256x128xf32>
    %c0_50 = arith.constant 0 : index
    %c0_51 = arith.constant 0 : index
    %89 = vector.load %arg4[%c0_50, %c0_51] : memref<128x128xf32, #tpu.memory_space<vmem>>, vector<128x128xf32>
    %cst_52 = arith.constant dense<0.000000e+00> : vector<256x128xf32>
    %90 = tpu.matmul %88, %89, %cst_52 {dimension_numbers = #tpu.dot_dimension_numbers<[1], [0], [0], [1], [0, 0, 1, 1], [], []>} : vector<256x128xf32>, vector<128x128xf32>, vector<256x128xf32> -> vector<256x128xf32>
    %c0_53 = arith.constant 0 : index
    %c0_54 = arith.constant 0 : index
    %91 = vector.load %arg11[%c0_53, %c0_54] : memref<128x128xf32, #tpu.memory_space<vmem>>, vector<128x128xf32>
    %cst_55 = arith.constant dense<0.000000e+00> : vector<256x128xf32>
    %92 = tpu.matmul %1, %91, %cst_55 {dimension_numbers = #tpu.dot_dimension_numbers<[1], [0], [0], [1], [0, 0, 1, 1], [], []>} : vector<256x128xf32>, vector<128x128xf32>, vector<256x128xf32> -> vector<256x128xf32>
    %93 = arith.addf %90, %92 : vector<256x128xf32>
    %c0_56 = arith.constant 0 : index
    %c0_57 = arith.constant 0 : index
    %94 = vector.load %arg12[%c0_56, %c0_57] : memref<1x128xf32, #tpu.memory_space<vmem>>, vector<1x128xf32>
    %95 = vector.broadcast %94 : vector<1x128xf32> to vector<256x128xf32>
    %96 = arith.addf %93, %95 : vector<256x128xf32>
    %c0_58 = arith.constant 0 : index
    %c0_59 = arith.constant 0 : index
    %c0_60 = arith.constant 0 : index
    %97 = vector.load %arg13[%c0_58, %c0_59, %c0_60] : memref<1x256x128xf32, #tpu.memory_space<vmem>>, vector<1x256x128xf32>
    %98 = vector.shape_cast %97 : vector<1x256x128xf32> to vector<256x128xf32>
    %99 = vector.shape_cast %96 : vector<256x128xf32> to vector<1x256x128xf32>
    tpu.vector_store %arg13[%c0_58, %c0_59, %c0_60], %99 {strides = array<i32>} : memref<1x256x128xf32, #tpu.memory_space<vmem>>, vector<1x256x128xf32>,
    return
  }
  func.func @transform_0(%arg0: i32) -> (i32, i32, i32) {
    %c0_i32 = arith.constant 0 : i32
    %c0_i32_0 = arith.constant 0 : i32
    %c0_i32_1 = arith.constant 0 : i32
    return %arg0, %c0_i32, %c0_i32_0 : i32, i32, i32
  }
  func.func @transform_1(%arg0: i32) -> (i32, i32) {
    %c0_i32 = arith.constant 0 : i32
    %c0_i32_0 = arith.constant 0 : i32
    %c0_i32_1 = arith.constant 0 : i32
    return %c0_i32, %c0_i32_0 : i32, i32
  }
  func.func @transform_2(%arg0: i32) -> (i32, i32, i32) {
    %c0_i32 = arith.constant 0 : i32
    %c0_i32_0 = arith.constant 0 : i32
    %c0_i32_1 = arith.constant 0 : i32
    %c0_i32_2 = arith.constant 0 : i32
    return %c0_i32, %c0_i32_0, %c0_i32_1 : i32, i32, i32
  }
  func.func @transform_3(%arg0: i32) -> (i32, i32) {
    %c0_i32 = arith.constant 0 : i32
    %c0_i32_0 = arith.constant 0 : i32
    %c0_i32_1 = arith.constant 0 : i32
    return %c0_i32, %c0_i32_0 : i32, i32
  }
  func.func @transform_4(%arg0: i32) -> (i32, i32) {
    %c0_i32 = arith.constant 0 : i32
    %c0_i32_0 = arith.constant 0 : i32
    %c0_i32_1 = arith.constant 0 : i32
    return %c0_i32, %c0_i32_0 : i32, i32
  }
  func.func @transform_5(%arg0: i32) -> (i32, i32) {
    %c0_i32 = arith.constant 0 : i32
    %c0_i32_0 = arith.constant 0 : i32
    %c0_i32_1 = arith.constant 0 : i32
    return %c0_i32, %c0_i32_0 : i32, i32
  }
  func.func @transform_6(%arg0: i32) -> (i32, i32) {
    %c0_i32 = arith.constant 0 : i32
    %c0_i32_0 = arith.constant 0 : i32
    %c0_i32_1 = arith.constant 0 : i32
    return %c0_i32, %c0_i32_0 : i32, i32
  }
  func.func @transform_7(%arg0: i32) -> (i32, i32) {
    %c0_i32 = arith.constant 0 : i32
    %c0_i32_0 = arith.constant 0 : i32
    %c0_i32_1 = arith.constant 0 : i32
    return %c0_i32, %c0_i32_0 : i32, i32
  }
  func.func @transform_8(%arg0: i32) -> (i32, i32) {
    %c0_i32 = arith.constant 0 : i32
    %c0_i32_0 = arith.constant 0 : i32
    %c0_i32_1 = arith.constant 0 : i32
    return %c0_i32, %c0_i32_0 : i32, i32
  }
  func.func @transform_9(%arg0: i32) -> (i32, i32) {
    %c0_i32 = arith.constant 0 : i32
    %c0_i32_0 = arith.constant 0 : i32
    %c0_i32_1 = arith.constant 0 : i32
    return %c0_i32, %c0_i32_0 : i32, i32
  }
  func.func @transform_10(%arg0: i32) -> (i32, i32) {
    %c0_i32 = arith.constant 0 : i32
    %c0_i32_0 = arith.constant 0 : i32
    %c0_i32_1 = arith.constant 0 : i32
    return %c0_i32, %c0_i32_0 : i32, i32
  }
  func.func @transform_11(%arg0: i32) -> (i32, i32) {
    %c0_i32 = arith.constant 0 : i32
    %c0_i32_0 = arith.constant 0 : i32
    %c0_i32_1 = arith.constant 0 : i32
    return %c0_i32, %c0_i32_0 : i32, i32
  }
  func.func @transform_12(%arg0: i32) -> (i32, i32, i32) {
    %c0_i32 = arith.constant 0 : i32
    %c0_i32_0 = arith.constant 0 : i32
    %c0_i32_1 = arith.constant 0 : i32
    return %arg0, %c0_i32, %c0_i32_0 : i32, i32, i32
  }
}

</mosaic_0001>

<bundles_post_ra>
// kernel: preact_bottleneck_forward.1
= control target key start
LH: loop header
LB: loop body
LE: loop exit
PB: predicated region body
PF: predicated region fallthrough
CT: control target
= control target key end

     0   :  { %s3814_s21 = smov 0   ;;  %s5748_s0 = inlined_call_operand.vmem [shape: f32[2,256,128], index: 0, kind: input, shape index: {}]   ;;  %s5749_s1 = inlined_call_operand.vmem [shape: f32[128,128], index: 1, kind: input, shape index: {}]   ;;  %s5750_s2 = inlined_call_operand.vmem [shape: f32[3,384,128], index: 2, kind: input, shape index: {}]   ;;  %s5751_s3 = inlined_call_operand.vmem [shape: f32[128,128], index: 3, kind: input, shape index: {}]   ;;  %s5752_s4 = inlined_call_operand.vmem [shape: f32[1,128], index: 4, kind: input, shape index: {}]   ;;  %s5753_s5 = inlined_call_operand.vmem [shape: f32[1,128], index: 5, kind: input, shape index: {}]   ;;  %s5754_s6 = inlined_call_operand.vmem [shape: f32[1,128], index: 6, kind: input, shape index: {}]   ;;  %s5755_s7 = inlined_call_operand.vmem [shape: f32[1,128], index: 7, kind: input, shape index: {}]   ;;  %s5756_s8 = inlined_call_operand.vmem [shape: f32[1,128], index: 8, kind: input, shape index: {}]   ;;  %s5757_s9 = inlined_call_operand.vmem [shape: f32[1,128], index: 9, kind: input, shape index: {}]   ;;  %s5758_s10 = inlined_call_operand.vmem [shape: f32[128,128], index: 10, kind: input, shape index: {}]   ;;  %s5759_s11 = inlined_call_operand.vmem [shape: f32[1,128], index: 11, kind: input, shape index: {}]   ;;  %s5760_s12 = inlined_call_operand.vmem [shape: f32[2,256,128], index: 12, kind: output, shape index: {}]  }
   0x1 LB: > { %s3500_s22 = sadd.s32 4294967295, %s3746_s21   ;;  %p3504_p0 = scmp.ge.s32.totalorder %s3746_s21, 1  ;;  %s3746_s21 = sphi %s3814_s21, %s22_s21  }
   0x2   : > { %p362_p1 = scmp.lt.s32.totalorder %s3746_s21, 3 }
   0x4   : > { %p363_p2 = pnand %p3504_p0, %p362_p1 }
   0x6   : > { %366 = sbr.rel (%p363_p2) target bundleno = 1218 (0x4c2), region = 68 }
   0xb   : > { %v565_v0 = vld [vmem:[%s5749_s1 + $0x78] sm:$0xff]  ;;  %v564_v1 = vld [vmem:[%s5749_s1 + $0x70] sm:$0xff]  ;;  %v563_v2 = vld [vmem:[%s5749_s1 + $0x68] sm:$0xff]  ;;  %p404_p3 = scmp.lt.s32.totalorder %s3500_s22, 1 }
   0xc   : > { %566 = vmatpush.msra.mxu0 %v565_v0  ;;  %v562_v3 = vld [vmem:[%s5749_s1 + $0x60] sm:$0xff]  ;;  %v561_v4 = vld [vmem:[%s5749_s1 + $0x58] sm:$0xff]  ;;  %v560_v5 = vld [vmem:[%s5749_s1 + $0x50] sm:$0xff] }
   0xd   : > { %s5983_s22 = smov (!%p404_p3, %s3500_s22), 1  ;;  %v559_v6 = vld [vmem:[%s5749_s1 + $0x48] sm:$0xff]  ;;  %v558_v7 = vld [vmem:[%s5749_s1 + $0x40] sm:$0xff]  ;;  %v557_v8 = vld [vmem:[%s5749_s1 + $0x38] sm:$0xff] }
   0xe   : > { %567 = vmatpush.msra.mxu0 %v564_v1  ;;  %s3639_s19 = sshll.u32 %s5983_s22, 8  ;;  %v556_v9 = vld [vmem:[%s5749_s1 + $0x30] sm:$0xff]  ;;  %v3865_v10 = vld [vmem:[%s5752_s4] ss:$0 sm:$0xff]  ;;  %v555_v12 = vld [vmem:[%s5749_s1 + $0x28] sm:$0xff] }
   0xf   : > { %s3857_s28 = scalar_lea.vmem %s5748_s0, %s3639_s19  ;;  %v554_v13 = vld [vmem:[%s5749_s1 + $0x20] sm:$0xff]  ;;  %v553_v16 = vld [vmem:[%s5749_s1 + $0x18] sm:$0xff]  ;;  %v552_v17 = vld [vmem:[%s5749_s1 + $0x10] sm:$0xff]  ;;  %s5538_s26 = scalar_lea.vmem %s5760_s12, %s3639_s19 }
  0x10   : > { %568 = vmatpush.msra.mxu0 %v563_v2  ;;  %v414_v11 = vld [vmem:[%s3857_s28] sm:$0xff]  ;;  %v415_v19 = vld [vmem:[%s3857_s28 + $0x8] sm:$0xff]  ;;  %v416_v25 = vld [vmem:[%s3857_s28 + $0x10] sm:$0xff] }
  0x11   : > { %v450_v14 = vmul.f32 %v3865_v10, %v414_v11  ;;  %v3878_v15 = vld [vmem:[%s5753_s5] ss:$0 sm:$0xff]  ;;  %v551_v20 = vld [vmem:[%s5749_s1 + $0x8] sm:$0xff]  ;;  %v451_v23 = vmul.f32 %v3865_v10, %v415_v19  ;;  %v452_v27 = vmul.f32 %v3865_v10, %v416_v25  ;;  %v417_v29 = vld [vmem:[%s3857_s28 + $0x18] sm:$0xff] }
  0x12   : > { %569 = vmatpush.msra.mxu0 %v562_v3  ;;  %v550_v21 = vld [vmem:[%s5749_s1] sm:$0xff]  ;;  %v453_v31 = vmul.f32 %v3865_v10, %v417_v29  ;;  %v419_v37 = vld [vmem:[%s3857_s28 + $0x28] sm:$0xff]  ;;  %v420_v41 = vld [vmem:[%s3857_s28 + $0x30] sm:$0xff] }
  0x13   : > { %v486_v18 = vadd.f32 %v3878_v15, %v450_v14  ;;  %v487_v24 = vadd.f32 %v3878_v15, %v451_v23  ;;  %v488_v28 = vadd.f32 %v3878_v15, %v452_v27  ;;  %v418_v33 = vld [vmem:[%s3857_s28 + $0x20] sm:$0xff]  ;;  %v455_v39 = vmul.f32 %v3865_v10, %v419_v37  ;;  %v421_v45 = vld [vmem:[%s3857_s28 + $0x38] sm:$0xff]  ;;  %v423_v53 = vld [vmem:[%s3857_s28 + $0x48] sm:$0xff] }
  0x14   : > { %570 = vmatpush.msra.mxu0 %v561_v4  ;;  %v489_v32 = vadd.f32 %v3878_v15, %v453_v31  ;;  %v454_v35 = vmul.f32 %v3865_v10, %v418_v33  ;;  %v456_v43 = vmul.f32 %v3865_v10, %v420_v41  ;;  %v457_v47 = vmul.f32 %v3865_v10, %v421_v45  ;;  %v422_v49 = vld [vmem:[%s3857_s28 + $0x40] sm:$0xff]  ;;  %v424_v57 = vld [vmem:[%s3857_s28 + $0x50] sm:$0xff]  ;;  %v3572_v60 = vld [vmem:[%s5750_s2 + $0x278] sm:$0xff] }
  0x15   : > { %v518_v22 = vmax.f32 %v486_v18, 0.0  ;;  %v519_v26 = vmax.f32 %v487_v24, 0.0  ;;  %v520_v30 = vmax.f32 %v488_v28, 0.0  ;;  %v491_v40 = vadd.f32 %v3878_v15, %v455_v39  ;;  %1870 = vmatpush.msra.mxu2 %v3572_v60  ;;  %v3571_v61 = vld [vmem:[%s5750_s2 + $0x270] sm:$0xff]  ;;  %v3556_v63 = vld [vmem:[%s5750_s2 + $0x1f8] sm:$0xff]  ;;  %v3570_v0 = vld [vmem:[%s5750_s2 + $0x268] sm:$0xff] }
  0x16   : > { %571 = vmatpush.msra.mxu0 %v560_v5  ;;  %v521_v34 = vmax.f32 %v489_v32, 0.0  ;;  %v490_v36 = vadd.f32 %v3878_v15, %v454_v35  ;;  %v492_v44 = vadd.f32 %v3878_v15, %v456_v43  ;;  %v493_v48 = vadd.f32 %v3878_v15, %v457_v47  ;;  %v425_v1 = vld [vmem:[%s3857_s28 + $0x58] sm:$0xff]  ;;  %1757 = vmatpush.msra.mxu1 %v3556_v63  ;;  %v3569_v2 = vld [vmem:[%s5750_s2 + $0x260] sm:$0xff]  ;;  %v3551_v24 = vld [vmem:[%s5750_s2 + $0x1d0] sm:$0xff] }
  0x17   : > { %v523_v42 = vmax.f32 %v491_v40, 0.0  ;;  %v458_v51 = vmul.f32 %v3865_v10, %v422_v49  ;;  %v459_v55 = vmul.f32 %v3865_v10, %v423_v53  ;;  %v460_v59 = vmul.f32 %v3865_v10, %v424_v57  ;;  %1871 = vmatpush.msra.mxu2 %v3571_v61  ;;  %v3568_v5 = vld [vmem:[%s5750_s2 + $0x258] sm:$0xff]  ;;  %v426_v11 = vld [vmem:[%s3857_s28 + $0x60] sm:$0xff]  ;;  %v3586_v25 = vld [vmem:[%s5750_s2 + $0x2e8] sm:$0xff] }
  0x18   : > { %572 = vmatpush.msra.mxu0 %v559_v6  ;;  %v522_v38 = vmax.f32 %v490_v36, 0.0  ;;  %v524_v46 = vmax.f32 %v492_v44, 0.0  ;;  %v525_v50 = vmax.f32 %v493_v48, 0.0  ;;  %v461_v4 = vmul.f32 %v3865_v10, %v425_v1  ;;  %v3567_v6 = vld [vmem:[%s5750_s2 + $0x250] sm:$0xff]  ;;  %v3553_v14 = vld [vmem:[%s5750_s2 + $0x1e0] sm:$0xff]  ;;  %v427_v27 = vld [vmem:[%s3857_s28 + $0x68] sm:$0xff] }
  0x19   : > { %v494_v52 = vadd.f32 %v3878_v15, %v458_v51  ;;  %v495_v56 = vadd.f32 %v3878_v15, %v459_v55  ;;  %v496_v62 = vadd.f32 %v3878_v15, %v460_v59  ;;  %1872 = vmatpush.msra.mxu2 %v3570_v0  ;;  %v462_v19 = vmul.f32 %v3865_v10, %v426_v11  ;;  %v3585_v28 = vld [vmem:[%s5750_s2 + $0x2e0] sm:$0xff]  ;;  %v3562_v29 = vld [vmem:[%s5750_s2 + $0x228] sm:$0xff]  ;;  %v3560_v35 = vld [vmem:[%s5750_s2 + $0x218] sm:$0xff] }
  0x1a   : > { %573 = vmatpush.msra.mxu0 %v558_v7  ;;  %v497_v7 = vadd.f32 %v3878_v15, %v461_v4  ;;  %v463_v32 = vmul.f32 %v3865_v10, %v427_v27  ;;  %v3549_v33 = vld [vmem:[%s5750_s2 + $0x1c0] sm:$0xff]  ;;  %v3548_v36 = vld [vmem:[%s5750_s2 + $0x1b8] sm:$0xff]  ;;  %v3583_v37 = vld [vmem:[%s5750_s2 + $0x2d0] sm:$0xff]  ;;  %v5761_v51 = vmov 0.0  }
  0x1b   : > { %v526_v54 = vmax.f32 %v494_v52, 0.0  ;;  %v527_v58 = vmax.f32 %v495_v56, 0.0  ;;  %1873 = vmatpush.msra.mxu2 %v3569_v2  ;;  %v528_v3 = vmax.f32 %v496_v62, 0.0  ;;  %v498_v23 = vadd.f32 %v3878_v15, %v462_v19  ;;  %v3547_v40 = vld [vmem:[%s5750_s2 + $0x1b0] sm:$0xff]  ;;  %v3582_v41 = vld [vmem:[%s5750_s2 + $0x2c8] sm:$0xff]  ;;  %v3581_v45 = vld [vmem:[%s5750_s2 + $0x2c0] sm:$0xff] }
  0x1c   : > { %574 = vmatpush.msra.mxu0 %v557_v8  ;;  %v3555_v8 = vld [vmem:[%s5750_s2 + $0x1f0] sm:$0xff]  ;;  %v529_v18 = vmax.f32 %v497_v7, 0.0  ;;  %v499_v39 = vadd.f32 %v3878_v15, %v463_v32  ;;  %v3558_v43 = vld [vmem:[%s5750_s2 + $0x208] sm:$0xff]  ;;  %v3545_v49 = vld [vmem:[%s5750_s2 + $0x1a0] sm:$0xff]  ;;  %783 = vst [vmem:[#allocation2] sm:$0xff] %v5761_v51 }
  0x1d   : > { %1874 = vmatpush.msra.mxu2 %v3568_v5  ;;  %1758 = vmatpush.msra.mxu1 %v3555_v8  ;;  %v530_v31 = vmax.f32 %v498_v23, 0.0  ;;  %v3546_v44 = vld [vmem:[%s5750_s2 + $0x1a8] sm:$0xff]  ;;  %784 = vst [vmem:[#allocation2 + $0x8] sm:$0xff] %v5761_v51  ;;  %v3544_v52 = vld [vmem:[%s5750_s2 + $0x198] sm:$0xff]  ;;  %v3579_v53 = vld [vmem:[%s5750_s2 + $0x2b0] sm:$0xff]  ;;  %v821_v8 = vlaneseq }
  0x1e   : > { %575 = vmatpush.msra.mxu0 %v556_v9  ;;  %v3554_v9 = vld [vmem:[%s5750_s2 + $0x1e8] sm:$0xff]  ;;  %v531_v47 = vmax.f32 %v499_v39, 0.0  ;;  %785 = vst [vmem:[#allocation2 + $0x10] sm:$0xff] %v5761_v51  ;;  %v3543_v55 = vld [vmem:[%s5750_s2 + $0x190] sm:$0xff]  ;;  %v429_v57 = vld [vmem:[%s3857_s28 + $0x78] sm:$0xff] }
  0x1f   : > { %1875 = vmatpush.msra.mxu2 %v3567_v6  ;;  %1759 = vmatpush.msra.mxu1 %v3554_v9  ;;  %786 = vst [vmem:[#allocation2 + $0x118] sm:$0xff] %v5761_v51  ;;  %v3578_v56 = vld [vmem:[%s5750_s2 + $0x2a8] sm:$0xff]  ;;  %v3577_v59 = vld [vmem:[%s5750_s2 + $0x2a0] sm:$0xff]  ;;  %v465_v61 = vmul.f32 %v3865_v10, %v429_v57  ;;  %v1605_v62 = vld [vmem:[%s5750_s2 + $0x78] sm:$0xff] }
  0x20   : > { %576 = vmatpush.msra.mxu0 %v555_v12  ;;  %v3588_v12 = vld [vmem:[%s5750_s2 + $0x2f8] sm:$0xff]  ;;  %787 = vst [vmem:[#allocation2 + $0x120] sm:$0xff] %v5761_v51  ;;  %v3541_v63 = vld [vmem:[%s5750_s2 + $0x180] sm:$0xff]  ;;  %v3575_v1 = vld [vmem:[%s5750_s2 + $0x290] sm:$0xff] }
  0x21   : > { %1983 = vmatpush.msra.mxu3 %v3588_v12  ;;  %1760 = vmatpush.msra.mxu1 %v3553_v14  ;;  %788 = vst [vmem:[#allocation2 + $0x128] sm:$0xff] %v5761_v51  ;;  %v3576_v0 = vld [vmem:[%s5750_s2 + $0x298] sm:$0xff]  ;;  %v501_v2 = vadd.f32 %v3878_v15, %v465_v61  ;;  %v430_v4 = vld [vmem:[%s3857_s28 + $0x80] sm:$0xff]  ;;  %v431_v11 = vld [vmem:[%s3857_s28 + $0x88] sm:$0xff] }
  0x22   : > { %577 = vmatpush.msra.mxu0 %v554_v13  ;;  %v3587_v13 = vld [vmem:[%s5750_s2 + $0x2f0] sm:$0xff]  ;;  %v3573_v5 = vld [vmem:[%s5750_s2 + $0x280] sm:$0xff]  ;;  %v466_v7 = vmul.f32 %v3865_v10, %v430_v4  ;;  %v435_v4 = vld [vmem:[%s3857_s28 + $0xa8] sm:$0xff] }
  0x23   : > { %1984 = vmatpush.msra.mxu3 %v3587_v13  ;;  %v533_v6 = vmax.f32 %v501_v2, 0.0  ;;  %v4098_v12 = vld [vmem:[%s5754_s6] ss:$0 sm:$0xff]  ;;  %v4100_v13 = vshrl.u32 %v821_v8, 7  ;;  %v1604_v19 = vld [vmem:[%s5750_s2 + $0x70] sm:$0xff] }
  0x24   : > { %578 = vmatpush.msra.mxu0 %v553_v16  ;;  %v3566_v16 = vld [vmem:[%s5750_s2 + $0x248] sm:$0xff]  ;;  %v502_v9 = vadd.f32 %v3878_v15, %v466_v7  ;;  %v4105_v14 = vld [vmem:[%s5755_s7] ss:$0 sm:$0xff] }
  0x25   : > { %1876 = vmatpush.msra.mxu2 %v3566_v16  ;;  %1985 = vmatpush.msra.mxu3 %v3586_v25  ;;  %v432_v25 = vld [vmem:[%s3857_s28 + $0x90] sm:$0xff]  ;;  %v858_v27 = vand.u32 15, %v4100_v13 }
  0x26   : > { %579 = vmatpush.msra.mxu0 %v552_v17  ;;  %v3565_v17 = vld [vmem:[%s5750_s2 + $0x240] sm:$0xff]  ;;  %v534_v16 = vmax.f32 %v502_v9, 0.0 }
  0x27   : > { %1877 = vmatpush.msra.mxu2 %v3565_v17  ;;  %1986 = vmatpush.msra.mxu3 %v3585_v28  ;;  %v467_v17 = vmul.f32 %v3865_v10, %v431_v11  ;;  %vm1238_vm0 = vcmp.ge.s32.totalorder %v858_v27, 1  ;;  %v827_v27 = vadd.s32 40, %v4100_v13 }
  0x28   : > { %580 = vmatpush.msra.mxu0 %v551_v20  ;;  %v3552_v20 = vld [vmem:[%s5750_s2 + $0x1d8] sm:$0xff] }
  0x29   : > { %1761 = vmatpush.msra.mxu1 %v3552_v20 }
  0x2a   : > { %581 = vmatpush.msra.mxu0 %v550_v21  ;;  %v3564_v21 = vld [vmem:[%s5750_s2 + $0x238] sm:$0xff] }
  0x2b   : > { %582 = vmatmul.f32.vlgmr.msra.gmra.mxu0 %v518_v22  ;;  %1878 = vmatpush.msra.mxu2 %v3564_v21  ;;  %v3563_v22 = vld [vmem:[%s5750_s2 + $0x230] sm:$0xff] }
  0x2c   : > { %1762 = vmatpush.msra.mxu1 %v3551_v24  ;;  %2096 = vmatpush.msrb.mxu0 %v1605_v62  ;;  %v503_v24 = vadd.f32 %v3878_v15, %v467_v17  ;;  %v1619_v62 = vld [vmem:[%s5750_s2 + $0xe8] sm:$0xff]  ;;  %v471_v17 = vmul.f32 %v3865_v10, %v435_v4 }
  0x2d   : > { %1879 = vmatpush.msra.mxu2 %v3563_v22  ;;  %v824_v22 = vadd.s32 16, %v4100_v13 }
  0x2e   : > { %2097 = vmatpush.msrb.mxu0 %v1604_v19 }
  0x2f   : > { %1880 = vmatpush.msra.mxu2 %v3562_v29  ;;  %v872_v28 = vand.u32 15, %v824_v22  ;;  %v535_v29 = vmax.f32 %v503_v24, 0.0  ;;  %v1602_v22 = vld [vmem:[%s5750_s2 + $0x60] sm:$0xff] }
  0x31   : > { %vm1240_vm1 = vcmp.ge.s32.totalorder %v872_v28, 1 }
  0x33   : > { %585 = vmatmul.f32.gmra.mxu0 %v519_v26  ;;  %v3550_v26 = vld [vmem:[%s5750_s2 + $0x1c8] sm:$0xff] }
  0x34   : > { %1763 = vmatpush.msra.mxu1 %v3550_v26 }
  0x36   : > { %1764 = vmatpush.msra.mxu1 %v3549_v33 }
  0x38   : > { %1765 = vmatpush.msra.mxu1 %v3548_v36  ;;  %v4128_v36 = vsel %vm1238_vm0, 1.0, %v5761_v51 }
  0x3a   : > { %1766 = vmatpush.msra.mxu1 %v3547_v40 }
  0x3b   : > { %588 = vmatmul.f32.gmra.mxu0 %v520_v30  ;;  %v3561_v30 = vld [vmem:[%s5750_s2 + $0x220] sm:$0xff] }
  0x3c   : > { %1881 = vmatpush.msra.mxu2 %v3561_v30  ;;  %1767 = vmatpush.msra.mxu1 %v3546_v44  ;;  %v468_v30 = vmul.f32 %v3865_v10, %v432_v25 }
  0x3e   : > { %1882 = vmatpush.msra.mxu2 %v3560_v35  ;;  %1768 = vmatpush.msra.mxu1 %v3545_v49  ;;  %v504_v35 = vadd.f32 %v3878_v15, %v468_v30  ;;  %v825_v49 = vadd.s32 24, %v4100_v13  ;;  %v436_v30 = vld [vmem:[%s3857_s28 + $0xb0] sm:$0xff] }
  0x40   : > { %1769 = vmatpush.msra.mxu1 %v3544_v52  ;;  %v879_v57 = vand.u32 15, %v825_v49 }
  0x42   : > { %1770 = vmatpush.msra.mxu1 %v3543_v55  ;;  %vm1337_vm3 = vcmp.le.s32.totalorder %v879_v57, 14 }
  0x43   : > { %591 = vmatmul.f32.gmra.mxu0 %v521_v34  ;;  %v3584_v34 = vld [vmem:[%s5750_s2 + $0x2d8] sm:$0xff] }
  0x44   : > { %1987 = vmatpush.msra.mxu3 %v3584_v34 }
  0x46   : > { %1988 = vmatpush.msra.mxu3 %v3583_v37  ;;  %v4131_v37 = vsel %vm1240_vm1, 1.0, %v5761_v51 }
  0x48   : > { %1989 = vmatpush.msra.mxu3 %v3582_v41 }
  0x4a   : > { %1990 = vmatpush.msra.mxu3 %v3581_v45  ;;  %v1603_v45 = vld [vmem:[%s5750_s2 + $0x68] sm:$0xff] }
  0x4b   : > { %594 = vmatmul.f32.gmra.mxu0 %v522_v38  ;;  %v3559_v38 = vld [vmem:[%s5750_s2 + $0x210] sm:$0xff] }
  0x4c   : > { %1883 = vmatpush.msra.mxu2 %v3559_v38  ;;  %v433_v38 = vld [vmem:[%s3857_s28 + $0x98] sm:$0xff]  ;;  %2098 = vmatpush.msrb.mxu0 %v1603_v45 }
  0x4d   : > { %v469_v44 = vmul.f32 %v3865_v10, %v433_v38  ;;  %v1618_v38 = vld [vmem:[%s5750_s2 + $0xe0] sm:$0xff] }
  0x4e   : > { %1884 = vmatpush.msra.mxu2 %v3558_v43  ;;  %v536_v43 = vmax.f32 %v504_v35, 0.0  ;;  %2099 = vmatpush.msrb.mxu0 %v1602_v22 }
  0x4f   : > { %v505_v52 = vadd.f32 %v3878_v15, %v469_v44 }
  0x53   : > { %597 = vmatmul.f32.gmra.mxu0 %v523_v42  ;;  %v428_v42 = vld [vmem:[%s3857_s28 + $0x70] sm:$0xff] }
  0x54   : > { %v464_v48 = vmul.f32 %v3865_v10, %v428_v42 }
  0x5b   : > { %600 = vmatmul.f32.gmra.mxu0 %v524_v46  ;;  %v3557_v46 = vld [vmem:[%s5750_s2 + $0x200] sm:$0xff] }
  0x5c   : > { %1885 = vmatpush.msra.mxu2 %v3557_v46 }
  0x63   : > { %603 = vmatmul.f32.gmra.mxu0 %v525_v50  ;;  %v3580_v50 = vld [vmem:[%s5750_s2 + $0x2b8] sm:$0xff] }
  0x64   : > { %1991 = vmatpush.msra.mxu3 %v3580_v50 }
  0x66   : > { %1992 = vmatpush.msra.mxu3 %v3579_v53  ;;  %v823_v53 = vadd.s32 8, %v4100_v13 }
  0x68   : > { %1993 = vmatpush.msra.mxu3 %v3578_v56  ;;  %v865_v61 = vand.u32 15, %v823_v53 }
  0x6a   : > { %1994 = vmatpush.msra.mxu3 %v3577_v59  ;;  %vm1335_vm4 = vcmp.le.s32.totalorder %v865_v61, 14 }
  0x6b   : > { %606 = vmatmul.f32.gmra.mxu0 %v526_v54  ;;  %v500_v54 = vadd.f32 %v3878_v15, %v464_v48  ;;  %v826_v48 = vadd.s32 32, %v4100_v13  ;;  %v4167_v9 = vsel %vm1335_vm4, 1.0, %v5761_v51 }
  0x6c   : > { %1995 = vmatpush.msra.mxu3 %v3576_v0 }
  0x6d   : > { %v532_v60 = vmax.f32 %v500_v54, 0.0  ;;  %v434_v54 = vld [vmem:[%s3857_s28 + $0xa0] sm:$0xff]  ;;  %v886_v56 = vand.u32 15, %v826_v48 }
  0x6e   : > { %1996 = vmatpush.msra.mxu3 %v3575_v1  ;;  %v470_v59 = vmul.f32 %v3865_v10, %v434_v54 }
  0x6f   : > { %vm1242_vm2 = vcmp.ge.s32.totalorder %v886_v56, 1 }
  0x70   : > { %v506_v2 = vadd.f32 %v3878_v15, %v470_v59  ;;  %v1601_v59 = vld [vmem:[%s5750_s2 + $0x58] sm:$0xff] }
  0x71   : > { %2100 = vmatpush.msrb.mxu0 %v1601_v59 }
  0x73   : > { %609 = vmatmul.f32.gmra.mxu0 %v527_v58  ;;  %v3542_v58 = vld [vmem:[%s5750_s2 + $0x188] sm:$0xff] }
  0x74   : > { %1771 = vmatpush.msra.mxu1 %v3542_v58 }
  0x76   : > { %1772 = vmatpush.msra.mxu1 %v3541_v63 }
  0x7b   : > { %612 = vmatmul.f32.gmra.mxu0 %v528_v3  ;;  %v3574_v3 = vld [vmem:[%s5750_s2 + $0x288] sm:$0xff] }
  0x7c   : > { %1997 = vmatpush.msra.mxu3 %v3574_v3 }
  0x7e   : > { %1998 = vmatpush.msra.mxu3 %v3573_v5  ;;  %v4161_v5 = vsel %vm1242_vm2, 1.0, %v5761_v51 }
  0x83   : > { %615 = vmatmul.f32.gmra.mxu0 %v529_v18  ;;  %v1621_v18 = vld [vmem:[%s5750_s2 + $0xf8] sm:$0xff] }
  0x84   : > { %2209 = vmatpush.msrb.mxu1 %v1621_v18 }
  0x8b   : > { %618 = vmatmul.f32.gmra.mxu0 %v530_v31  ;;  %v1620_v31 = vld [vmem:[%s5750_s2 + $0xf0] sm:$0xff] }
  0x8c   : > { %2210 = vmatpush.msrb.mxu1 %v1620_v31 }
  0x8e   : > { %2211 = vmatpush.msrb.mxu1 %v1619_v62  ;;  %v830_v62 = vadd.s32 64, %v4100_v13 }
  0x90   : > { %2212 = vmatpush.msrb.mxu1 %v1618_v38 }
  0x93   : > { %621 = vmatmul.f32.gmra.mxu0 %v531_v47 }
  0x9b   : > { %624 = vmatmul.f32.gmra.mxu0 %v532_v60  ;;  %v537_v60 = vmax.f32 %v505_v52, 0.0 }
  0xa3   : > { %627 = vmatmul.f32.gmra.mxu0 %v533_v6  ;;  %v4164_v6 = vsel %vm1337_vm3, 1.0, %v5761_v51 }
  0xa4   : > { %5783 = vst [vmem:[#allocation3_spill] sm:$0xff] %v4164_v6 }
  0xa8   : > { %v583_v20 = vpop.f32.mrf.mxu0 }
  0xa9   : > { %v683_v21 = vmul.f32 %v4098_v12, %v583_v20 }
  0xab   : > { %v719_v23 = vadd.f32 %v4105_v14, %v683_v21  ;;  %630 = vmatmul.f32.gmra.mxu0 %v534_v16  ;;  %v538_v16 = vmax.f32 %v506_v2, 0.0 }
  0xad   : > { %v751_v26 = vmax.f32 %v719_v23, 0.0 }
  0xaf   : > { %789 = vst [vmem:[#allocation2 + $0x18] sm:$0xff] %v751_v26  ;;  %1886 = vmatmul.f32.vlgmr.msra.gmra.mxu2 %v751_v26  ;;  %v828_v26 = vadd.s32 48, %v4100_v13 }
  0xb0   : > { %v586_v32 = vpop.f32.mrf.mxu0 }
  0xb1   : > { %v684_v33 = vmul.f32 %v4098_v12, %v586_v32  ;;  %v900_v32 = vand.u32 15, %v828_v26 }
  0xb3   : > { %v720_v34 = vadd.f32 %v4105_v14, %v684_v33  ;;  %633 = vmatmul.f32.gmra.mxu0 %v535_v29  ;;  %v507_v29 = vadd.f32 %v3878_v15, %v471_v17  ;;  %v893_v33 = vand.u32 15, %v827_v27  ;;  %vm1244_vm5 = vcmp.ge.s32.totalorder %v900_v32, 1  ;;  %v1617_v17 = vld [vmem:[%s5750_s2 + $0xd8] sm:$0xff]  ;;  %v439_v27 = vld [vmem:[%s3857_s28 + $0xc8] sm:$0xff] }
  0xb4   : > { %2213 = vmatpush.msrb.mxu1 %v1617_v17 }
  0xb5   : > { %v752_v39 = vmax.f32 %v720_v34, 0.0  ;;  %v472_v34 = vmul.f32 %v3865_v10, %v436_v30  ;;  %v539_v35 = vmax.f32 %v507_v29, 0.0  ;;  %vm1339_vm6 = vcmp.le.s32.totalorder %v893_v33, 14 }
  0xb6   : > { %v1432_v40 = vld [vmem:[#allocation2 + $0x17] sm:$0xff]  ;;  %v4205_v48 = vsel %vm1339_vm6, 1.0, %v5761_v51 }
  0xb7   : > { %790 = vst [vmem:[#allocation2 + $0x20] sm:$0xff] %v752_v39  ;;  %v4135_v41 = vmul.f32 %v4131_v37, %v1432_v40  ;;  %v1640_v42 = vmul.f32 %v4128_v36, %v1432_v40  ;;  %1889 = vmatmul.f32.gmra.mxu2 %v752_v39  ;;  %v508_v44 = vadd.f32 %v3878_v15, %v472_v34 }
  0xb8   : > { %v589_v46 = vpop.f32.mrf.mxu0  ;;  %5784 = vst [vmem:[#allocation4_spill] sm:$0xff] %v4205_v48  ;;  %v475_v34 = vmul.f32 %v3865_v10, %v439_v27 }
  0xb9   : > { %v685_v47 = vmul.f32 %v4098_v12, %v589_v46  ;;  %1773 = vmatmul.f32.vlgmr.msra.gmra.mxu1 %v1640_v42  ;;  %v437_v46 = vld [vmem:[%s3857_s28 + $0xb8] sm:$0xff]  ;;  %v540_v53 = vmax.f32 %v508_v44, 0.0 }
  0xba   : > { %v473_v54 = vmul.f32 %v3865_v10, %v437_v46  ;;  %v832_v46 = vadd.s32 80, %v4100_v13 }
  0xbb   : > { %v721_v50 = vadd.f32 %v4105_v14, %v685_v47  ;;  %636 = vmatmul.f32.gmra.mxu0 %v536_v43  ;;  %v4202_v47 = vsel %vm1244_vm5, 1.0, %v5761_v51 }
  0xbc   : > { %v509_v2 = vadd.f32 %v3878_v15, %v473_v54 }
  0xbd   : > { %v753_v55 = vmax.f32 %v721_v50, 0.0 }
  0xbe   : > { %v1528_v58 = vld [vmem:[#allocation2 + $0x19] sm:$0xff] }
  0xbf   : > { %791 = vst [vmem:[#allocation2 + $0x28] sm:$0xff] %v753_v55  ;;  %1999 = vmatmul.f32.vlgmr.msra.gmra.mxu3 %v1528_v58  ;;  %1892 = vmatmul.f32.gmra.mxu2 %v753_v55  ;;  %v4153_v0 = vld [vmem:[#allocation2 + $0x1f] sm:$0xff] }
  0xc0   : > { %v592_v63 = vpop.f32.mrf.mxu0 }
  0xc1   : > { %v686_v1 = vmul.f32 %v4098_v12, %v592_v63  ;;  %1776 = vmatmul.f32.gmra.mxu1 %v4153_v0  ;;  %v829_v63 = vadd.s32 56, %v4100_v13 }
  0xc3   : > { %v722_v3 = vadd.f32 %v4105_v14, %v686_v1  ;;  %639 = vmatmul.f32.gmra.mxu0 %v537_v60 }
  0xc5   : > { %v754_v7 = vmax.f32 %v722_v3, 0.0  ;;  %v438_v3 = vld [vmem:[%s3857_s28 + $0xc0] sm:$0xff] }
  0xc6   : > { %v2435_v8 = vld [vmem:[#allocation2 + $0x27] sm:$0xff] }
  0xc7   : > { %v1529_v11 = vld [vmem:[#allocation2 + $0x21] sm:$0xff]  ;;  %v4171_v18 = vmul.f32 %v4128_v36, %v2435_v8  ;;  %792 = vst [vmem:[#allocation2 + $0x30] sm:$0xff] %v754_v7  ;;  %v4174_v19 = vmul.f32 %v4161_v5, %v2435_v8  ;;  %v1642_v20 = vmul.f32 %v4131_v37, %v2435_v8  ;;  %1895 = vmatmul.f32.gmra.mxu2 %v754_v7  ;;  %v914_v7 = vand.u32 15, %v830_v62 }
  0xc8   : > { %v4178_v21 = vmul.f32 %v4164_v6, %v1529_v11  ;;  %v595_v23 = vpop.f32.mrf.mxu0  ;;  %v1677_v24 = vmul.f32 %v4167_v9, %v1529_v11  ;;  %v907_v8 = vand.u32 15, %v829_v63  ;;  %v474_v11 = vmul.f32 %v3865_v10, %v438_v3 }
  0xc9   : > { %v687_v25 = vmul.f32 %v4098_v12, %v595_v23  ;;  %1779 = vmatmul.f32.gmra.mxu1 %v1642_v20  ;;  %vm1246_vm7 = vcmp.ge.s32.totalorder %v914_v7, 1  ;;  %v441_v7 = vld [vmem:[%s3857_s28 + $0xd8] sm:$0xff] }
  0xca   : > { %2002 = vmatmul.f32.gmra.mxu3 %v1677_v24  ;;  %vm1341_vm8 = vcmp.le.s32.totalorder %v907_v8, 14 }
  0xcb   : > { %v723_v28 = vadd.f32 %v4105_v14, %v687_v25  ;;  %642 = vmatmul.f32.gmra.mxu0 %v538_v16  ;;  %v541_v16 = vmax.f32 %v509_v2, 0.0  ;;  %v510_v25 = vadd.f32 %v3878_v15, %v474_v11  ;;  %v4240_v29 = vsel %vm1341_vm8, 1.0, %v5761_v51 }
  0xcc   : > { %5785 = vst [vmem:[#allocation5_spill] sm:$0xff] %v4240_v29 }
  0xcd   : > { %v755_v31 = vmax.f32 %v723_v28, 0.0  ;;  %v4237_v28 = vsel %vm1246_vm7, 1.0, %v5761_v51  ;;  %v542_v33 = vmax.f32 %v510_v25, 0.0 }
  0xce   : > { %v4194_v40 = vld [vmem:[#allocation2 + $0x2f] sm:$0xff] }
  0xcf   : > { %793 = vst [vmem:[#allocation2 + $0x38] sm:$0xff] %v755_v31  ;;  %1898 = vmatmul.f32.gmra.mxu2 %v755_v31  ;;  %v1530_v43 = vld [vmem:[#allocation2 + $0x29] sm:$0xff] }
  0xd0   : > { %v598_v39 = vpop.f32.mrf.mxu0 }
  0xd1   : > { %v688_v42 = vmul.f32 %v4098_v12, %v598_v39  ;;  %1782 = vmatmul.f32.gmra.mxu1 %v4194_v40 }
  0xd2   : > { %2005 = vmatmul.f32.gmra.mxu3 %v1530_v43  ;;  %v1600_v43 = vld [vmem:[%s5750_s2 + $0x50] sm:$0xff] }
  0xd3   : > { %v724_v45 = vadd.f32 %v4105_v14, %v688_v42  ;;  %645 = vmatmul.f32.gmra.mxu0 %v539_v35 }
  0xd4   : > { %2101 = vmatpush.msrb.mxu0 %v1600_v43 }
  0xd5   : > { %v756_v49 = vmax.f32 %v724_v45, 0.0 }
  0xd6   : > { %v1436_v50 = vld [vmem:[#allocation2 + $0x37] sm:$0xff] }
  0xd7   : > { %v1531_v52 = vld [vmem:[#allocation2 + $0x31] sm:$0xff]  ;;  %794 = vst [vmem:[#allocation2 + $0x40] sm:$0xff] %v756_v49  ;;  %v4209_v55 = vmul.f32 %v4202_v47, %v1436_v50  ;;  %v1644_v56 = vmul.f32 %v4161_v5, %v1436_v50  ;;  %1901 = vmatmul.f32.gmra.mxu2 %v756_v49  ;;  %v831_v49 = vadd.s32 72, %v4100_v13 }
  0xd8   : > { %v4213_v57 = vmul.f32 %v4205_v48, %v1531_v52  ;;  %v1679_v58 = vmul.f32 %v4164_v6, %v1531_v52  ;;  %v601_v60 = vpop.f32.mrf.mxu0  ;;  %v511_v52 = vadd.f32 %v3878_v15, %v475_v34  ;;  %v834_v34 = vadd.s32 96, %v4100_v13 }
  0xd9   : > { %v689_v61 = vmul.f32 %v4098_v12, %v601_v60  ;;  %1785 = vmatmul.f32.gmra.mxu1 %v1644_v56  ;;  %v928_v56 = vand.u32 15, %v832_v46  ;;  %v1597_v46 = vld [vmem:[%s5750_s2 + $0x38] sm:$0xff] }
  0xda   : > { %2008 = vmatmul.f32.gmra.mxu3 %v1679_v58  ;;  %v921_v58 = vand.u32 15, %v831_v49  ;;  %v543_v60 = vmax.f32 %v511_v52, 0.0 }
  0xdb   : > { %v725_v1 = vadd.f32 %v4105_v14, %v689_v61  ;;  %648 = vmatmul.f32.gmra.mxu0 %v540_v53  ;;  %v440_v53 = vld [vmem:[%s3857_s28 + $0xd0] sm:$0xff]  ;;  %vm1248_vm9 = vcmp.ge.s32.totalorder %v928_v56, 1 }
  0xdc   : > { %v476_v59 = vmul.f32 %v3865_v10, %v440_v53  ;;  %v1616_v61 = vld [vmem:[%s5750_s2 + $0xd0] sm:$0xff]  ;;  %vm1343_vm10 = vcmp.le.s32.totalorder %v921_v58, 14  ;;  %v4272_v8 = vsel %vm1248_vm9, 1.0, %v5761_v51  ;;  %v1615_v58 = vld [vmem:[%s5750_s2 + $0xc8] sm:$0xff] }
  0xdd   : > { %v757_v4 = vmax.f32 %v725_v1, 0.0  ;;  %2214 = vmatpush.msrb.mxu1 %v1616_v61  ;;  %v4275_v11 = vsel %vm1343_vm10, 1.0, %v5761_v51 }
  0xde   : > { %v4229_v22 = vld [vmem:[#allocation2 + $0x3f] sm:$0xff]  ;;  %v512_v3 = vadd.f32 %v3878_v15, %v476_v59  ;;  %5786 = vst [vmem:[#allocation6_spill] sm:$0xff] %v4275_v11 }
  0xdf   : > { %795 = vst [vmem:[#allocation2 + $0x48] sm:$0xff] %v757_v4  ;;  %1904 = vmatmul.f32.gmra.mxu2 %v757_v4  ;;  %v1532_v24 = vld [vmem:[#allocation2 + $0x39] sm:$0xff]  ;;  %2215 = vmatpush.msrb.mxu1 %v1615_v58 }
  0xe0   : > { %v604_v20 = vpop.f32.mrf.mxu0 }
  0xe1   : > { %v690_v23 = vmul.f32 %v4098_v12, %v604_v20  ;;  %1788 = vmatmul.f32.gmra.mxu1 %v4229_v22 }
  0xe2   : > { %2011 = vmatmul.f32.gmra.mxu3 %v1532_v24  ;;  %v477_v24 = vmul.f32 %v3865_v10, %v441_v7  ;;  %v1594_v7 = vld [vmem:[%s5750_s2 + $0x20] sm:$0xff] }
  0xe3   : > { %v726_v26 = vadd.f32 %v4105_v14, %v690_v23  ;;  %651 = vmatmul.f32.gmra.mxu0 %v541_v16  ;;  %v544_v23 = vmax.f32 %v512_v3, 0.0 }
  0xe5   : > { %v758_v30 = vmax.f32 %v726_v26, 0.0 }
  0xe6   : > { %v1438_v31 = vld [vmem:[#allocation2 + $0x47] sm:$0xff] }
  0xe7   : > { %v1533_v32 = vld [vmem:[#allocation2 + $0x41] sm:$0xff]  ;;  %796 = vst [vmem:[#allocation2 + $0x50] sm:$0xff] %v758_v30  ;;  %v4244_v35 = vmul.f32 %v4237_v28, %v1438_v31  ;;  %v1646_v38 = vmul.f32 %v4202_v47, %v1438_v31  ;;  %1907 = vmatmul.f32.gmra.mxu2 %v758_v30 }
  0xe8   : > { %v4248_v39 = vmul.f32 %v4240_v29, %v1533_v32  ;;  %v1681_v42 = vmul.f32 %v4205_v48, %v1533_v32  ;;  %v607_v44 = vpop.f32.mrf.mxu0  ;;  %v1599_v31 = vld [vmem:[%s5750_s2 + $0x48] sm:$0xff] }
  0xe9   : > { %v691_v45 = vmul.f32 %v4098_v12, %v607_v44  ;;  %1791 = vmatmul.f32.gmra.mxu1 %v1646_v38  ;;  %2102 = vmatpush.msrb.mxu0 %v1599_v31  ;;  %v833_v38 = vadd.s32 88, %v4100_v13  ;;  %v513_v44 = vadd.f32 %v3878_v15, %v477_v24 }
  0xea   : > { %2014 = vmatmul.f32.gmra.mxu3 %v1681_v42  ;;  %v1598_v42 = vld [vmem:[%s5750_s2 + $0x40] sm:$0xff] }
  0xeb   : > { %v727_v50 = vadd.f32 %v4105_v14, %v691_v45  ;;  %654 = vmatmul.f32.gmra.mxu0 %v542_v33  ;;  %v442_v45 = vld [vmem:[%s3857_s28 + $0xe0] sm:$0xff]  ;;  %v935_v52 = vand.u32 15, %v833_v38  ;;  %v545_v56 = vmax.f32 %v513_v44, 0.0  ;;  %v836_v44 = vadd.s32 112, %v4100_v13 }
  0xec   : > { %2103 = vmatpush.msrb.mxu0 %v1598_v42  ;;  %v478_v53 = vmul.f32 %v3865_v10, %v442_v45  ;;  %v1592_v42 = vld [vmem:[%s5750_s2 + $0x10] sm:$0xff]  ;;  %v835_v45 = vadd.s32 104, %v4100_v13 }
  0xed   : > { %v759_v54 = vmax.f32 %v727_v50, 0.0  ;;  %v942_v50 = vand.u32 15, %v834_v34  ;;  %vm1345_vm12 = vcmp.le.s32.totalorder %v935_v52, 14  ;;  %v444_v52 = vld [vmem:[%s3857_s28 + $0xf0] sm:$0xff] }
  0xee   : > { %v4264_v63 = vld [vmem:[#allocation2 + $0x4f] sm:$0xff]  ;;  %2104 = vmatpush.msrb.mxu0 %v1597_v46  ;;  %v949_v58 = vand.u32 15, %v835_v45 }
  0xef   : > { %797 = vst [vmem:[#allocation2 + $0x58] sm:$0xff] %v759_v54  ;;  %1910 = vmatmul.f32.gmra.mxu2 %v759_v54  ;;  %v1534_v2 = vld [vmem:[#allocation2 + $0x49] sm:$0xff]  ;;  %vm1250_vm11 = vcmp.ge.s32.totalorder %v942_v50, 1 }
  0xf0   : > { %v610_v62 = vpop.f32.mrf.mxu0  ;;  %v1596_v54 = vld [vmem:[%s5750_s2 + $0x30] sm:$0xff]  ;;  %v1591_v46 = vld [vmem:[%s5750_s2 + $0x8] sm:$0xff]  ;;  %vm1347_vm14 = vcmp.le.s32.totalorder %v949_v58, 14 }
  0xf1   : > { %v692_v1 = vmul.f32 %v4098_v12, %v610_v62  ;;  %1794 = vmatmul.f32.gmra.mxu1 %v4264_v63  ;;  %2105 = vmatpush.msrb.mxu0 %v1596_v54 }
  0xf2   : > { %2017 = vmatmul.f32.gmra.mxu3 %v1534_v2  ;;  %v514_v2 = vadd.f32 %v3878_v15, %v478_v53  ;;  %v1590_v53 = vld [vmem:[%s5750_s2] sm:$0xff] }
  0xf3   : > { %v728_v4 = vadd.f32 %v4105_v14, %v692_v1  ;;  %657 = vmatmul.f32.gmra.mxu0 %v543_v60  ;;  %v1595_v1 = vld [vmem:[%s5750_s2 + $0x28] sm:$0xff] }
  0xf4   : > { %2106 = vmatpush.msrb.mxu0 %v1595_v1 }
  0xf5   : > { %v760_v16 = vmax.f32 %v728_v4, 0.0  ;;  %v443_v4 = vld [vmem:[%s3857_s28 + $0xe8] sm:$0xff] }
  0xf6   : > { %v1440_v17 = vld [vmem:[#allocation2 + $0x57] sm:$0xff]  ;;  %v479_v31 = vmul.f32 %v3865_v10, %v443_v4  ;;  %2107 = vmatpush.msrb.mxu0 %v1594_v7  ;;  %v3658_v7 = vld [vmem:[%s5753_s5] ss:$0 sm:$0xff] }
  0xf7   : > { %v1535_v20 = vld [vmem:[#allocation2 + $0x51] sm:$0xff]  ;;  %798 = vst [vmem:[#allocation2 + $0x60] sm:$0xff] %v760_v16  ;;  %v4279_v25 = vmul.f32 %v4272_v8, %v1440_v17  ;;  %v1648_v26 = vmul.f32 %v4237_v28, %v1440_v17  ;;  %1913 = vmatmul.f32.gmra.mxu2 %v760_v16  ;;  %v4322_v16 = vsel %vm1250_vm11, 1.0, %v5761_v51  ;;  %v4325_v17 = vsel %vm1345_vm12, 1.0, %v5761_v51 }
  0xf8   : > { %v4283_v27 = vmul.f32 %v4275_v11, %v1535_v20  ;;  %v1683_v30 = vmul.f32 %v4240_v29, %v1535_v20  ;;  %v613_v32 = vpop.f32.mrf.mxu0  ;;  %5787 = vst [vmem:[#allocation7_spill] sm:$0xff] %v4325_v17  ;;  %v515_v50 = vadd.f32 %v3878_v15, %v479_v31  ;;  %v1614_v15 = vld [vmem:[%s5750_s2 + $0xc0] sm:$0xff] }
  0xf9   : > { %v693_v33 = vmul.f32 %v4098_v12, %v613_v32  ;;  %1797 = vmatmul.f32.gmra.mxu1 %v1648_v26 }
  0xfa   : > { %2020 = vmatmul.f32.gmra.mxu3 %v1683_v30  ;;  %v546_v30 = vmax.f32 %v514_v2, 0.0  ;;  %2216 = vmatpush.msrb.mxu1 %v1614_v15  ;;  %v1613_v15 = vld [vmem:[%s5750_s2 + $0xb8] sm:$0xff] }
  0xfb   : > { %v729_v43 = vadd.f32 %v4105_v14, %v693_v33  ;;  %660 = vmatmul.f32.gmra.mxu0 %v544_v23  ;;  %v1593_v23 = vld [vmem:[%s5750_s2 + $0x18] sm:$0xff] }
  0xfc   : > { %2108 = vmatpush.msrb.mxu0 %v1593_v23  ;;  %2217 = vmatpush.msrb.mxu1 %v1613_v15 }
  0xfd   : > { %v761_v49 = vmax.f32 %v729_v43, 0.0 }
  0xfe   : > { %v4308_v60 = vld [vmem:[#allocation2 + $0x5f] sm:$0xff]  ;;  %2109 = vmatpush.msrb.mxu0 %v1592_v42 }
  0xff   : > { %799 = vst [vmem:[#allocation2 + $0x68] sm:$0xff] %v761_v49  ;;  %1916 = vmatmul.f32.gmra.mxu2 %v761_v49  ;;  %v1536_v62 = vld [vmem:[#allocation2 + $0x59] sm:$0xff] }
 0x100   : > { %v616_v59 = vpop.f32.mrf.mxu0  ;;  %2110 = vmatpush.msrb.mxu0 %v1591_v46 }
 0x101   : > { %v694_v61 = vmul.f32 %v4098_v12, %v616_v59  ;;  %1800 = vmatmul.f32.gmra.mxu1 %v4308_v60  ;;  %v3657_v59 = vld [vmem:[%s5752_s4] ss:$0 sm:$0xff] }
 0x102   : > { %2023 = vmatmul.f32.gmra.mxu3 %v1536_v62  ;;  %2111 = vmatpush.msrb.mxu0 %v1590_v53  ;;  %v547_v62 = vmax.f32 %v515_v50, 0.0  ;;  %v837_v53 = vadd.s32 120, %v4100_v13 }
 0x103   : > { %v730_v3 = vadd.f32 %v4105_v14, %v694_v61  ;;  %663 = vmatmul.f32.gmra.mxu0 %v545_v56  ;;  %v956_v56 = vand.u32 15, %v836_v44  ;;  %v480_v61 = vmul.f32 %v3657_v59, %v444_v52  ;;  %v838_v52 = vadd.s32 128, %v4100_v13 }
 0x105   : > { %v762_v20 = vmax.f32 %v730_v3, 0.0  ;;  %vm1252_vm13 = vcmp.ge.s32.totalorder %v956_v56, 1 }
 0x106   : > { %v1442_v24 = vld [vmem:[#allocation2 + $0x67] sm:$0xff] }
 0x107   : > { %v1537_v26 = vld [vmem:[#allocation2 + $0x61] sm:$0xff]  ;;  %800 = vst [vmem:[#allocation2 + $0x70] sm:$0xff] %v762_v20  ;;  %v4332_v32 = vmul.f32 %v4322_v16, %v1442_v24  ;;  %v1650_v33 = vmul.f32 %v4272_v8, %v1442_v24  ;;  %1919 = vmatmul.f32.gmra.mxu2 %v762_v20  ;;  %v516_v20 = vadd.f32 %v3658_v7, %v480_v61  ;;  %v445_v24 = vld [vmem:[%s3857_s28 + $0xf8] sm:$0xff]  ;;  %v963_v61 = vand.u32 15, %v837_v53 }
 0x108   : > { %v4336_v34 = vmul.f32 %v4325_v17, %v1537_v26  ;;  %v1685_v38 = vmul.f32 %v4275_v11, %v1537_v26  ;;  %v619_v43 = vpop.f32.mrf.mxu0  ;;  %v4370_v26 = vsel %vm1252_vm13, 1.0, %v5761_v51 }
 0x109   : > { %v695_v10 = vmul.f32 %v4098_v12, %v619_v43  ;;  %1803 = vmatmul.f32.gmra.mxu1 %v1650_v33  ;;  %v548_v42 = vmax.f32 %v516_v20, 0.0  ;;  %v481_v43 = vmul.f32 %v3657_v59, %v445_v24  ;;  %v970_v59 = vand.u32 15, %v838_v52  ;;  %v1637_v52 = vld [vmem:[%s5750_s2 + $0x178] sm:$0xff] }
 0x10a   : > { %2026 = vmatmul.f32.gmra.mxu3 %v1685_v38  ;;  %vm1349_vm0 = vcmp.le.s32.totalorder %v963_v61, 14  ;;  %2322 = vmatpush.msrb.mxu2 %v1637_v52 }
 0x10b   : > { %v731_v49 = vadd.f32 %v4105_v14, %v695_v10  ;;  %666 = vmatmul.f32.gmra.mxu0 %v546_v30  ;;  %v4373_v30 = vsel %vm1347_vm14, 1.0, %v5761_v51  ;;  %v517_v56 = vadd.f32 %v3658_v7, %v481_v43  ;;  %vm1254_vm15 = vcmp.ge.s32.totalorder %v970_v59, 1  ;;  %v1430_v7 = vld [vmem:[#allocation2 + $0x7] sm:$0xff] }
 0x10c   : > { %5788 = vst [vmem:[#allocation8_spill] sm:$0xff] %v4373_v30  ;;  %v4396_v24 = vsel %vm1254_vm15, 1.0, %v5761_v51 }
 0x10d   : > { %v763_v54 = vmax.f32 %v731_v49, 0.0 }
 0x10e   : > { %v4360_v2 = vld [vmem:[#allocation2 + $0x6f] sm:$0xff] }
 0x10f   : > { %801 = vst [vmem:[#allocation2 + $0x78] sm:$0xff] %v763_v54  ;;  %1922 = vmatmul.f32.gmra.mxu2 %v763_v54  ;;  %v1538_v4 = vld [vmem:[#allocation2 + $0x69] sm:$0xff] }
 0x110   : > { %v622_v1 = vpop.f32.mrf.mxu0 }
 0x111   : > { %v696_v3 = vmul.f32 %v4098_v12, %v622_v1  ;;  %1806 = vmatmul.f32.gmra.mxu1 %v4360_v2 }
 0x112   : > { %2029 = vmatmul.f32.gmra.mxu3 %v1538_v4 }
 0x113   : > { %v732_v23 = vadd.f32 %v4105_v14, %v696_v3  ;;  %669 = vmatmul.f32.gmra.mxu0 %v547_v62  ;;  %v549_v62 = vmax.f32 %v517_v56, 0.0  ;;  %v840_v56 = vadd.s32 144, %v4100_v13 }
 0x115   : > { %v764_v31 = vmax.f32 %v732_v23, 0.0 }
 0x116   : > { %v1444_v33 = vld [vmem:[#allocation2 + $0x77] sm:$0xff] }
 0x117   : > { %v1539_v38 = vld [vmem:[#allocation2 + $0x71] sm:$0xff]  ;;  %802 = vst [vmem:[#allocation2 + $0x80] sm:$0xff] %v764_v31  ;;  %v4376_v10 = vmul.f32 %v4370_v26, %v1444_v33  ;;  %v1652_v44 = vmul.f32 %v4322_v16, %v1444_v33  ;;  %1925 = vmatmul.f32.gmra.mxu2 %v764_v31  ;;  %v4399_v31 = vsel %vm1349_vm0, 1.0, %v5761_v51 }
 0x118   : > { %v4380_v45 = vmul.f32 %v4373_v30, %v1539_v38  ;;  %v1687_v46 = vmul.f32 %v4325_v17, %v1539_v38  ;;  %v625_v49 = vpop.f32.mrf.mxu0  ;;  %5789 = vst [vmem:[#allocation9_spill] sm:$0xff] %v4399_v31  ;;  %v1462_v38 = vmul.f32 %v4128_v36, %v1430_v7  ;;  %v3604_v36 = vld [vmem:[%s5750_s2 + $0x378] sm:$0xff]  ;;  %v1431_v7 = vld [vmem:[#allocation2 + $0xf] sm:$0xff] }
 0x119   : > { %v697_v50 = vmul.f32 %v4098_v12, %v625_v49  ;;  %1809 = vmatmul.f32.gmra.mxu1 %v1652_v44  ;;  %2644 = vmatpush.msrb.mxu3 %v3604_v36 }
 0x11a   : > { %2032 = vmatmul.f32.gmra.mxu3 %v1687_v46 }
 0x11b   : > { %v733_v54 = vadd.f32 %v4105_v14, %v697_v50  ;;  %672 = vmatmul.f32.gmra.mxu0 %v548_v42 }
 0x11d   : > { %v765_v58 = vmax.f32 %v733_v54, 0.0 }
 0x11e   : > { %v4390_v3 = vld [vmem:[#allocation2 + $0x7f] sm:$0xff] }
 0x11f   : > { %803 = vst [vmem:[#allocation2 + $0x88] sm:$0xff] %v765_v58  ;;  %1928 = vmatmul.f32.gmra.mxu2 %v765_v58  ;;  %v1540_v20 = vld [vmem:[#allocation2 + $0x79] sm:$0xff]  ;;  %v839_v58 = vadd.s32 136, %v4100_v13 }
 0x120   : > { %v628_v1 = vpop.f32.mrf.mxu0 }
 0x121   : > { %v698_v4 = vmul.f32 %v4098_v12, %v628_v1  ;;  %1812 = vmatmul.f32.gmra.mxu1 %v4390_v3  ;;  %v977_v15 = vand.u32 15, %v839_v58  ;;  %v1612_v1 = vld [vmem:[%s5750_s2 + $0xb0] sm:$0xff] }
 0x122   : > { %2035 = vmatmul.f32.gmra.mxu3 %v1540_v20  ;;  %2218 = vmatpush.msrb.mxu1 %v1612_v1 }
 0x123   : > { %v734_v23 = vadd.f32 %v4105_v14, %v698_v4  ;;  %675 = vmatmul.f32.gmra.mxu0 %v549_v62  ;;  %v984_v62 = vand.u32 15, %v840_v56  ;;  %vm1351_vm2 = vcmp.le.s32.totalorder %v977_v15, 14 }
 0x125   : > { %v766_v33 = vmax.f32 %v734_v23, 0.0  ;;  %vm1256_vm1 = vcmp.ge.s32.totalorder %v984_v62, 1  ;;  %v3603_v62 = vld [vmem:[%s5750_s2 + $0x370] sm:$0xff] }
 0x126   : > { %v1446_v42 = vld [vmem:[#allocation2 + $0x87] sm:$0xff]  ;;  %2645 = vmatpush.msrb.mxu3 %v3603_v62 }
 0x127   : > { %v1541_v43 = vld [vmem:[#allocation2 + $0x81] sm:$0xff]  ;;  %804 = vst [vmem:[#allocation2 + $0x90] sm:$0xff] %v766_v33  ;;  %v4403_v44 = vmul.f32 %v4396_v24, %v1446_v42  ;;  %v1654_v46 = vmul.f32 %v4370_v26, %v1446_v42  ;;  %1931 = vmatmul.f32.gmra.mxu2 %v766_v33 }
 0x128   : > { %v4407_v49 = vmul.f32 %v4399_v31, %v1541_v43  ;;  %v1689_v50 = vmul.f32 %v4373_v30, %v1541_v43  ;;  %v631_v53 = vpop.f32.mrf.mxu0  ;;  %v4429_v43 = vsel %vm1256_vm1, 1.0, %v5761_v51 }
 0x129   : > { %v699_v54 = vmul.f32 %v4098_v12, %v631_v53  ;;  %1815 = vmatmul.f32.gmra.mxu1 %v1654_v46  ;;  %5790 = vst [vmem:[#allocation10_spill] sm:$0xff] %v4429_v43  ;;  %v4432_v46 = vsel %vm1351_vm2, 1.0, %v5761_v51 }
 0x12a   : > { %2038 = vmatmul.f32.gmra.mxu3 %v1689_v50  ;;  %5791 = vst [vmem:[#allocation11_spill] sm:$0xff] %v4432_v46 }
 0x12b   : > { %v735_v59 = vadd.f32 %v4105_v14, %v699_v54  ;;  %2112 = vmatmul.f32.vlgmr.msrb.gmra.mxu0 %v1462_v38 }
 0x12d   : > { %v767_v61 = vmax.f32 %v735_v59, 0.0 }
 0x12e   : > { %v4423_v20 = vld [vmem:[#allocation2 + $0x8f] sm:$0xff] }
 0x12f   : > { %805 = vst [vmem:[#allocation2 + $0x98] sm:$0xff] %v767_v61  ;;  %1934 = vmatmul.f32.gmra.mxu2 %v767_v61  ;;  %v1542_v33 = vld [vmem:[#allocation2 + $0x89] sm:$0xff] }
 0x130   : > { %v634_v4 = vpop.f32.mrf.mxu0  ;;  %v1636_v61 = vld [vmem:[%s5750_s2 + $0x170] sm:$0xff] }
 0x131   : > { %v700_v23 = vmul.f32 %v4098_v12, %v634_v4  ;;  %1818 = vmatmul.f32.gmra.mxu1 %v4423_v20  ;;  %v842_v4 = vadd.s32 160, %v4100_v13  ;;  %2323 = vmatpush.msrb.mxu2 %v1636_v61 }
 0x132   : > { %2041 = vmatmul.f32.gmra.mxu3 %v1542_v33  ;;  %v1887_v38 = vpop.f32.mrf.mxu2 }
 0x133   : > { %v736_v42 = vadd.f32 %v4105_v14, %v700_v23  ;;  %2115 = vmatmul.f32.gmra.mxu0 %v1431_v7  ;;  %v841_v7 = vadd.s32 152, %v4100_v13 }
 0x135   : > { %v768_v50 = vmax.f32 %v736_v42, 0.0 }
 0x136   : > { %v1774_v52 = vpop.f32.mrf.mxu1  ;;  %v1448_v36 = vld [vmem:[#allocation2 + $0x97] sm:$0xff] }
 0x137   : > { %v1543_v53 = vld [vmem:[#allocation2 + $0x91] sm:$0xff]  ;;  %806 = vst [vmem:[#allocation2 + $0xa0] sm:$0xff] %v768_v50  ;;  %v4435_v54 = vmul.f32 %v4429_v43, %v1448_v36  ;;  %v1656_v56 = vmul.f32 %v4396_v24, %v1448_v36  ;;  %1937 = vmatmul.f32.gmra.mxu2 %v768_v50  ;;  %v998_v36 = vand.u32 15, %v842_v4  ;;  %v1611_v50 = vld [vmem:[%s5750_s2 + $0xa8] sm:$0xff] }
 0x138   : > { %v4439_v58 = vmul.f32 %v4432_v46, %v1543_v53  ;;  %v1691_v59 = vmul.f32 %v4399_v31, %v1543_v53  ;;  %v637_v15 = vpop.f32.mrf.mxu0  ;;  %v991_v53 = vand.u32 15, %v841_v7  ;;  %2219 = vmatpush.msrb.mxu1 %v1611_v50  ;;  %v843_v31 = vadd.s32 168, %v4100_v13 }
 0x139   : > { %v701_v1 = vmul.f32 %v4098_v12, %v637_v15  ;;  %1821 = vmatmul.f32.gmra.mxu1 %v1656_v56  ;;  %vm1258_vm3 = vcmp.ge.s32.totalorder %v998_v36, 1 }
 0x13a   : > { %2044 = vmatmul.f32.gmra.mxu3 %v1691_v59  ;;  %v1890_v23 = vpop.f32.mrf.mxu2  ;;  %v1888_v59 = vadd.f32 %v1887_v38, %v1774_v52  ;;  %vm1353_vm4 = vcmp.le.s32.totalorder %v991_v53, 14 }
 0x13b   : > { %v737_v33 = vadd.f32 %v4105_v14, %v701_v1  ;;  %2118 = vmatmul.f32.gmra.mxu0 %v4135_v41 }
 0x13d   : > { %v769_v42 = vmax.f32 %v737_v33, 0.0  ;;  %v5792_v33 = vmov 0.0  }
 0x13e   : > { %v1777_v51 = vpop.f32.mrf.mxu1  ;;  %v4456_v62 = vld [vmem:[#allocation2 + $0x9f] sm:$0xff]  ;;  %v4468_v38 = vsel %vm1353_vm4, 1.0, %v5792_v33 }
 0x13f   : > { %807 = vst [vmem:[#allocation2 + $0xa8] sm:$0xff] %v769_v42  ;;  %1940 = vmatmul.f32.gmra.mxu2 %v769_v42  ;;  %v1544_v41 = vld [vmem:[#allocation2 + $0x99] sm:$0xff]  ;;  %v4465_v42 = vsel %vm1258_vm3, 1.0, %v5792_v33  ;;  %v1891_v30 = vadd.f32 %v1890_v23, %v1777_v51 }
 0x140   : > { %v640_v56 = vpop.f32.mrf.mxu0  ;;  %5793 = vst [vmem:[#allocation12_spill] sm:$0xff] %v4465_v42  ;;  %v4500_v23 = vld [vmem:[#allocation2] sm:$0xff] }
 0x141   : > { %v702_v61 = vmul.f32 %v4098_v12, %v640_v56  ;;  %1824 = vmatmul.f32.gmra.mxu1 %v4456_v62  ;;  %5794 = vst [vmem:[#allocation13_spill] sm:$0xff] %v4468_v38 }
 0x142   : > { %2047 = vmatmul.f32.gmra.mxu3 %v1544_v41  ;;  %v2000_v15 = vpop.f32.mrf.mxu3  ;;  %v1893_v1 = vpop.f32.mrf.mxu2  ;;  %v1635_v41 = vld [vmem:[%s5750_s2 + $0x168] sm:$0xff] }
 0x143   : > { %v738_v4 = vadd.f32 %v4105_v14, %v702_v61  ;;  %v4461_v7 = vadd.f32 %v2000_v15, %v1888_v59  ;;  %2121 = vmatmul.f32.gmra.mxu0 %v4153_v0  ;;  %v3602_v15 = vld [vmem:[%s5750_s2 + $0x368] sm:$0xff]  ;;  %2324 = vmatpush.msrb.mxu2 %v1635_v41 }
 0x144   : > { %2646 = vmatpush.msrb.mxu3 %v3602_v15 }
 0x145   : > { %v770_v52 = vmax.f32 %v738_v4, 0.0 }
 0x146   : > { %v1780_v50 = vpop.f32.mrf.mxu1  ;;  %v1450_v56 = vld [vmem:[#allocation2 + $0xa7] sm:$0xff] }
 0x147   : > { %v1545_v36 = vld [vmem:[#allocation2 + $0xa1] sm:$0xff]  ;;  %808 = vst [vmem:[#allocation2 + $0xb0] sm:$0xff] %v770_v52  ;;  %v4471_v53 = vmul.f32 %v4465_v42, %v1450_v56  ;;  %v1658_v61 = vmul.f32 %v4429_v43, %v1450_v56  ;;  %1943 = vmatmul.f32.gmra.mxu2 %v770_v52  ;;  %v844_v56 = vadd.s32 176, %v4100_v13  ;;  %v1005_v52 = vand.u32 15, %v843_v31 }
 0x148   : > { %v4475_v59 = vmul.f32 %v4468_v38, %v1545_v36  ;;  %v1693_v0 = vmul.f32 %v4432_v46, %v1545_v36  ;;  %v643_v4 = vpop.f32.mrf.mxu0  ;;  %v1894_v31 = vadd.f32 %v1893_v1, %v1780_v50 }
 0x149   : > { %v703_v33 = vmul.f32 %v4098_v12, %v643_v4  ;;  %1827 = vmatmul.f32.gmra.mxu1 %v1658_v61  ;;  %v1012_v29 = vand.u32 15, %v844_v56  ;;  %v1610_v61 = vld [vmem:[%s5750_s2 + $0xa0] sm:$0xff]  ;;  %vm1355_vm6 = vcmp.le.s32.totalorder %v1005_v52, 14 }
 0x14a   : > { %2050 = vmatmul.f32.gmra.mxu3 %v1693_v0  ;;  %v1896_v46 = vpop.f32.mrf.mxu2  ;;  %2220 = vmatpush.msrb.mxu1 %v1610_v61 }
 0x14b   : > { %v739_v36 = vadd.f32 %v4105_v14, %v703_v33  ;;  %2124 = vmatmul.f32.gmra.mxu0 %v4174_v19  ;;  %vm1260_vm5 = vcmp.ge.s32.totalorder %v1012_v29, 1 }
 0x14c   : > { %v4503_v33 = vsel %vm1260_vm5, 1.0, %v4500_v23 }
 0x14d   : > { %v771_v17 = vmax.f32 %v739_v36, 0.0  ;;  %v2003_v11 = vpop.f32.mrf.mxu3  ;;  %5795 = vst [vmem:[#allocation14_spill] sm:$0xff] %v4503_v33 }
 0x14e   : > { %v4489_v15 = vadd.f32 %v2003_v11, %v1891_v30  ;;  %v1783_v4 = vpop.f32.mrf.mxu1  ;;  %v4494_v0 = vld [vmem:[#allocation2 + $0xaf] sm:$0xff] }
 0x14f   : > { %809 = vst [vmem:[#allocation2 + $0xb8] sm:$0xff] %v771_v17  ;;  %1946 = vmatmul.f32.gmra.mxu2 %v771_v17  ;;  %v1546_v51 = vld [vmem:[#allocation2 + $0xa9] sm:$0xff]  ;;  %v4506_v17 = vsel %vm1355_vm6, 1.0, %v4500_v23 }
 0x150   : > { %v646_v41 = vpop.f32.mrf.mxu0  ;;  %5796 = vst [vmem:[#allocation15_spill] sm:$0xff] %v4506_v17 }
 0x151   : > { %v704_v19 = vmul.f32 %v4098_v12, %v646_v41  ;;  %1830 = vmatmul.f32.gmra.mxu1 %v4494_v0  ;;  %v1634_v41 = vld [vmem:[%s5750_s2 + $0x160] sm:$0xff] }
 0x152   : > { %2053 = vmatmul.f32.gmra.mxu3 %v1546_v51  ;;  %v1899_v30 = vpop.f32.mrf.mxu2  ;;  %2325 = vmatpush.msrb.mxu2 %v1634_v41 }
 0x153   : > { %v740_v11 = vadd.f32 %v4105_v14, %v704_v19  ;;  %2127 = vmatmul.f32.gmra.mxu0 %v4194_v40  ;;  %v3601_v19 = vld [vmem:[%s5750_s2 + $0x360] sm:$0xff] }
 0x154   : > { %2647 = vmatpush.msrb.mxu3 %v3601_v19 }
 0x155   : > { %v772_v12 = vmax.f32 %v740_v11, 0.0  ;;  %v2006_v56 = vpop.f32.mrf.mxu3  ;;  %v4527_v11 = vld [vmem:[%s5754_s6] ss:$0 sm:$0xff] }
 0x156   : > { %v4508_v36 = vadd.f32 %v2006_v56, %v1894_v31  ;;  %v1786_v29 = vpop.f32.mrf.mxu1  ;;  %v1452_v52 = vld [vmem:[#allocation2 + $0xb7] sm:$0xff]  ;;  %v846_v56 = vadd.s32 192, %v4100_v13 }
 0x157   : > { %v1547_v61 = vld [vmem:[#allocation2 + $0xb1] sm:$0xff]  ;;  %810 = vst [vmem:[#allocation2 + $0xc0] sm:$0xff] %v772_v12  ;;  %v4511_v14 = vmul.f32 %v4503_v33, %v1452_v52  ;;  %v1660_v40 = vmul.f32 %v4465_v42, %v1452_v52  ;;  %1949 = vmatmul.f32.gmra.mxu2 %v772_v12  ;;  %v845_v52 = vadd.s32 184, %v4100_v13 }
 0x158   : > { %v4515_v1 = vmul.f32 %v4506_v17, %v1547_v61  ;;  %v1695_v50 = vmul.f32 %v4468_v38, %v1547_v61  ;;  %v649_v51 = vpop.f32.mrf.mxu0  ;;  %v4535_v61 = vld [vmem:[%s5755_s7] ss:$0 sm:$0xff]  ;;  %v1897_v38 = vadd.f32 %v1896_v46, %v1783_v4 }
 0x159   : > { %v705_v31 = vmul.f32 %v4527_v11, %v649_v51  ;;  %1833 = vmatmul.f32.gmra.mxu1 %v1660_v40  ;;  %v1026_v40 = vand.u32 15, %v846_v56  ;;  %v1019_v6 = vand.u32 15, %v845_v52 }
 0x15a   : > { %5797 = vst [vmem:[#allocation16_spill] sm:$0xff] %v4515_v1  ;;  %2056 = vmatmul.f32.gmra.mxu3 %v1695_v50  ;;  %v1902_v19 = vpop.f32.mrf.mxu2  ;;  %v1609_v50 = vld [vmem:[%s5750_s2 + $0x98] sm:$0xff] }
 0x15b   : > { %v741_v12 = vadd.f32 %v4535_v61, %v705_v31  ;;  %2130 = vmatmul.f32.gmra.mxu0 %v4209_v55  ;;  %2221 = vmatpush.msrb.mxu1 %v1609_v50  ;;  %vm1262_vm7 = vcmp.ge.s32.totalorder %v1026_v40, 1  ;;  %vm1357_vm8 = vcmp.le.s32.totalorder %v1019_v6, 14  ;;  %v1900_v31 = vadd.f32 %v1899_v30, %v1786_v29 }
 0x15c   : > { %v4551_v56 = vsel %vm1262_vm7, 1.0, %v4500_v23 }
 0x15d   : > { %v773_v48 = vmax.f32 %v741_v12, 0.0  ;;  %v2009_v51 = vpop.f32.mrf.mxu3  ;;  %5799 = vst [vmem:[#allocation18_spill] sm:$0xff] %v4551_v56 }
 0x15e   : > { %v4539_v42 = vadd.f32 %v2009_v51, %v1897_v38  ;;  %v1789_v1 = vpop.f32.mrf.mxu1  ;;  %v4544_v43 = vld [vmem:[#allocation2 + $0xbf] sm:$0xff] }
 0x15f   : > { %811 = vst [vmem:[#allocation2 + $0xc8] sm:$0xff] %v773_v48  ;;  %1952 = vmatmul.f32.gmra.mxu2 %v773_v48  ;;  %v1548_v46 = vld [vmem:[#allocation2 + $0xb9] sm:$0xff]  ;;  %v4554_v48 = vsel %vm1357_vm8, 1.0, %v4500_v23 }
 0x160   : > { %5798 = vst [vmem:[#allocation17_spill] sm:$0xff] %v4539_v42  ;;  %v652_v41 = vpop.f32.mrf.mxu0 }
 0x161   : > { %v706_v55 = vmul.f32 %v4527_v11, %v652_v41  ;;  %1836 = vmatmul.f32.gmra.mxu1 %v4544_v43  ;;  %5800 = vst [vmem:[#allocation19_spill] sm:$0xff] %v4554_v48 }
 0x162   : > { %2059 = vmatmul.f32.gmra.mxu3 %v1548_v46  ;;  %v1905_v4 = vpop.f32.mrf.mxu2  ;;  %v3600_v46 = vld [vmem:[%s5750_s2 + $0x358] sm:$0xff] }
 0x163   : > { %v742_v38 = vadd.f32 %v4535_v61, %v706_v55  ;;  %2133 = vmatmul.f32.gmra.mxu0 %v4229_v22  ;;  %v1633_v55 = vld [vmem:[%s5750_s2 + $0x158] sm:$0xff]  ;;  %2648 = vmatpush.msrb.mxu3 %v3600_v46 }
 0x164   : > { %2326 = vmatpush.msrb.mxu2 %v1633_v55 }
 0x165   : > { %v774_v52 = vmax.f32 %v742_v38, 0.0  ;;  %v2012_v12 = vpop.f32.mrf.mxu3 }
 0x166   : > { %v4556_v51 = vadd.f32 %v2012_v12, %v1900_v31  ;;  %v1792_v50 = vpop.f32.mrf.mxu1  ;;  %v1454_v40 = vld [vmem:[#allocation2 + $0xc7] sm:$0xff]  ;;  %v847_v12 = vadd.s32 200, %v4100_v13 }
 0x167   : > { %v1549_v6 = vld [vmem:[#allocation2 + $0xc1] sm:$0xff]  ;;  %812 = vst [vmem:[#allocation2 + $0xd0] sm:$0xff] %v774_v52  ;;  %v4559_v41 = vmul.f32 %v4551_v56, %v1454_v40  ;;  %v1662_v22 = vmul.f32 %v4503_v33, %v1454_v40  ;;  %1955 = vmatmul.f32.gmra.mxu2 %v774_v52  ;;  %v848_v40 = vadd.s32 208, %v4100_v13  ;;  %v1903_v33 = vadd.f32 %v1902_v19, %v1789_v1 }
 0x168   : > { %5801 = vst [vmem:[#allocation20_spill] sm:$0xff] %v4556_v51  ;;  %v4563_v30 = vmul.f32 %v4554_v48, %v1549_v6  ;;  %v1697_v29 = vmul.f32 %v4506_v17, %v1549_v6  ;;  %v655_v38 = vpop.f32.mrf.mxu0  ;;  %v1033_v42 = vand.u32 15, %v847_v12 }
 0x169   : > { %v707_v31 = vmul.f32 %v4527_v11, %v655_v38  ;;  %1839 = vmatmul.f32.gmra.mxu1 %v1662_v22  ;;  %v1040_v38 = vand.u32 15, %v848_v40  ;;  %v1608_v22 = vld [vmem:[%s5750_s2 + $0x90] sm:$0xff] }
 0x16a   : > { %5802 = vst [vmem:[#allocation21_spill] sm:$0xff] %v4563_v30  ;;  %2062 = vmatmul.f32.gmra.mxu3 %v1697_v29  ;;  %v1908_v17 = vpop.f32.mrf.mxu2  ;;  %2222 = vmatpush.msrb.mxu1 %v1608_v22  ;;  %vm1359_vm9 = vcmp.le.s32.totalorder %v1033_v42, 14 }
 0x16b   : > { %v743_v6 = vadd.f32 %v4535_v61, %v707_v31  ;;  %2136 = vmatmul.f32.gmra.mxu0 %v4244_v35  ;;  %vm1264_vm10 = vcmp.ge.s32.totalorder %v1040_v38, 1  ;;  %v4589_v31 = vsel %vm1359_vm9, 1.0, %v4500_v23 }
 0x16c   : > { %5804 = vst [vmem:[#allocation23_spill] sm:$0xff] %v4589_v31  ;;  %v4592_v40 = vsel %vm1264_vm10, 1.0, %v4500_v23 }
 0x16d   : > { %v775_v30 = vmax.f32 %v743_v6, 0.0  ;;  %v2015_v51 = vpop.f32.mrf.mxu3  ;;  %5805 = vst [vmem:[#allocation24_spill] sm:$0xff] %v4592_v40 }
 0x16e   : > { %v4577_v52 = vadd.f32 %v2015_v51, %v1903_v33  ;;  %v1795_v46 = vpop.f32.mrf.mxu1  ;;  %v4582_v55 = vld [vmem:[#allocation2 + $0xcf] sm:$0xff]  ;;  %v1906_v51 = vadd.f32 %v1905_v4, %v1792_v50 }
 0x16f   : > { %813 = vst [vmem:[#allocation2 + $0xd8] sm:$0xff] %v775_v30  ;;  %1958 = vmatmul.f32.gmra.mxu2 %v775_v30  ;;  %v1550_v1 = vld [vmem:[#allocation2 + $0xc9] sm:$0xff] }
 0x170   : > { %5803 = vst [vmem:[#allocation22_spill] sm:$0xff] %v4577_v52  ;;  %v658_v29 = vpop.f32.mrf.mxu0  ;;  %v1632_v50 = vld [vmem:[%s5750_s2 + $0x150] sm:$0xff] }
 0x171   : > { %v708_v35 = vmul.f32 %v4527_v11, %v658_v29  ;;  %1842 = vmatmul.f32.gmra.mxu1 %v4582_v55  ;;  %2327 = vmatpush.msrb.mxu2 %v1632_v50 }
 0x172   : > { %2065 = vmatmul.f32.gmra.mxu3 %v1550_v1  ;;  %v1911_v19 = vpop.f32.mrf.mxu2 }
 0x173   : > { %v744_v33 = vadd.f32 %v4535_v61, %v708_v35  ;;  %2139 = vmatmul.f32.gmra.mxu0 %v4264_v63  ;;  %v3599_v35 = vld [vmem:[%s5750_s2 + $0x350] sm:$0xff] }
 0x174   : > { %2649 = vmatpush.msrb.mxu3 %v3599_v35 }
 0x175   : > { %v776_v12 = vmax.f32 %v744_v33, 0.0  ;;  %v2018_v30 = vpop.f32.mrf.mxu3 }
 0x176   : > { %v4594_v6 = vadd.f32 %v2018_v30, %v1906_v51  ;;  %v1798_v22 = vpop.f32.mrf.mxu1  ;;  %v1456_v42 = vld [vmem:[#allocation2 + $0xd7] sm:$0xff]  ;;  %v850_v30 = vadd.s32 224, %v4100_v13 }
 0x177   : > { %v1551_v29 = vld [vmem:[#allocation2 + $0xd1] sm:$0xff]  ;;  %814 = vst [vmem:[#allocation2 + $0xe0] sm:$0xff] %v776_v12  ;;  %v1664_v38 = vmul.f32 %v4551_v56, %v1456_v42  ;;  %1961 = vmatmul.f32.gmra.mxu2 %v776_v12  ;;  %v4608_v33 = vmul.f32 %v4592_v40, %v1456_v42  ;;  %v1909_v12 = vadd.f32 %v1908_v17, %v1795_v46  ;;  %v1631_v42 = vld [vmem:[%s5750_s2 + $0x148] sm:$0xff] }
 0x178   : > { %5806 = vst [vmem:[#allocation25_spill] sm:$0xff] %v4594_v6  ;;  %v4598_v63 = vmul.f32 %v4589_v31, %v1551_v29  ;;  %v1699_v4 = vmul.f32 %v4554_v48, %v1551_v29  ;;  %v661_v1 = vpop.f32.mrf.mxu0  ;;  %v849_v29 = vadd.s32 216, %v4100_v13  ;;  %2328 = vmatpush.msrb.mxu2 %v1631_v42  ;;  %v1054_v50 = vand.u32 15, %v850_v30 }
 0x179   : > { %v709_v51 = vmul.f32 %v4527_v11, %v661_v1  ;;  %1845 = vmatmul.f32.gmra.mxu1 %v1664_v38 }
 0x17a   : > { %5807 = vst [vmem:[#allocation26_spill] sm:$0xff] %v4598_v63  ;;  %2068 = vmatmul.f32.gmra.mxu3 %v1699_v4  ;;  %v4615_v56 = vpop.f32.mrf.mxu2  ;;  %v1047_v63 = vand.u32 15, %v849_v29  ;;  %vm1266_vm11 = vcmp.ge.s32.totalorder %v1054_v50, 1 }
 0x17b   : > { %v745_v48 = vadd.f32 %v4535_v61, %v709_v51  ;;  %2142 = vmatmul.f32.gmra.mxu0 %v4279_v25  ;;  %v1630_v51 = vld [vmem:[%s5750_s2 + $0x140] sm:$0xff]  ;;  %v1607_v25 = vld [vmem:[%s5750_s2 + $0x88] sm:$0xff] }
 0x17c   : > { %2329 = vmatpush.msrb.mxu2 %v1630_v51  ;;  %2223 = vmatpush.msrb.mxu1 %v1607_v25  ;;  %vm1361_vm12 = vcmp.le.s32.totalorder %v1047_v63, 14  ;;  %v1627_v51 = vld [vmem:[%s5750_s2 + $0x128] sm:$0xff]  ;;  %v4646_v63 = vsel %vm1266_vm11, 1.0, %v4500_v23 }
 0x17d   : > { %v777_v35 = vmax.f32 %v745_v48, 0.0  ;;  %v2021_v1 = vpop.f32.mrf.mxu3  ;;  %v1629_v48 = vld [vmem:[%s5750_s2 + $0x138] sm:$0xff]  ;;  %v4649_v50 = vsel %vm1361_vm12, 1.0, %v4500_v23 }
 0x17e   : > { %v4620_v38 = vadd.f32 %v2021_v1, %v1909_v12  ;;  %v1801_v4 = vpop.f32.mrf.mxu1  ;;  %v4628_v46 = vld [vmem:[#allocation2 + $0xdf] sm:$0xff]  ;;  %2330 = vmatpush.msrb.mxu2 %v1629_v48  ;;  %v1628_v12 = vld [vmem:[%s5750_s2 + $0x130] sm:$0xff]  ;;  %v1912_v1 = vadd.f32 %v1911_v19, %v1798_v22  ;;  %5809 = vst [vmem:[#allocation28_spill] sm:$0xff] %v4649_v50 }
 0x17f   : > { %815 = vst [vmem:[#allocation2 + $0xe8] sm:$0xff] %v777_v35  ;;  %1964 = vmatmul.f32.gmra.mxu2 %v777_v35  ;;  %v1552_v29 = vld [vmem:[#allocation2 + $0xd9] sm:$0xff] }
 0x180   : > { %5808 = vst [vmem:[#allocation27_spill] sm:$0xff] %v4620_v38  ;;  %v664_v17 = vpop.f32.mrf.mxu0  ;;  %2331 = vmatpush.msrb.mxu2 %v1628_v12  ;;  %v1626_v19 = vld [vmem:[%s5750_s2 + $0x120] sm:$0xff] }
 0x181   : > { %v710_v30 = vmul.f32 %v4527_v11, %v664_v17  ;;  %1848 = vmatmul.f32.gmra.mxu1 %v4628_v46 }
 0x182   : > { %2071 = vmatmul.f32.gmra.mxu3 %v1552_v29  ;;  %v4640_v35 = vpop.f32.mrf.mxu2  ;;  %2332 = vmatpush.msrb.mxu2 %v1627_v51 }
 0x183   : > { %v746_v42 = vadd.f32 %v4535_v61, %v710_v30  ;;  %2145 = vmatmul.f32.gmra.mxu0 %v4308_v60 }
 0x184   : > { %2333 = vmatpush.msrb.mxu2 %v1626_v19  ;;  %v852_v19 = vadd.s32 240, %v4100_v13 }
 0x185   : > { %v778_v25 = vmax.f32 %v746_v42, 0.0  ;;  %v2024_v17 = vpop.f32.mrf.mxu3  ;;  %v3598_v42 = vld [vmem:[%s5750_s2 + $0x348] sm:$0xff] }
 0x186   : > { %v4651_v48 = vadd.f32 %v2024_v17, %v1912_v1  ;;  %v1804_v60 = vpop.f32.mrf.mxu1  ;;  %v1458_v30 = vld [vmem:[#allocation2 + $0xe7] sm:$0xff]  ;;  %2650 = vmatpush.msrb.mxu3 %v3598_v42  ;;  %v1625_v1 = vld [vmem:[%s5750_s2 + $0x118] sm:$0xff]  ;;  %v1068_v6 = vand.u32 15, %v852_v19 }
 0x187   : > { %v1553_v29 = vld [vmem:[#allocation2 + $0xe1] sm:$0xff]  ;;  %816 = vst [vmem:[#allocation2 + $0xf0] sm:$0xff] %v778_v25  ;;  %v1666_v22 = vmul.f32 %v4592_v40, %v1458_v30  ;;  %1967 = vmatmul.f32.gmra.mxu2 %v778_v25  ;;  %v4665_v17 = vmul.f32 %v4646_v63, %v1458_v30  ;;  %v851_v25 = vadd.s32 232, %v4100_v13  ;;  %v1624_v30 = vld [vmem:[%s5750_s2 + $0x110] sm:$0xff] }
 0x188   : > { %5810 = vst [vmem:[#allocation29_spill] sm:$0xff] %v4651_v48  ;;  %v1701_v12 = vmul.f32 %v4589_v31, %v1553_v29  ;;  %v667_v51 = vpop.f32.mrf.mxu0  ;;  %v4668_v48 = vmul.f32 %v4649_v50, %v1553_v29  ;;  %2334 = vmatpush.msrb.mxu2 %v1625_v1  ;;  %v1606_v42 = vld [vmem:[%s5750_s2 + $0x80] sm:$0xff]  ;;  %vm1268_vm13 = vcmp.ge.s32.totalorder %v1068_v6, 1 }
 0x189   : > { %v711_v31 = vmul.f32 %v4527_v11, %v667_v51  ;;  %1851 = vmatmul.f32.gmra.mxu1 %v1666_v22  ;;  %v1915_v22 = vadd.f32 %v4615_v56, %v1801_v4  ;;  %v1061_v52 = vand.u32 15, %v851_v25  ;;  %v3597_v4 = vld [vmem:[%s5750_s2 + $0x340] sm:$0xff]  ;;  %v3596_v25 = vld [vmem:[%s5750_s2 + $0x338] sm:$0xff] }
 0x18a   : > { %5811 = vst [vmem:[#allocation30_spill] sm:$0xff] %v4668_v48  ;;  %2074 = vmatmul.f32.gmra.mxu3 %v1701_v12  ;;  %v4681_v51 = vpop.f32.mrf.mxu2  ;;  %2224 = vmatpush.msrb.mxu1 %v1606_v42  ;;  %v1623_v12 = vld [vmem:[%s5750_s2 + $0x108] sm:$0xff] }
 0x18b   : > { %v747_v29 = vadd.f32 %v4535_v61, %v711_v31  ;;  %2148 = vmatmul.f32.gmra.mxu0 %v4332_v32  ;;  %2335 = vmatpush.msrb.mxu2 %v1624_v30  ;;  %v1622_v32 = vld [vmem:[%s5750_s2 + $0x100] sm:$0xff]  ;;  %vm1363_vm14 = vcmp.le.s32.totalorder %v1061_v52, 14  ;;  %v4712_v52 = vsel %vm1268_vm13, 1.0, %v4500_v23 }
 0x18c   : > { %2651 = vmatpush.msrb.mxu3 %v3597_v4 }
 0x18d   : > { %v779_v1 = vmax.f32 %v747_v29, 0.0  ;;  %v2027_v40 = vpop.f32.mrf.mxu3  ;;  %2336 = vmatpush.msrb.mxu2 %v1623_v12  ;;  %v1918_v29 = vadd.f32 %v4640_v35, %v1804_v60  ;;  %v3594_v35 = vld [vmem:[%s5750_s2 + $0x328] sm:$0xff] }
 0x18e   : > { %v4687_v48 = vadd.f32 %v2027_v40, %v1915_v22  ;;  %v1807_v38 = vpop.f32.mrf.mxu1  ;;  %v4692_v56 = vld [vmem:[#allocation2 + $0xef] sm:$0xff]  ;;  %2652 = vmatpush.msrb.mxu3 %v3596_v25  ;;  %v3620_v25 = vld [vmem:[%s5750_s2 + $0x3f8] sm:$0xff] }
 0x18f   : > { %817 = vst [vmem:[#allocation2 + $0xf8] sm:$0xff] %v779_v1  ;;  %1970 = vmatmul.f32.gmra.mxu2 %v779_v1  ;;  %v4699_v19 = vld [vmem:[#allocation2 + $0xe9] sm:$0xff]  ;;  %v4715_v1 = vsel %vm1363_vm14, 1.0, %v4500_v23  ;;  %2757 = vmatpush.msra.mxu0 %v3620_v25 }
 0x190   : > { %5812 = vst [vmem:[#allocation31_spill] sm:$0xff] %v4687_v48  ;;  %v670_v31 = vpop.f32.mrf.mxu0  ;;  %2337 = vmatpush.msrb.mxu2 %v1622_v32  ;;  %v3595_v22 = vld [vmem:[%s5750_s2 + $0x330] sm:$0xff] }
 0x191   : > { %v712_v40 = vmul.f32 %v4527_v11, %v670_v31  ;;  %1854 = vmatmul.f32.gmra.mxu1 %v4692_v56  ;;  %5813 = vst [vmem:[#allocation32_spill] sm:$0xff] %v4715_v1  ;;  %2653 = vmatpush.msrb.mxu3 %v3595_v22 }
 0x192   : > { %2077 = vmatmul.f32.gmra.mxu3 %v4699_v19  ;;  %v1923_v30 = vpop.f32.mrf.mxu2 }
 0x193   : > { %v748_v42 = vadd.f32 %v4535_v61, %v712_v40  ;;  %2151 = vmatmul.f32.gmra.mxu0 %v4360_v2  ;;  %2654 = vmatpush.msrb.mxu3 %v3594_v35  ;;  %v3592_v35 = vld [vmem:[%s5750_s2 + $0x318] sm:$0xff] }
 0x195   : > { %v780_v12 = vmax.f32 %v748_v42, 0.0  ;;  %v2030_v6 = vpop.f32.mrf.mxu3 }
 0x196   : > { %v4717_v32 = vadd.f32 %v2030_v6, %v1918_v29  ;;  %v1810_v2 = vpop.f32.mrf.mxu1  ;;  %v1460_v31 = vld [vmem:[#allocation2 + $0xf7] sm:$0xff]  ;;  %v3593_v29 = vld [vmem:[%s5750_s2 + $0x320] sm:$0xff] }
 0x197   : > { %v1555_v4 = vld [vmem:[#allocation2 + $0xf1] sm:$0xff]  ;;  %818 = vst [vmem:[#allocation2 + $0x100] sm:$0xff] %v780_v12  ;;  %v1668_v60 = vmul.f32 %v4646_v63, %v1460_v31  ;;  %1973 = vmatmul.f32.gmra.mxu2 %v780_v12  ;;  %v4731_v22 = vmul.f32 %v4712_v52, %v1460_v31  ;;  %2655 = vmatpush.msrb.mxu3 %v3593_v29 }
 0x198   : > { %5814 = vst [vmem:[#allocation33_spill] sm:$0xff] %v4717_v32  ;;  %v1703_v40 = vmul.f32 %v4649_v50, %v1555_v4  ;;  %v673_v42 = vpop.f32.mrf.mxu0  ;;  %v4734_v6 = vmul.f32 %v4715_v1, %v1555_v4  ;;  %v3636_v12 = vld [vmem:[%s5750_s2 + $0x478] sm:$0xff]  ;;  %v1921_v4 = vadd.f32 %v4681_v51, %v1807_v38  ;;  %v3589_v38 = vld [vmem:[%s5750_s2 + $0x300] sm:$0xff] }
 0x199   : > { %v713_v50 = vmul.f32 %v4527_v11, %v673_v42  ;;  %1857 = vmatmul.f32.gmra.mxu1 %v1668_v60  ;;  %2656 = vmatpush.msrb.mxu3 %v3592_v35  ;;  %v3591_v60 = vld [vmem:[%s5750_s2 + $0x310] sm:$0xff] }
 0x19a   : > { %2080 = vmatmul.f32.gmra.mxu3 %v1703_v40  ;;  %v1926_v31 = vpop.f32.mrf.mxu2  ;;  %2870 = vmatpush.msra.mxu1 %v3636_v12 }
 0x19b   : > { %v749_v25 = vadd.f32 %v4535_v61, %v713_v50  ;;  %2154 = vmatmul.f32.gmra.mxu0 %v4376_v10  ;;  %2657 = vmatpush.msrb.mxu3 %v3591_v60  ;;  %v3590_v50 = vld [vmem:[%s5750_s2 + $0x308] sm:$0xff]  ;;  %v1924_v60 = vadd.f32 %v1923_v30, %v1810_v2  ;;  %v3635_v2 = vld [vmem:[%s5750_s2 + $0x470] sm:$0xff] }
 0x19c   : > { %2871 = vmatpush.msra.mxu1 %v3635_v2  ;;  %v1527_v2 = vld [vmem:[#allocation2 + $0x11] sm:$0xff] }
 0x19d   : > { %v781_v40 = vmax.f32 %v749_v25, 0.0  ;;  %v2033_v42 = vpop.f32.mrf.mxu3  ;;  %2658 = vmatpush.msrb.mxu3 %v3590_v50 }
 0x19e   : > { %v4749_v29 = vadd.f32 %v2033_v42, %v1921_v4  ;;  %v1813_v32 = vpop.f32.mrf.mxu1  ;;  %v4754_v12 = vld [vmem:[#allocation2 + $0xff] sm:$0xff] }
 0x19f   : > { %819 = vst [vmem:[#allocation2 + $0x108] sm:$0xff] %v781_v40  ;;  %1976 = vmatmul.f32.gmra.mxu2 %v781_v40  ;;  %v4761_v35 = vld [vmem:[#allocation2 + $0xf9] sm:$0xff]  ;;  %2659 = vmatpush.msrb.mxu3 %v3589_v38 }
 0x1a0   : > { %5815 = vst [vmem:[#allocation34_spill] sm:$0xff] %v4749_v29  ;;  %v676_v10 = vpop.f32.mrf.mxu0 }
 0x1a1   : > { %v714_v51 = vmul.f32 %v4527_v11, %v676_v10  ;;  %1860 = vmatmul.f32.gmra.mxu1 %v4754_v12  ;;  %v3619_v10 = vld [vmem:[%s5750_s2 + $0x3f0] sm:$0xff] }
 0x1a2   : > { %2083 = vmatmul.f32.gmra.mxu3 %v4761_v35  ;;  %v1929_v4 = vpop.f32.mrf.mxu2  ;;  %2758 = vmatpush.msra.mxu0 %v3619_v10 }
 0x1a3   : > { %v750_v25 = vadd.f32 %v4535_v61, %v714_v51  ;;  %2157 = vmatmul.f32.gmra.mxu0 %v4390_v3  ;;  %v1927_v51 = vadd.f32 %v1926_v31, %v1813_v32 }
 0x1a5   : > { %v782_v40 = vmax.f32 %v750_v25, 0.0  ;;  %v2036_v42 = vpop.f32.mrf.mxu3 }
 0x1a6   : > { %v4766_v50 = vadd.f32 %v2036_v42, %v1924_v60  ;;  %v1816_v29 = vpop.f32.mrf.mxu1  ;;  %v1638_v48 = vld [vmem:[#allocation2 + $0x107] sm:$0xff] }
 0x1a7   : > { %v4768_v11 = vld [vmem:[#allocation2 + $0x101] sm:$0xff]  ;;  %820 = vst [vmem:[#allocation2 + $0x110] sm:$0xff] %v782_v40  ;;  %v1670_v61 = vmul.f32 %v4712_v52, %v1638_v48  ;;  %1979 = vmatmul.f32.gmra.mxu2 %v782_v40  ;;  %v853_v48 = vadd.s32 248, %v4100_v13  ;;  %v1526_v60 = vld [vmem:[#allocation2 + $0x9] sm:$0xff]  ;;  %v1930_v32 = vadd.f32 %v1929_v4, %v1816_v29 }
 0x1a8   : > { %5816 = vst [vmem:[#allocation35_spill] sm:$0xff] %v4766_v50  ;;  %v1705_v3 = vmul.f32 %v4715_v1, %v4768_v11  ;;  %v4776_v30 = vpop.f32.mrf.mxu0  ;;  %v3634_v4 = vld [vmem:[%s5750_s2 + $0x468] sm:$0xff] }
 0x1a9   : > { %1863 = vmatmul.f32.gmra.mxu1 %v1670_v61  ;;  %v1075_v61 = vand.u32 15, %v853_v48  ;;  %v3618_v48 = vld [vmem:[%s5750_s2 + $0x3e8] sm:$0xff] }
 0x1aa   : > { %2086 = vmatmul.f32.gmra.mxu3 %v1705_v3  ;;  %v1932_v38 = vpop.f32.mrf.mxu2  ;;  %2759 = vmatpush.msra.mxu0 %v3618_v48 }
 0x1ab   : > { %2160 = vmatmul.f32.gmra.mxu0 %v4403_v44  ;;  %vm1365_vm15 = vcmp.le.s32.totalorder %v1075_v61, 14  ;;  %2872 = vmatpush.msra.mxu1 %v3634_v4 }
 0x1ad   : > { %v2039_v25 = vpop.f32.mrf.mxu3 }
 0x1ae   : > { %v4783_v42 = vadd.f32 %v2039_v25, %v1927_v51  ;;  %v1819_v10 = vpop.f32.mrf.mxu1  ;;  %v1639_v40 = vld [vmem:[#allocation2 + $0x10f] sm:$0xff]  ;;  %v1559_v25 = vmul.f32 %v4167_v9, %v1527_v2 }
 0x1af   : > { %2338 = vmatmul.f32.vlgmr.msrb.gmra.mxu2 %v1526_v60  ;;  %v1674_v3 = vld [vmem:[#allocation2 + $0x109] sm:$0xff]  ;;  %v1675_v31 = vld [vmem:[#allocation2 + $0x111] sm:$0xff]  ;;  %v4795_v60 = vsel %vm1365_vm15, 1.0, %v4500_v23  ;;  %v1933_v61 = vadd.f32 %v1932_v38, %v1819_v10  ;;  %v3617_v10 = vld [vmem:[%s5750_s2 + $0x3e0] sm:$0xff] }
 0x1b0   : > { %v4785_v1 = vpop.f32.mrf.mxu0  ;;  %5817 = vst [vmem:[#allocation36_spill] sm:$0xff] %v4795_v60  ;;  %v1707_v29 = vmul.f32 %v4795_v60, %v1675_v31  ;;  %v3662_v31 = vld [vmem:[#allocation2 + $0x19] sm:$0xff]  ;;  %2760 = vmatpush.msra.mxu0 %v3617_v10  ;;  %v3664_v10 = vld [vmem:[#allocation2 + $0x29] sm:$0xff] }
 0x1b1   : > { %1866 = vmatmul.f32.gmra.mxu1 %v1639_v40 }
 0x1b2   : > { %2089 = vmatmul.f32.gmra.mxu3 %v1674_v3  ;;  %v1935_v44 = vpop.f32.mrf.mxu2 }
 0x1b3   : > { %2163 = vmatmul.f32.gmra.mxu0 %v4423_v20 }
 0x1b5   : > { %v2042_v13 = vpop.f32.mrf.mxu3 }
 0x1b6   : > { %v4788_v50 = vadd.f32 %v2042_v13, %v1930_v32  ;;  %v1822_v51 = vpop.f32.mrf.mxu1 }
 0x1b7   : > { %2341 = vmatmul.f32.gmra.mxu2 %v1559_v25  ;;  %v1936_v48 = vadd.f32 %v1935_v44, %v1822_v51 }
 0x1b8   : > { %v4797_v20 = vpop.f32.mrf.mxu0 }
 0x1b9   : > { %2225 = vmatmul.f32.vlgmr.msrb.gmra.mxu1 %v4500_v23 }
 0x1ba   : > { %2092 = vmatmul.f32.gmra.mxu3 %v1707_v29  ;;  %v1938_v40 = vpop.f32.mrf.mxu2 }
 0x1bb   : > { %2166 = vmatmul.f32.gmra.mxu0 %v4435_v54 }
 0x1bd   : > { %v2045_v3 = vpop.f32.mrf.mxu3 }
 0x1be   : > { %v4805_v2 = vadd.f32 %v2045_v3, %v1933_v61  ;;  %v1825_v32 = vpop.f32.mrf.mxu1  ;;  %v2437_v3 = vld [vmem:[#allocation2 + $0x37] sm:$0xff] }
 0x1bf   : > { %2344 = vmatmul.f32.gmra.mxu2 %v3662_v31  ;;  %v1939_v51 = vadd.f32 %v1938_v40, %v1825_v32 }
 0x1c0   : > { %5818 = vst [vmem:[#allocation37_spill] sm:$0xff] %v4805_v2  ;;  %v4807_v13 = vpop.f32.mrf.mxu0 }
 0x1c1   : > { %2228 = vmatmul.f32.gmra.mxu1 %v4500_v23  ;;  %v3663_v23 = vld [vmem:[#allocation2 + $0x18] sm:$0xff] }
 0x1c2   : > { %2660 = vmatmul.f32.vlgmr.msrb.gmra.mxu3 %v4171_v18  ;;  %v1941_v25 = vpop.f32.mrf.mxu2  ;;  %v2436_v18 = vld [vmem:[#allocation2 + $0x2f] sm:$0xff] }
 0x1c3   : > { %2169 = vmatmul.f32.gmra.mxu0 %v4456_v62  ;;  %v3633_v62 = vld [vmem:[%s5750_s2 + $0x460] sm:$0xff] }
 0x1c4   : > { %2873 = vmatpush.msra.mxu1 %v3633_v62 }
 0x1c5   : > { %v2048_v54 = vpop.f32.mrf.mxu3 }
 0x1c6   : > { %v4812_v29 = vadd.f32 %v2048_v54, %v1936_v48  ;;  %v1828_v38 = vpop.f32.mrf.mxu1 }
 0x1c7   : > { %2347 = vmatmul.f32.gmra.mxu2 %v4178_v21  ;;  %v2469_v21 = vmul.f32 %v4131_v37, %v2437_v3  ;;  %v2438_v3 = vld [vmem:[#allocation2 + $0x3f] sm:$0xff] }
 0x1c8   : > { %5819 = vst [vmem:[#allocation38_spill] sm:$0xff] %v4812_v29  ;;  %v4817_v4 = vpop.f32.mrf.mxu0 }
 0x1c9   : > { %2231 = vmatmul.f32.gmra.mxu1 %v3663_v23  ;;  %v3665_v23 = vld [vmem:[#allocation2 + $0x20] sm:$0xff] }
 0x1ca   : > { %2663 = vmatmul.f32.gmra.mxu3 %v2436_v18  ;;  %v1944_v44 = vpop.f32.mrf.mxu2  ;;  %v1942_v18 = vadd.f32 %v1941_v25, %v1828_v38 }
 0x1cb   : > { %2172 = vmatmul.f32.gmra.mxu0 %v4471_v53 }
 0x1cd   : > { %v2051_v61 = vpop.f32.mrf.mxu3 }
 0x1ce   : > { %v4824_v31 = vadd.f32 %v2051_v61, %v1939_v51  ;;  %v1831_v48 = vpop.f32.mrf.mxu1  ;;  %v3616_v51 = vld [vmem:[%s5750_s2 + $0x3d8] sm:$0xff]  ;;  %v3666_v61 = vld [vmem:[#allocation2 + $0x28] sm:$0xff] }
 0x1cf   : > { %2350 = vmatmul.f32.gmra.mxu2 %v3664_v10  ;;  %2761 = vmatpush.msra.mxu0 %v3616_v51  ;;  %v1945_v38 = vadd.f32 %v1944_v44, %v1831_v48  ;;  %v2439_v10 = vld [vmem:[#allocation2 + $0x47] sm:$0xff]  ;;  %v3668_v51 = vld [vmem:[#allocation2 + $0x30] sm:$0xff] }
 0x1d0   : > { %5820 = vst [vmem:[#allocation39_spill] sm:$0xff] %v4824_v31  ;;  %v4826_v54 = vpop.f32.mrf.mxu0 }
 0x1d1   : > { %2234 = vmatmul.f32.gmra.mxu1 %v3665_v23 }
 0x1d2   : > { %2666 = vmatmul.f32.gmra.mxu3 %v2469_v21  ;;  %v1947_v53 = vpop.f32.mrf.mxu2 }
 0x1d3   : > { %2175 = vmatmul.f32.gmra.mxu0 %v4494_v0  ;;  %v3632_v0 = vld [vmem:[%s5750_s2 + $0x458] sm:$0xff] }
 0x1d4   : > { %2874 = vmatpush.msra.mxu1 %v3632_v0 }
 0x1d5   : > { %v2054_v62 = vpop.f32.mrf.mxu3 }
 0x1d6   : > { %v4830_v40 = vadd.f32 %v2054_v62, %v1942_v18  ;;  %v1834_v32 = vpop.f32.mrf.mxu1  ;;  %v2471_v18 = vmul.f32 %v4161_v5, %v2439_v10  ;;  %v3667_v62 = vld [vmem:[#allocation2 + $0x39] sm:$0xff] }
 0x1d7   : > { %2353 = vmatmul.f32.gmra.mxu2 %v4213_v57  ;;  %v3669_v5 = vld [vmem:[#allocation2 + $0x38] sm:$0xff] }
 0x1d8   : > { %5821 = vst [vmem:[#allocation40_spill] sm:$0xff] %v4830_v40  ;;  %v4836_v37 = vpop.f32.mrf.mxu0 }
 0x1d9   : > { %2237 = vmatmul.f32.gmra.mxu1 %v3666_v61 }
 0x1da   : > { %2669 = vmatmul.f32.gmra.mxu3 %v2438_v3  ;;  %v1950_v25 = vpop.f32.mrf.mxu2  ;;  %v1948_v3 = vadd.f32 %v1947_v53, %v1834_v32 }
 0x1db   : > { %2178 = vmatmul.f32.gmra.mxu0 %v4511_v14 }
 0x1dd   : > { %v2057_v21 = vpop.f32.mrf.mxu3 }
 0x1de   : > { %v4842_v23 = vadd.f32 %v2057_v21, %v1945_v38  ;;  %v1837_v57 = vpop.f32.mrf.mxu1  ;;  %v3615_v38 = vld [vmem:[%s5750_s2 + $0x3d0] sm:$0xff] }
 0x1df   : > { %2356 = vmatmul.f32.gmra.mxu2 %v3667_v62  ;;  %2762 = vmatpush.msra.mxu0 %v3615_v38  ;;  %v2440_v21 = vld [vmem:[#allocation2 + $0x4f] sm:$0xff]  ;;  %v1951_v32 = vadd.f32 %v1950_v25, %v1837_v57  ;;  %v2441_v62 = vld [vmem:[#allocation2 + $0x57] sm:$0xff]  ;;  %v3671_v38 = vld [vmem:[#allocation2 + $0x40] sm:$0xff] }
 0x1e0   : > { %5822 = vst [vmem:[#allocation41_spill] sm:$0xff] %v4842_v23  ;;  %v4845_v61 = vpop.f32.mrf.mxu0 }
 0x1e1   : > { %2240 = vmatmul.f32.gmra.mxu1 %v3668_v51 }
 0x1e2   : > { %2672 = vmatmul.f32.gmra.mxu3 %v2471_v18  ;;  %v1953_v14 = vpop.f32.mrf.mxu2 }
 0x1e3   : > { %2181 = vmatmul.f32.gmra.mxu0 %v4544_v43  ;;  %v3631_v43 = vld [vmem:[%s5750_s2 + $0x450] sm:$0xff] }
 0x1e4   : > { %2875 = vmatpush.msra.mxu1 %v3631_v43  ;;  %v3614_v43 = vld [vmem:[%s5750_s2 + $0x3c8] sm:$0xff] }
 0x1e5   : > { %v2060_v0 = vpop.f32.mrf.mxu3  ;;  %2763 = vmatpush.msra.mxu0 %v3614_v43  ;;  %v3673_v43 = vld [vmem:[#allocation2 + $0x59] sm:$0xff] }
 0x1e6   : > { %v4848_v44 = vadd.f32 %v2060_v0, %v1948_v3  ;;  %v1840_v48 = vpop.f32.mrf.mxu1  ;;  %v2473_v3 = vmul.f32 %v4202_v47, %v2441_v62  ;;  %v3670_v0 = vld [vmem:[#allocation2 + $0x49] sm:$0xff] }
 0x1e7   : > { %2359 = vmatmul.f32.gmra.mxu2 %v4248_v39  ;;  %v3672_v47 = vld [vmem:[#allocation2 + $0x48] sm:$0xff] }
 0x1e8   : > { %5823 = vst [vmem:[#allocation42_spill] sm:$0xff] %v4848_v44  ;;  %v4858_v10 = vpop.f32.mrf.mxu0 }
 0x1e9   : > { %2243 = vmatmul.f32.gmra.mxu1 %v3669_v5  ;;  %v1954_v5 = vadd.f32 %v1953_v14, %v1840_v48  ;;  %v3613_v14 = vld [vmem:[%s5750_s2 + $0x3c0] sm:$0xff] }
 0x1ea   : > { %2675 = vmatmul.f32.gmra.mxu3 %v2440_v21  ;;  %v1956_v53 = vpop.f32.mrf.mxu2  ;;  %2764 = vmatpush.msra.mxu0 %v3613_v14  ;;  %v3608_v14 = vld [vmem:[%s5750_s2 + $0x398] sm:$0xff] }
 0x1eb   : > { %2184 = vmatmul.f32.gmra.mxu0 %v4559_v41 }
 0x1ed   : > { %v2063_v18 = vpop.f32.mrf.mxu3 }
 0x1ee   : > { %v4860_v51 = vadd.f32 %v2063_v18, %v1951_v32  ;;  %v1843_v39 = vpop.f32.mrf.mxu1  ;;  %v2442_v18 = vld [vmem:[#allocation2 + $0x5f] sm:$0xff] }
 0x1ef   : > { %2362 = vmatmul.f32.gmra.mxu2 %v3670_v0  ;;  %v1957_v62 = vadd.f32 %v1956_v53, %v1843_v39  ;;  %v2443_v0 = vld [vmem:[#allocation2 + $0x67] sm:$0xff] }
 0x1f0   : > { %5824 = vst [vmem:[#allocation43_spill] sm:$0xff] %v4860_v51  ;;  %v4869_v32 = vpop.f32.mrf.mxu0  ;;  %v3610_v53 = vld [vmem:[%s5750_s2 + $0x3a8] sm:$0xff] }
 0x1f1   : > { %2246 = vmatmul.f32.gmra.mxu1 %v3671_v38 }
 0x1f2   : > { %2678 = vmatmul.f32.gmra.mxu3 %v2473_v3  ;;  %v1959_v41 = vpop.f32.mrf.mxu2 }
 0x1f3   : > { %2187 = vmatmul.f32.gmra.mxu0 %v4582_v55  ;;  %v3630_v55 = vld [vmem:[%s5750_s2 + $0x448] sm:$0xff] }
 0x1f4   : > { %2876 = vmatpush.msra.mxu1 %v3630_v55 }
 0x1f5   : > { %v2066_v21 = vpop.f32.mrf.mxu3 }
 0x1f6   : > { %v4864_v25 = vadd.f32 %v2066_v21, %v1954_v5  ;;  %v1846_v57 = vpop.f32.mrf.mxu1  ;;  %v3611_v21 = vld [vmem:[%s5750_s2 + $0x3b0] sm:$0xff] }
 0x1f7   : > { %2365 = vmatmul.f32.gmra.mxu2 %v4283_v27  ;;  %v3612_v27 = vld [vmem:[%s5750_s2 + $0x3b8] sm:$0xff]  ;;  %v1960_v55 = vadd.f32 %v1959_v41, %v1846_v57  ;;  %v2444_v57 = vld [vmem:[#allocation2 + $0x6f] sm:$0xff] }
 0x1f8   : > { %5825 = vst [vmem:[#allocation44_spill] sm:$0xff] %v4864_v25  ;;  %2765 = vmatpush.msra.mxu0 %v3612_v27  ;;  %v4891_v39 = vpop.f32.mrf.mxu0  ;;  %v3675_v41 = vld [vmem:[#allocation2 + $0x58] sm:$0xff] }
 0x1f9   : > { %2249 = vmatmul.f32.gmra.mxu1 %v3672_v47  ;;  %v3674_v47 = vld [vmem:[#allocation2 + $0x50] sm:$0xff] }
 0x1fa   : > { %2681 = vmatmul.f32.gmra.mxu3 %v2442_v18  ;;  %v1962_v48 = vpop.f32.mrf.mxu2  ;;  %2766 = vmatpush.msra.mxu0 %v3611_v21  ;;  %v3609_v18 = vld [vmem:[%s5750_s2 + $0x3a0] sm:$0xff] }
 0x1fb   : > { %2190 = vmatmul.f32.gmra.mxu0 %v4608_v33  ;;  %v2475_v33 = vmul.f32 %v4237_v28, %v2443_v0  ;;  %v3607_v0 = vld [vmem:[%s5750_s2 + $0x390] sm:$0xff]  ;;  %v3629_v21 = vld [vmem:[%s5750_s2 + $0x440] sm:$0xff] }
 0x1fc   : > { %2767 = vmatpush.msra.mxu0 %v3610_v53  ;;  %2877 = vmatpush.msra.mxu1 %v3629_v21 }
 0x1fd   : > { %v2069_v3 = vpop.f32.mrf.mxu3 }
 0x1fe   : > { %v4882_v38 = vadd.f32 %v2069_v3, %v1957_v62  ;;  %v1849_v5 = vpop.f32.mrf.mxu1  ;;  %2768 = vmatpush.msra.mxu0 %v3609_v18  ;;  %v2445_v18 = vld [vmem:[#allocation2 + $0x77] sm:$0xff] }
 0x1ff   : > { %2368 = vmatmul.f32.gmra.mxu2 %v3673_v43  ;;  %v1963_v53 = vadd.f32 %v1962_v48, %v1849_v5 }
 0x200   : > { %5826 = vst [vmem:[#allocation45_spill] sm:$0xff] %v4882_v38  ;;  %2769 = vmatpush.msra.mxu0 %v3608_v14  ;;  %v4915_v43 = vpop.f32.mrf.mxu0 }
 0x201   : > { %2252 = vmatmul.f32.gmra.mxu1 %v3674_v47 }
 0x202   : > { %2684 = vmatmul.f32.gmra.mxu3 %v2475_v33  ;;  %v1965_v28 = vpop.f32.mrf.mxu2  ;;  %2770 = vmatpush.msra.mxu0 %v3607_v0  ;;  %v3605_v33 = vld [vmem:[%s5750_s2 + $0x380] sm:$0xff]  ;;  %v3676_v0 = vld [vmem:[#allocation2 + $0x69] sm:$0xff] }
 0x203   : > { %2193 = vmatmul.f32.gmra.mxu0 %v4628_v46  ;;  %v3606_v46 = vld [vmem:[%s5750_s2 + $0x388] sm:$0xff] }
 0x204   : > { %2771 = vmatpush.msra.mxu0 %v3606_v46  ;;  %v3677_v46 = vld [vmem:[#allocation2 + $0x60] sm:$0xff] }
 0x205   : > { %v2072_v62 = vpop.f32.mrf.mxu3 }
 0x206   : > { %v4900_v27 = vadd.f32 %v2072_v62, %v1960_v55  ;;  %v1852_v3 = vpop.f32.mrf.mxu1  ;;  %2772 = vmatpush.msra.mxu0 %v3605_v33  ;;  %v2477_v62 = vmul.f32 %v4272_v8, %v2445_v18  ;;  %v3678_v33 = vld [vmem:[#allocation2 + $0x68] sm:$0xff]  ;;  %v2446_v8 = vld [vmem:[#allocation2 + $0x7f] sm:$0xff] }
 0x207   : > { %2371 = vmatmul.f32.gmra.mxu2 %v4336_v34 }
 0x208   : > { %5827 = vst [vmem:[#allocation46_spill] sm:$0xff] %v4900_v27 }
 0x209   : > { %2255 = vmatmul.f32.gmra.mxu1 %v3675_v41 }
 0x20a   : > { %2687 = vmatmul.f32.gmra.mxu3 %v2444_v57  ;;  %v1968_v34 = vpop.f32.mrf.mxu2  ;;  %v4922_v57 = vpop.f32.mrf.mxu0 }
 0x20b   : > { %2196 = vmatmul.f32.gmra.mxu0 %v4665_v17  ;;  %v1966_v17 = vadd.f32 %v1965_v28, %v1852_v3 }
 0x20d   : > { %v2075_v47 = vpop.f32.mrf.mxu3 }
 0x20e   : > { %v4918_v55 = vadd.f32 %v2075_v47, %v1963_v53  ;;  %v1855_v14 = vpop.f32.mrf.mxu1  ;;  %v3628_v53 = vld [vmem:[%s5750_s2 + $0x438] sm:$0xff]  ;;  %v2447_v47 = vld [vmem:[#allocation2 + $0x87] sm:$0xff] }
 0x20f   : > { %2374 = vmatmul.f32.gmra.mxu2 %v3676_v0  ;;  %2878 = vmatpush.msra.mxu1 %v3628_v53  ;;  %v1969_v28 = vadd.f32 %v1968_v34, %v1855_v14  ;;  %v3134_v34 = vld [vmem:[%s5751_s3 + $0x78] sm:$0xff] }
 0x210   : > { %5828 = vst [vmem:[#allocation47_spill] sm:$0xff] %v4918_v55  ;;  %3264 = vmatpush.msra.mxu3 %v3134_v34  ;;  %v3682_v34 = vld [vmem:[#allocation2 + $0x89] sm:$0xff]  ;;  %v2532_v55 = vld [vmem:[#allocation2 + $0x31] sm:$0xff] }
 0x211   : > { %2258 = vmatmul.f32.gmra.mxu1 %v3677_v46  ;;  %v3679_v46 = vld [vmem:[#allocation2 + $0x79] sm:$0xff] }
 0x212   : > { %2690 = vmatmul.f32.gmra.mxu3 %v2477_v62  ;;  %v1971_v41 = vpop.f32.mrf.mxu2  ;;  %v4933_v0 = vpop.f32.mrf.mxu0 }
 0x213   : > { %2199 = vmatmul.f32.gmra.mxu0 %v4692_v56 }
 0x215   : > { %v2078_v48 = vpop.f32.mrf.mxu3 }
 0x216   : > { %v4924_v5 = vadd.f32 %v2078_v48, %v1966_v17  ;;  %v1858_v21 = vpop.f32.mrf.mxu1  ;;  %v3680_v17 = vld [vmem:[#allocation2 + $0x70] sm:$0xff] }
 0x217   : > { %2377 = vmatmul.f32.gmra.mxu2 %v4380_v45  ;;  %v2479_v45 = vmul.f32 %v4322_v16, %v2447_v47  ;;  %v1972_v48 = vadd.f32 %v1971_v41, %v1858_v21  ;;  %v2499_v47 = vld [vmem:[#allocation2 + $0x28] sm:$0xff] }
 0x218   : > { %5829 = vst [vmem:[#allocation48_spill] sm:$0xff] %v4924_v5  ;;  %v3702_v5 = vld [vmem:[#allocation2 + $0xf0] sm:$0xff] }
 0x219   : > { %2261 = vmatmul.f32.gmra.mxu1 %v3678_v33 }
 0x21a   : > { %2693 = vmatmul.f32.gmra.mxu3 %v2446_v8  ;;  %v1974_v56 = vpop.f32.mrf.mxu2  ;;  %v4946_v53 = vpop.f32.mrf.mxu0 }
 0x21b   : > { %2202 = vmatmul.f32.gmra.mxu0 %v4731_v22  ;;  %v3150_v22 = vld [vmem:[%s5758_s10 + $0x78] sm:$0xff] }
 0x21c   : > { %3151 = vmatpush.msra.mxu2 %v3150_v22 }
 0x21d   : > { %v2081_v3 = vpop.f32.mrf.mxu3 }
 0x21e   : > { %v4931_v18 = vadd.f32 %v2081_v3, %v1969_v28  ;;  %v1861_v62 = vpop.f32.mrf.mxu1  ;;  %v3681_v28 = vld [vmem:[#allocation2 + $0x78] sm:$0xff]  ;;  %v2448_v3 = vld [vmem:[#allocation2 + $0x8f] sm:$0xff] }
 0x21f   : > { %2380 = vmatmul.f32.gmra.mxu2 %v3679_v46  ;;  %v1975_v21 = vadd.f32 %v1974_v56, %v1861_v62  ;;  %v2449_v46 = vld [vmem:[#allocation2 + $0x97] sm:$0xff] }
 0x220   : > { %5830 = vst [vmem:[#allocation49_spill] sm:$0xff] %v4931_v18  ;;  %v2481_v22 = vmul.f32 %v4370_v26, %v2449_v46  ;;  %v3133_v56 = vld [vmem:[%s5751_s3 + $0x70] sm:$0xff] }
 0x221   : > { %2264 = vmatmul.f32.gmra.mxu1 %v3680_v17  ;;  %3265 = vmatpush.msra.mxu3 %v3133_v56  ;;  %v2451_v56 = vld [vmem:[#allocation2 + $0xa7] sm:$0xff] }
 0x222   : > { %2696 = vmatmul.f32.gmra.mxu3 %v2479_v45  ;;  %v1977_v14 = vpop.f32.mrf.mxu2  ;;  %v4960_v62 = vpop.f32.mrf.mxu0 }
 0x223   : > { %2205 = vmatmul.f32.gmra.mxu0 %v4754_v12  ;;  %v3627_v12 = vld [vmem:[%s5750_s2 + $0x430] sm:$0xff]  ;;  %5833 = vst [vmem:[#allocation52_spill] sm:$0xff] %v4960_v62 }
 0x224   : > { %2879 = vmatpush.msra.mxu1 %v3627_v12 }
 0x225   : > { %v2084_v16 = vpop.f32.mrf.mxu3 }
 0x226   : > { %v4943_v33 = vadd.f32 %v2084_v16, %v1972_v48  ;;  %v1864_v8 = vpop.f32.mrf.mxu1  ;;  %v3683_v48 = vld [vmem:[#allocation2 + $0x80] sm:$0xff]  ;;  %v2500_v16 = vld [vmem:[#allocation2 + $0x30] sm:$0xff] }
 0x227   : > { %2383 = vmatmul.f32.gmra.mxu2 %v4407_v49  ;;  %v1978_v26 = vadd.f32 %v1977_v14, %v1864_v8  ;;  %v3626_v14 = vld [vmem:[%s5750_s2 + $0x428] sm:$0xff]  ;;  %v2117_v8 = vadd.f32 %v4785_v1, %v4489_v15 }
 0x228   : > { %5831 = vst [vmem:[#allocation50_spill] sm:$0xff] %v4943_v33  ;;  %2880 = vmatpush.msra.mxu1 %v3626_v14  ;;  %v3148_v15 = vld [vmem:[%s5758_s10 + $0x68] sm:$0xff] }
 0x229   : > { %2267 = vmatmul.f32.gmra.mxu1 %v3681_v28  ;;  %v3149_v28 = vld [vmem:[%s5758_s10 + $0x70] sm:$0xff]  ;;  %v3132_v1 = vld [vmem:[%s5751_s3 + $0x68] sm:$0xff] }
 0x22a   : > { %2699 = vmatmul.f32.gmra.mxu3 %v2448_v3  ;;  %v1980_v41 = vpop.f32.mrf.mxu2  ;;  %3152 = vmatpush.msra.mxu2 %v3149_v28  ;;  %v4974_v28 = vpop.f32.mrf.mxu0  ;;  %v2463_v33 = vld [vmem:[#allocation2 + $0x107] sm:$0xff] }
 0x22b   : > { %2773 = vmatmul.f32.vlgmr.msra.gmra.mxu0 %v2499_v47  ;;  %v2114_v47 = vadd.f32 %v4776_v30, %v4461_v7  ;;  %5835 = vst [vmem:[#allocation54_spill] sm:$0xff] %v4974_v28  ;;  %3266 = vmatpush.msra.mxu3 %v3132_v1  ;;  %v3689_v1 = vld [vmem:[#allocation2 + $0xa0] sm:$0xff] }
 0x22c   : > { %3153 = vmatpush.msra.mxu2 %v3148_v15  ;;  %v2542_v28 = vld [vmem:[#allocation2 + $0x81] sm:$0xff] }
 0x22d   : > { %v2087_v45 = vpop.f32.mrf.mxu3 }
 0x22e   : > { %v4951_v17 = vadd.f32 %v2087_v45, %v1975_v21  ;;  %v1867_v49 = vpop.f32.mrf.mxu1 }
 0x22f   : > { %2386 = vmatmul.f32.gmra.mxu2 %v3682_v34  ;;  %v2450_v34 = vld [vmem:[#allocation2 + $0x9f] sm:$0xff]  ;;  %v1981_v30 = vadd.f32 %v1980_v41, %v1867_v49 }
 0x230   : > { %5832 = vst [vmem:[#allocation51_spill] sm:$0xff] %v4951_v17  ;;  %v2502_v41 = vld [vmem:[#allocation2 + $0x40] sm:$0xff] }
 0x231   : > { %2270 = vmatmul.f32.gmra.mxu1 %v3683_v48  ;;  %v3143_v17 = vld [vmem:[%s5758_s10 + $0x40] sm:$0xff] }
 0x232   : > { %2702 = vmatmul.f32.gmra.mxu3 %v2481_v22  ;;  %v2339_v3 = vpop.f32.mrf.mxu2  ;;  %v3684_v22 = vld [vmem:[#allocation2 + $0x88] sm:$0xff] }
 0x233   : > { %2776 = vmatmul.f32.gmra.mxu0 %v2500_v16  ;;  %v2501_v16 = vld [vmem:[#allocation2 + $0x38] sm:$0xff] }
 0x235   : > { %v2090_v12 = vpop.f32.mrf.mxu3 }
 0x236   : > { %v4964_v21 = vadd.f32 %v2090_v12, %v1978_v26  ;;  %v2226_v45 = vpop.f32.mrf.mxu1  ;;  %v2483_v12 = vmul.f32 %v4396_v24, %v2451_v56  ;;  %v2120_v24 = vadd.f32 %v4797_v20, %v4508_v36  ;;  %v3625_v56 = vld [vmem:[%s5750_s2 + $0x420] sm:$0xff] }
 0x237   : > { %v2227_v46 = vadd.f32 %v2226_v45, %v2114_v47  ;;  %2389 = vmatmul.f32.gmra.mxu2 %v4439_v58  ;;  %v3685_v45 = vld [vmem:[#allocation2 + $0x99] sm:$0xff]  ;;  %2881 = vmatpush.msra.mxu1 %v3625_v56 }
 0x238   : > { %5834 = vst [vmem:[#allocation53_spill] sm:$0xff] %v4964_v21  ;;  %v5838_v36 = vld [vmem:[#allocation17_spill] sm:$0xff]  ;;  %v5858_v21 = vld [vmem:[#allocation24_spill] sm:$0xff] }
 0x239   : > { %2273 = vmatmul.f32.gmra.mxu1 %v3684_v22  ;;  %v4967_v48 = vadd.f32 %v2339_v3, %v2227_v46  ;;  %v3686_v46 = vld [vmem:[#allocation2 + $0x90] sm:$0xff]  ;;  %v2123_v20 = vadd.f32 %v4807_v13, %v5838_v36  ;;  %v3131_v13 = vld [vmem:[%s5751_s3 + $0x60] sm:$0xff]  ;;  %v3690_v36 = vld [vmem:[#allocation2 + $0xa8] sm:$0xff] }
 0x23a   : > { %2705 = vmatmul.f32.gmra.mxu3 %v2450_v34  ;;  %v2342_v7 = vpop.f32.mrf.mxu2 }
 0x23b   : > { %2779 = vmatmul.f32.gmra.mxu0 %v2501_v16  ;;  %v4989_v16 = vpop.f32.mrf.mxu0  ;;  %3267 = vmatpush.msra.mxu3 %v3131_v13  ;;  %v5845_v13 = vld [vmem:[#allocation12_spill] sm:$0xff] }
 0x23c   : > { %5837 = vst [vmem:[#allocation56_spill] sm:$0xff] %v4989_v16 }
 0x23d   : > { %v2093_v58 = vpop.f32.mrf.mxu3 }
 0x23e   : > { %v4976_v26 = vadd.f32 %v2093_v58, %v1981_v30  ;;  %v2229_v3 = vpop.f32.mrf.mxu1  ;;  %v2452_v30 = vld [vmem:[#allocation2 + $0xaf] sm:$0xff] }
 0x23f   : > { %v2230_v47 = vadd.f32 %v2229_v3, %v2117_v8  ;;  %2392 = vmatmul.f32.gmra.mxu2 %v3685_v45  ;;  %v2503_v58 = vld [vmem:[#allocation2 + $0x48] sm:$0xff] }
 0x240   : > { %5836 = vst [vmem:[#allocation55_spill] sm:$0xff] %v4976_v26  ;;  %v5839_v45 = vld [vmem:[#allocation10_spill] sm:$0xff]  ;;  %v3621_v26 = vld [vmem:[%s5750_s2 + $0x400] sm:$0xff] }
 0x241   : > { %2276 = vmatmul.f32.gmra.mxu1 %v3686_v46  ;;  %v4979_v22 = vadd.f32 %v2342_v7, %v2230_v47  ;;  %v3687_v7 = vld [vmem:[#allocation2 + $0x98] sm:$0xff] }
 0x242   : > { %2708 = vmatmul.f32.gmra.mxu3 %v2483_v12  ;;  %v2345_v49 = vpop.f32.mrf.mxu2  ;;  %v2453_v47 = vld [vmem:[#allocation2 + $0xb7] sm:$0xff] }
 0x243   : > { %2782 = vmatmul.f32.gmra.mxu0 %v2502_v41  ;;  %v2485_v46 = vmul.f32 %v5839_v45, %v2453_v47  ;;  %v3688_v41 = vld [vmem:[#allocation2 + $0xa9] sm:$0xff]  ;;  %v5000_v15 = vpop.f32.mrf.mxu0 }
 0x244   : > { %5840 = vst [vmem:[#allocation17_spill] sm:$0xff] %v5000_v15 }
 0x246   : > { %v2232_v34 = vpop.f32.mrf.mxu1 }
 0x247   : > { %v2233_v14 = vadd.f32 %v2232_v34, %v2120_v24  ;;  %2395 = vmatmul.f32.gmra.mxu2 %v4475_v59  ;;  %v2504_v24 = vld [vmem:[#allocation2 + $0x50] sm:$0xff]  ;;  %v3147_v34 = vld [vmem:[%s5758_s10 + $0x60] sm:$0xff] }
 0x248   : > { %3154 = vmatpush.msra.mxu2 %v3147_v34 }
 0x249   : > { %2279 = vmatmul.f32.gmra.mxu1 %v3687_v7  ;;  %v4992_v8 = vadd.f32 %v2345_v49, %v2233_v14  ;;  %v5841_v7 = vld [vmem:[#allocation20_spill] sm:$0xff] }
 0x24a   : > { %2711 = vmatmul.f32.gmra.mxu3 %v2452_v30  ;;  %v2348_v3 = vpop.f32.mrf.mxu2  ;;  %v2126_v30 = vadd.f32 %v4817_v4, %v5841_v7  ;;  %v3691_v7 = vld [vmem:[#allocation2 + $0xb9] sm:$0xff] }
 0x24b   : > { %2785 = vmatmul.f32.gmra.mxu0 %v2503_v58  ;;  %v5018_v45 = vpop.f32.mrf.mxu0 }
 0x24c   : > { %5843 = vst [vmem:[#allocation10_spill] sm:$0xff] %v5018_v45  ;;  %v2538_v45 = vld [vmem:[#allocation2 + $0x61] sm:$0xff] }
 0x24e   : > { %v2235_v12 = vpop.f32.mrf.mxu1 }
 0x24f   : > { %v2236_v59 = vadd.f32 %v2235_v12, %v2123_v20  ;;  %2398 = vmatmul.f32.gmra.mxu2 %v3688_v41  ;;  %v2454_v20 = vld [vmem:[#allocation2 + $0xbf] sm:$0xff] }
 0x250   : > { %v2505_v12 = vld [vmem:[#allocation2 + $0x58] sm:$0xff] }
 0x251   : > { %2282 = vmatmul.f32.gmra.mxu1 %v3689_v1  ;;  %v5002_v49 = vadd.f32 %v2348_v3, %v2236_v59  ;;  %v5842_v3 = vld [vmem:[#allocation16_spill] sm:$0xff]  ;;  %v2455_v1 = vld [vmem:[#allocation2 + $0xc7] sm:$0xff] }
 0x252   : > { %2714 = vmatmul.f32.gmra.mxu3 %v2485_v46  ;;  %v2351_v14 = vpop.f32.mrf.mxu2  ;;  %v3624_v59 = vld [vmem:[%s5750_s2 + $0x418] sm:$0xff]  ;;  %v5844_v46 = vld [vmem:[#allocation22_spill] sm:$0xff] }
 0x253   : > { %2788 = vmatmul.f32.gmra.mxu0 %v2504_v24  ;;  %2882 = vmatpush.msra.mxu1 %v3624_v59  ;;  %v2129_v41 = vadd.f32 %v4826_v54, %v5844_v46  ;;  %v3130_v54 = vld [vmem:[%s5751_s3 + $0x58] sm:$0xff] }
 0x254   : > { %3268 = vmatpush.msra.mxu3 %v3130_v54 }
 0x256   : > { %v2238_v58 = vpop.f32.mrf.mxu1 }
 0x257   : > { %v2239_v56 = vadd.f32 %v2238_v58, %v2126_v30  ;;  %2401 = vmatmul.f32.gmra.mxu2 %v5842_v3  ;;  %v3692_v30 = vld [vmem:[#allocation2 + $0xb0] sm:$0xff]  ;;  %v3146_v3 = vld [vmem:[%s5758_s10 + $0x58] sm:$0xff] }
 0x258   : > { %3155 = vmatpush.msra.mxu2 %v3146_v3 }
 0x259   : > { %2285 = vmatmul.f32.gmra.mxu1 %v3690_v36  ;;  %v5013_v47 = vadd.f32 %v2351_v14, %v2239_v56  ;;  %v2487_v14 = vmul.f32 %v5845_v13, %v2455_v1  ;;  %v2506_v56 = vld [vmem:[#allocation2 + $0x60] sm:$0xff]  ;;  %v3693_v1 = vld [vmem:[#allocation2 + $0xb8] sm:$0xff]  ;;  %v2507_v13 = vld [vmem:[#allocation2 + $0x68] sm:$0xff] }
 0x25a   : > { %2717 = vmatmul.f32.gmra.mxu3 %v2454_v20  ;;  %v2354_v4 = vpop.f32.mrf.mxu2  ;;  %v5846_v36 = vld [vmem:[#allocation25_spill] sm:$0xff] }
 0x25b   : > { %2791 = vmatmul.f32.gmra.mxu0 %v2505_v12  ;;  %v2132_v20 = vadd.f32 %v4836_v37, %v5846_v36  ;;  %v5033_v12 = vpop.f32.mrf.mxu0  ;;  %v5849_v37 = vld [vmem:[#allocation27_spill] sm:$0xff]  ;;  %v5851_v36 = vld [vmem:[#allocation14_spill] sm:$0xff] }
 0x25c   : > { %5847 = vst [vmem:[#allocation20_spill] sm:$0xff] %v5033_v12 }
 0x25e   : > { %v2241_v24 = vpop.f32.mrf.mxu1 }
 0x25f   : > { %v2242_v34 = vadd.f32 %v2241_v24, %v2129_v41  ;;  %2404 = vmatmul.f32.gmra.mxu2 %v3691_v7  ;;  %v5848_v41 = vld [vmem:[#allocation21_spill] sm:$0xff]  ;;  %v2456_v24 = vld [vmem:[#allocation2 + $0xcf] sm:$0xff]  ;;  %v2135_v7 = vadd.f32 %v4845_v61, %v5849_v37 }
 0x260   : > { %v3145_v61 = vld [vmem:[%s5758_s10 + $0x50] sm:$0xff]  ;;  %v5852_v37 = vld [vmem:[#allocation26_spill] sm:$0xff] }
 0x261   : > { %2288 = vmatmul.f32.gmra.mxu1 %v3692_v30  ;;  %v5023_v58 = vadd.f32 %v2354_v4, %v2242_v34  ;;  %v2457_v30 = vld [vmem:[#allocation2 + $0xd7] sm:$0xff]  ;;  %3156 = vmatpush.msra.mxu2 %v3145_v61 }
 0x262   : > { %2720 = vmatmul.f32.gmra.mxu3 %v2487_v14  ;;  %v2357_v4 = vpop.f32.mrf.mxu2  ;;  %v3623_v14 = vld [vmem:[%s5750_s2 + $0x410] sm:$0xff]  ;;  %v3697_v61 = vld [vmem:[#allocation2 + $0xd9] sm:$0xff] }
 0x263   : > { %2794 = vmatmul.f32.gmra.mxu0 %v2506_v56  ;;  %2883 = vmatpush.msra.mxu1 %v3623_v14  ;;  %v5043_v3 = vpop.f32.mrf.mxu0 }
 0x264   : > { %5850 = vst [vmem:[#allocation16_spill] sm:$0xff] %v5043_v3  ;;  %v2536_v3 = vld [vmem:[#allocation2 + $0x51] sm:$0xff] }
 0x266   : > { %v2244_v59 = vpop.f32.mrf.mxu1 }
 0x267   : > { %v2245_v46 = vadd.f32 %v2244_v59, %v2132_v20  ;;  %2407 = vmatmul.f32.gmra.mxu2 %v5848_v41  ;;  %v2489_v20 = vmul.f32 %v5851_v36, %v2457_v30  ;;  %v3696_v30 = vld [vmem:[#allocation2 + $0xc8] sm:$0xff] }
 0x268   : > { %v3622_v36 = vld [vmem:[%s5750_s2 + $0x408] sm:$0xff] }
 0x269   : > { %2291 = vmatmul.f32.gmra.mxu1 %v3693_v1  ;;  %v5036_v34 = vadd.f32 %v2357_v4, %v2245_v46  ;;  %v3694_v4 = vld [vmem:[#allocation2 + $0xc9] sm:$0xff]  ;;  %v3695_v46 = vld [vmem:[#allocation2 + $0xc0] sm:$0xff] }
 0x26a   : > { %2723 = vmatmul.f32.gmra.mxu3 %v2456_v24  ;;  %v2360_v59 = vpop.f32.mrf.mxu2  ;;  %v2508_v1 = vld [vmem:[#allocation2 + $0x70] sm:$0xff]  ;;  %2884 = vmatpush.msra.mxu1 %v3622_v36 }
 0x26b   : > { %2797 = vmatmul.f32.gmra.mxu0 %v2507_v13  ;;  %v3129_v24 = vld [vmem:[%s5751_s3 + $0x50] sm:$0xff]  ;;  %v5054_v13 = vpop.f32.mrf.mxu3 }
 0x26c   : > { %3269 = vmatpush.msra.mxu3 %v3129_v24  ;;  %v3698_v24 = vld [vmem:[#allocation2 + $0xd0] sm:$0xff]  ;;  %2885 = vmatpush.msra.mxu1 %v3621_v26  ;;  %v3127_v26 = vld [vmem:[%s5751_s3 + $0x40] sm:$0xff] }
 0x26e   : > { %v2247_v56 = vpop.f32.mrf.mxu1 }
 0x26f   : > { %v2248_v54 = vadd.f32 %v2247_v56, %v2135_v7  ;;  %2410 = vmatmul.f32.gmra.mxu2 %v3694_v4  ;;  %v5059_v7 = vpop.f32.mrf.mxu0  ;;  %v2458_v56 = vld [vmem:[#allocation2 + $0xdf] sm:$0xff] }
 0x270   : > { %5853 = vst [vmem:[#allocation22_spill] sm:$0xff] %v5059_v7  ;;  %v5871_v7 = vld [vmem:[#allocation3_spill] sm:$0xff] }
 0x271   : > { %2294 = vmatmul.f32.gmra.mxu1 %v3695_v46  ;;  %v5046_v41 = vadd.f32 %v2360_v59, %v2248_v54  ;;  %v2509_v54 = vld [vmem:[#allocation2 + $0x78] sm:$0xff]  ;;  %v5854_v46 = vld [vmem:[#allocation18_spill] sm:$0xff] }
 0x272   : > { %2726 = vmatmul.f32.gmra.mxu3 %v2489_v20  ;;  %v2459_v20 = vld [vmem:[#allocation2 + $0xe7] sm:$0xff] }
 0x273   : > { %2800 = vmatmul.f32.gmra.mxu0 %v2508_v1  ;;  %v5066_v4 = vpop.f32.mrf.mxu3  ;;  %v2491_v1 = vmul.f32 %v5854_v46, %v2459_v20  ;;  %v5856_v20 = vld [vmem:[#allocation30_spill] sm:$0xff]  ;;  %v3699_v46 = vld [vmem:[#allocation2 + $0xd8] sm:$0xff] }
 0x276   : > { %v5056_v14 = vpop.f32.mrf.mxu1 }
 0x277   : > { %2413 = vmatmul.f32.gmra.mxu2 %v5852_v37  ;;  %v2510_v37 = vld [vmem:[#allocation2 + $0x80] sm:$0xff] }
 0x279   : > { %2297 = vmatmul.f32.gmra.mxu1 %v3696_v30  ;;  %v3144_v30 = vld [vmem:[%s5758_s10 + $0x48] sm:$0xff] }
 0x27a   : > { %2729 = vmatmul.f32.gmra.mxu3 %v2458_v56  ;;  %v3128_v56 = vld [vmem:[%s5751_s3 + $0x48] sm:$0xff]  ;;  %3157 = vmatpush.msra.mxu2 %v3144_v30  ;;  %v2461_v30 = vld [vmem:[#allocation2 + $0xf7] sm:$0xff] }
 0x27b   : > { %2803 = vmatmul.f32.gmra.mxu0 %v2509_v54  ;;  %v5075_v54 = vpop.f32.mrf.mxu0  ;;  %3270 = vmatpush.msra.mxu3 %v3128_v56 }
 0x27c   : > { %5855 = vst [vmem:[#allocation12_spill] sm:$0xff] %v5075_v54  ;;  %3158 = vmatpush.msra.mxu2 %v3143_v17  ;;  %v2495_v17 = vmul.f32 %v4646_v63, %v2463_v33 }
 0x27d   : > { %3271 = vmatpush.msra.mxu3 %v3127_v26 }
 0x27e   : > { %v5064_v59 = vpop.f32.mrf.mxu1 }
 0x27f   : > { %2416 = vmatmul.f32.gmra.mxu2 %v3697_v61  ;;  %v5080_v61 = vpop.f32.mrf.mxu3 }
 0x281   : > { %2300 = vmatmul.f32.gmra.mxu1 %v3698_v24  ;;  %v2511_v24 = vld [vmem:[#allocation2 + $0x88] sm:$0xff] }
 0x282   : > { %2732 = vmatmul.f32.gmra.mxu3 %v2491_v1  ;;  %v2460_v1 = vld [vmem:[#allocation2 + $0xef] sm:$0xff] }
 0x283   : > { %2806 = vmatmul.f32.gmra.mxu0 %v2510_v37  ;;  %v5085_v37 = vpop.f32.mrf.mxu0 }
 0x284   : > { %5857 = vst [vmem:[#allocation25_spill] sm:$0xff] %v5085_v37 }
 0x286   : > { %v5077_v36 = vpop.f32.mrf.mxu1 }
 0x287   : > { %2419 = vmatmul.f32.gmra.mxu2 %v5856_v20  ;;  %v2493_v20 = vmul.f32 %v5858_v21, %v2461_v30  ;;  %v3701_v30 = vld [vmem:[#allocation2 + $0xe8] sm:$0xff] }
 0x289   : > { %2303 = vmatmul.f32.gmra.mxu1 %v3699_v46  ;;  %v3700_v46 = vld [vmem:[#allocation2 + $0xe0] sm:$0xff] }
 0x28a   : > { %2735 = vmatmul.f32.gmra.mxu3 %v2460_v1  ;;  %v2512_v1 = vld [vmem:[#allocation2 + $0x90] sm:$0xff] }
 0x28b   : > { %2809 = vmatmul.f32.gmra.mxu0 %v2511_v24  ;;  %v5097_v24 = vpop.f32.mrf.mxu3 }
 0x28e   : > { %v5087_v56 = vpop.f32.mrf.mxu1 }
 0x28f   : > { %2422 = vmatmul.f32.gmra.mxu2 %v4699_v19  ;;  %v5101_v19 = vpop.f32.mrf.mxu0 }
 0x290   : > { %5859 = vst [vmem:[#allocation21_spill] sm:$0xff] %v5101_v19 }
 0x291   : > { %2306 = vmatmul.f32.gmra.mxu1 %v3700_v46  ;;  %v2513_v46 = vld [vmem:[#allocation2 + $0x98] sm:$0xff] }
 0x292   : > { %2738 = vmatmul.f32.gmra.mxu3 %v2493_v20  ;;  %v2462_v20 = vld [vmem:[#allocation2 + $0xff] sm:$0xff] }
 0x293   : > { %2812 = vmatmul.f32.gmra.mxu0 %v2512_v1  ;;  %v5104_v18 = vpop.f32.mrf.mxu3 }
 0x296   : > { %v5099_v21 = vpop.f32.mrf.mxu1 }
 0x297   : > { %2425 = vmatmul.f32.gmra.mxu2 %v4734_v6  ;;  %v5110_v26 = vpop.f32.mrf.mxu0  ;;  %v3142_v6 = vld [vmem:[%s5758_s10 + $0x38] sm:$0xff] }
 0x298   : > { %5860 = vst [vmem:[#allocation27_spill] sm:$0xff] %v5110_v26  ;;  %3159 = vmatpush.msra.mxu2 %v3142_v6  ;;  %v2515_v26 = vld [vmem:[#allocation2 + $0xa8] sm:$0xff] }
 0x299   : > { %2309 = vmatmul.f32.gmra.mxu1 %v3701_v30  ;;  %v3126_v30 = vld [vmem:[%s5751_s3 + $0x38] sm:$0xff] }
 0x29a   : > { %2741 = vmatmul.f32.gmra.mxu3 %v2462_v20  ;;  %v2514_v20 = vld [vmem:[#allocation2 + $0xa0] sm:$0xff] }
 0x29b   : > { %2815 = vmatmul.f32.gmra.mxu0 %v2513_v46  ;;  %3272 = vmatpush.msra.mxu3 %v3126_v30  ;;  %v5122_v33 = vpop.f32.mrf.mxu3  ;;  %v2464_v46 = vld [vmem:[#allocation2 + $0x10f] sm:$0xff] }
 0x29e   : > { %v5106_v1 = vpop.f32.mrf.mxu1 }
 0x29f   : > { %2428 = vmatmul.f32.gmra.mxu2 %v4761_v35  ;;  %v1589_v35 = vmul.f32 %v4795_v60, %v4768_v11  ;;  %v5124_v19 = vpop.f32.mrf.mxu0  ;;  %v3141_v11 = vld [vmem:[%s5758_s10 + $0x30] sm:$0xff]  ;;  %v2466_v60 = vld [vmem:[#allocation2 + $0x11f] sm:$0xff] }
 0x2a0   : > { %5862 = vst [vmem:[#allocation26_spill] sm:$0xff] %v5124_v19  ;;  %3160 = vmatpush.msra.mxu2 %v3141_v11  ;;  %v2517_v19 = vld [vmem:[#allocation2 + $0xb8] sm:$0xff]  ;;  %v2564_v11 = vmul.f32 %v4167_v9, %v2532_v55  ;;  %v2519_v9 = vld [vmem:[#allocation2 + $0xc8] sm:$0xff] }
 0x2a1   : > { %2312 = vmatmul.f32.gmra.mxu1 %v3702_v5  ;;  %v3703_v5 = vld [vmem:[#allocation2 + $0xf8] sm:$0xff] }
 0x2a2   : > { %2744 = vmatmul.f32.gmra.mxu3 %v2495_v17  ;;  %v2465_v17 = vld [vmem:[#allocation2 + $0x117] sm:$0xff] }
 0x2a3   : > { %2818 = vmatmul.f32.gmra.mxu0 %v2514_v20  ;;  %v2497_v30 = vmul.f32 %v4712_v52, %v2465_v17  ;;  %v3704_v20 = vld [vmem:[#allocation2 + $0x100] sm:$0xff] }
 0x2a6   : > { %v5118_v63 = vpop.f32.mrf.mxu1 }
 0x2a7   : > { %5861 = vst [vmem:[#allocation14_spill] sm:$0xff] %v5118_v63  ;;  %2431 = vmatmul.f32.gmra.mxu2 %v1589_v35  ;;  %v3125_v35 = vld [vmem:[%s5751_s3 + $0x30] sm:$0xff]  ;;  %v5139_v52 = vpop.f32.mrf.mxu0 }
 0x2a8   : > { %3273 = vmatpush.msra.mxu3 %v3125_v35  ;;  %5864 = vst [vmem:[#allocation30_spill] sm:$0xff] %v5139_v52  ;;  %v3140_v35 = vld [vmem:[%s5758_s10 + $0x28] sm:$0xff]  ;;  %v2533_v52 = vld [vmem:[#allocation2 + $0x39] sm:$0xff] }
 0x2a9   : > { %2315 = vmatmul.f32.gmra.mxu1 %v3703_v5  ;;  %v5135_v5 = vpop.f32.mrf.mxu3  ;;  %3161 = vmatpush.msra.mxu2 %v3140_v35  ;;  %v3139_v35 = vld [vmem:[%s5758_s10 + $0x20] sm:$0xff] }
 0x2aa   : > { %2747 = vmatmul.f32.gmra.mxu3 %v2464_v46  ;;  %v2516_v46 = vld [vmem:[#allocation2 + $0xb0] sm:$0xff] }
 0x2ab   : > { %2821 = vmatmul.f32.gmra.mxu0 %v2515_v26  ;;  %v5137_v26 = vpop.f32.mrf.mxu2  ;;  %3162 = vmatpush.msra.mxu2 %v3139_v35 }
 0x2ae   : > { %v5126_v6 = vpop.f32.mrf.mxu1 }
 0x2af   : > { %5863 = vst [vmem:[#allocation18_spill] sm:$0xff] %v5126_v6  ;;  %v3706_v6 = vld [vmem:[#allocation2] sm:$0xff] }
 0x2b1   : > { %2318 = vmatmul.f32.gmra.mxu1 %v3704_v20  ;;  %v2531_v20 = vld [vmem:[#allocation2 + $0x29] sm:$0xff]  ;;  %v5162_v55 = vpop.f32.mrf.mxu3 }
 0x2b2   : > { %2750 = vmatmul.f32.gmra.mxu3 %v2497_v30  ;;  %v5147_v30 = vpop.f32.mrf.mxu0 }
 0x2b3   : > { %2824 = vmatmul.f32.gmra.mxu0 %v2516_v46  ;;  %v5145_v27 = vpop.f32.mrf.mxu2  ;;  %5867 = vst [vmem:[#allocation58_spill] sm:$0xff] %v5147_v30  ;;  %v3124_v46 = vld [vmem:[%s5751_s3 + $0x28] sm:$0xff] }
 0x2b4   : > { %3274 = vmatpush.msra.mxu3 %v3124_v46  ;;  %v3123_v46 = vld [vmem:[%s5751_s3 + $0x20] sm:$0xff] }
 0x2b6   : > { %v5141_v17 = vpop.f32.mrf.mxu1  ;;  %3275 = vmatpush.msra.mxu3 %v3123_v46  ;;  %v5875_v46 = vld [vmem:[#allocation4_spill] sm:$0xff] }
 0x2b7   : > { %5865 = vst [vmem:[#allocation24_spill] sm:$0xff] %v5141_v17  ;;  %v2568_v44 = vmul.f32 %v5875_v46, %v2536_v3  ;;  %v2537_v46 = vld [vmem:[#allocation2 + $0x59] sm:$0xff] }
 0x2b9   : > { %2886 = vmatmul.f32.vlgmr.msra.gmra.mxu1 %v2531_v20  ;;  %v2518_v20 = vld [vmem:[#allocation2 + $0xc0] sm:$0xff] }
 0x2ba   : > { %v5160_v30 = vpop.f32.mrf.mxu0  ;;  %2753 = vmatmul.f32.gmra.mxu3 %v2466_v60 }
 0x2bb   : > { %2827 = vmatmul.f32.gmra.mxu0 %v2517_v19  ;;  %v5158_v54 = vpop.f32.mrf.mxu2  ;;  %5869 = vst [vmem:[#allocation60_spill] sm:$0xff] %v5160_v30  ;;  %v5177_v30 = vpop.f32.mrf.mxu3 }
 0x2be   : > { %v5143_v37 = vpop.f32.mrf.mxu1 }
 0x2bf   : > { %5866 = vst [vmem:[#allocation57_spill] sm:$0xff] %v5143_v37  ;;  %v2540_v37 = vld [vmem:[#allocation2 + $0x71] sm:$0xff] }
 0x2c1   : > { %2889 = vmatmul.f32.gmra.mxu1 %v2564_v11  ;;  %v2534_v11 = vld [vmem:[#allocation2 + $0x41] sm:$0xff] }
 0x2c2   : > { %v2566_v25 = vmul.f32 %v5871_v7, %v2534_v11  ;;  %v2521_v11 = vld [vmem:[#allocation2 + $0xd8] sm:$0xff] }
 0x2c3   : > { %2830 = vmatmul.f32.gmra.mxu0 %v2518_v20  ;;  %v2520_v20 = vld [vmem:[#allocation2 + $0xd0] sm:$0xff] }
 0x2c6   : > { %v5156_v19 = vpop.f32.mrf.mxu1 }
 0x2c7   : > { %5868 = vst [vmem:[#allocation59_spill] sm:$0xff] %v5156_v19  ;;  %v5878_v19 = vld [vmem:[#allocation5_spill] sm:$0xff] }
 0x2c8   : > { %v2570_v15 = vmul.f32 %v5878_v19, %v2538_v45  ;;  %v2539_v19 = vld [vmem:[#allocation2 + $0x69] sm:$0xff] }
 0x2c9   : > { %2892 = vmatmul.f32.gmra.mxu1 %v2533_v52  ;;  %v5173_v52 = vpop.f32.mrf.mxu2 }
 0x2cb   : > { %2833 = vmatmul.f32.gmra.mxu0 %v2519_v9  ;;  %v5175_v9 = vpop.f32.mrf.mxu0 }
 0x2cc   : > { %5872 = vst [vmem:[#allocation3_spill] sm:$0xff] %v5175_v9 }
 0x2ce   : > { %v5164_v38 = vpop.f32.mrf.mxu1 }
 0x2cf   : > { %5870 = vst [vmem:[#allocation61_spill] sm:$0xff] %v5164_v38  ;;  %v5188_v38 = vpop.f32.mrf.mxu3 }
 0x2d1   : > { %2895 = vmatmul.f32.gmra.mxu1 %v2566_v25  ;;  %v2535_v25 = vld [vmem:[#allocation2 + $0x49] sm:$0xff]  ;;  %v5181_v51 = vpop.f32.mrf.mxu2 }
 0x2d3   : > { %2836 = vmatmul.f32.gmra.mxu0 %v2520_v20  ;;  %v5183_v12 = vpop.f32.mrf.mxu0  ;;  %v3138_v20 = vld [vmem:[%s5758_s10 + $0x18] sm:$0xff] }
 0x2d4   : > { %3163 = vmatpush.msra.mxu2 %v3138_v20 }
 0x2d6   : > { %v5179_v7 = vpop.f32.mrf.mxu1 }
 0x2d7   : > { %5873 = vst [vmem:[#allocation62_spill] sm:$0xff] %v5179_v7  ;;  %v2523_v7 = vld [vmem:[#allocation2 + $0xe8] sm:$0xff] }
 0x2d9   : > { %2898 = vmatmul.f32.gmra.mxu1 %v2535_v25  ;;  %v3122_v25 = vld [vmem:[%s5751_s3 + $0x18] sm:$0xff] }
 0x2da   : > { %3276 = vmatpush.msra.mxu3 %v3122_v25 }
 0x2db   : > { %2839 = vmatmul.f32.gmra.mxu0 %v2521_v11  ;;  %v2522_v11 = vld [vmem:[#allocation2 + $0xe0] sm:$0xff]  ;;  %v5200_v3 = vpop.f32.mrf.mxu0 }
 0x2de   : > { %v5185_v35 = vpop.f32.mrf.mxu1 }
 0x2df   : > { %5874 = vst [vmem:[#allocation63_spill] sm:$0xff] %v5185_v35  ;;  %v5198_v35 = vpop.f32.mrf.mxu2 }
 0x2e1   : > { %2901 = vmatmul.f32.gmra.mxu1 %v2568_v44  ;;  %v5202_v44 = vpop.f32.mrf.mxu3 }
 0x2e3   : > { %2842 = vmatmul.f32.gmra.mxu0 %v2522_v11  ;;  %v5209_v25 = vpop.f32.mrf.mxu0  ;;  %v3137_v11 = vld [vmem:[%s5758_s10 + $0x10] sm:$0xff] }
 0x2e4   : > { %3164 = vmatpush.msra.mxu2 %v3137_v11  ;;  %v5883_v11 = vld [vmem:[#allocation6_spill] sm:$0xff] }
 0x2e6   : > { %v5196_v9 = vpop.f32.mrf.mxu1 }
 0x2e7   : > { %5876 = vst [vmem:[#allocation4_spill] sm:$0xff] %v5196_v9  ;;  %v5207_v20 = vpop.f32.mrf.mxu2  ;;  %v2524_v9 = vld [vmem:[#allocation2 + $0xf0] sm:$0xff] }
 0x2e8   : > { %5879 = vst [vmem:[#allocation5_spill] sm:$0xff] %v5207_v20  ;;  %v2545_v20 = vld [vmem:[#allocation2 + $0x99] sm:$0xff] }
 0x2e9   : > { %2904 = vmatmul.f32.gmra.mxu1 %v2537_v46  ;;  %v3121_v46 = vld [vmem:[%s5751_s3 + $0x10] sm:$0xff] }
 0x2ea   : > { %3277 = vmatpush.msra.mxu3 %v3121_v46  ;;  %v2572_v46 = vmul.f32 %v5883_v11, %v2540_v37  ;;  %v2541_v11 = vld [vmem:[#allocation2 + $0x79] sm:$0xff] }
 0x2eb   : > { %2845 = vmatmul.f32.gmra.mxu0 %v2523_v7  ;;  %v5217_v7 = vpop.f32.mrf.mxu3  ;;  %v5223_v40 = vpop.f32.mrf.mxu0 }
 0x2ee   : > { %v5204_v23 = vpop.f32.mrf.mxu1 }
 0x2ef   : > { %5877 = vst [vmem:[#allocation64_spill] sm:$0xff] %v5204_v23  ;;  %v2525_v23 = vld [vmem:[#allocation2 + $0xf8] sm:$0xff] }
 0x2f1   : > { %2907 = vmatmul.f32.gmra.mxu1 %v2570_v15  ;;  %v5221_v15 = vpop.f32.mrf.mxu2 }
 0x2f2   : > { %5881 = vst [vmem:[#allocation66_spill] sm:$0xff] %v5221_v15 }
 0x2f3   : > { %2848 = vmatmul.f32.gmra.mxu0 %v2524_v9  ;;  %v5225_v16 = vpop.f32.mrf.mxu3  ;;  %v3136_v9 = vld [vmem:[%s5758_s10 + $0x8] sm:$0xff]  ;;  %v5238_v17 = vpop.f32.mrf.mxu0 }
 0x2f4   : > { %3165 = vmatpush.msra.mxu2 %v3136_v9 }
 0x2f6   : > { %v5219_v45 = vpop.f32.mrf.mxu1 }
 0x2f7   : > { %5880 = vst [vmem:[#allocation65_spill] sm:$0xff] %v5219_v45  ;;  %v2526_v45 = vld [vmem:[#allocation2 + $0x100] sm:$0xff] }
 0x2f9   : > { %2910 = vmatmul.f32.gmra.mxu1 %v2539_v19  ;;  %v3120_v19 = vld [vmem:[%s5751_s3 + $0x8] sm:$0xff] }
 0x2fa   : > { %3278 = vmatpush.msra.mxu3 %v3120_v19 }
 0x2fb   : > { %2851 = vmatmul.f32.gmra.mxu0 %v2525_v23  ;;  %v5236_v23 = vpop.f32.mrf.mxu2  ;;  %v5242_v37 = vpop.f32.mrf.mxu3 }
 0x2fc   : > { %5884 = vst [vmem:[#allocation6_spill] sm:$0xff] %v5236_v23  ;;  %v5248_v9 = vpop.f32.mrf.mxu0 }
 0x2fe   : > { %v5227_v31 = vpop.f32.mrf.mxu1 }
 0x2ff   : > { %5882 = vst [vmem:[#allocation67_spill] sm:$0xff] %v5227_v31 }
 0x301   : > { %2913 = vmatmul.f32.gmra.mxu1 %v2572_v46  ;;  %v2527_v46 = vld [vmem:[#allocation2 + $0x108] sm:$0xff] }
 0x303   : > { %2854 = vmatmul.f32.gmra.mxu0 %v2526_v45  ;;  %v5246_v15 = vpop.f32.mrf.mxu2  ;;  %v5888_v45 = vld [vmem:[#allocation7_spill] sm:$0xff]  ;;  %v5257_v23 = vpop.f32.mrf.mxu3 }
 0x304   : > { %5887 = vst [vmem:[#allocation70_spill] sm:$0xff] %v5246_v15  ;;  %v2574_v19 = vmul.f32 %v5888_v45, %v2542_v28  ;;  %v2543_v28 = vld [vmem:[#allocation2 + $0x89] sm:$0xff] }
 0x305   : > { %5889 = vst [vmem:[#allocation7_spill] sm:$0xff] %v5257_v23  ;;  %v3709_v23 = vld [vmem:[%s3857_s28 + $0x18] sm:$0xff] }
 0x306   : > { %v5240_v31 = vpop.f32.mrf.mxu1 }
 0x307   : > { %5885 = vst [vmem:[#allocation68_spill] sm:$0xff] %v5240_v31  ;;  %v3135_v31 = vld [vmem:[%s5758_s10] sm:$0xff] }
 0x308   : > { %3166 = vmatpush.msra.mxu2 %v3135_v31  ;;  %v2544_v31 = vld [vmem:[#allocation2 + $0x91] sm:$0xff] }
 0x309   : > { %2916 = vmatmul.f32.gmra.mxu1 %v2541_v11  ;;  %v3119_v11 = vld [vmem:[%s5751_s3] sm:$0xff] }
 0x30a   : > { %3279 = vmatpush.msra.mxu3 %v3119_v11  ;;  %v3707_v11 = vld [vmem:[%s3857_s28 + $0x8] sm:$0xff] }
 0x30b   : > { %2857 = vmatmul.f32.gmra.mxu0 %v2527_v46  ;;  %v2528_v46 = vld [vmem:[#allocation2 + $0x110] sm:$0xff]  ;;  %v5262_v45 = vpop.f32.mrf.mxu2  ;;  %v5266_v62 = vpop.f32.mrf.mxu3 }
 0x30c   : > { %5891 = vst [vmem:[#allocation72_spill] sm:$0xff] %v5262_v45 }
 0x30d   : > { %5892 = vst [vmem:[#allocation73_spill] sm:$0xff] %v5266_v62 }
 0x30e   : > { %v5244_v29 = vpop.f32.mrf.mxu1 }
 0x30f   : > { %5886 = vst [vmem:[#allocation69_spill] sm:$0xff] %v5244_v29  ;;  %v3705_v29 = vld [vmem:[%s3857_s28] sm:$0xff] }
 0x310   : > { %3167 = vmatmul.f32.vlgmr.msra.gmra.mxu2 %v3705_v29 }
 0x311   : > { %2919 = vmatmul.f32.gmra.mxu1 %v2574_v19  ;;  %v5264_v19 = vpop.f32.mrf.mxu0 }
 0x313   : > { %2860 = vmatmul.f32.gmra.mxu0 %v2528_v46  ;;  %v5894_v46 = vld [vmem:[#allocation8_spill] sm:$0xff]  ;;  %v5272_v45 = vpop.f32.mrf.mxu2  ;;  %v5277_v60 = vpop.f32.mrf.mxu3 }
 0x314   : > { %5895 = vst [vmem:[#allocation8_spill] sm:$0xff] %v5272_v45 }
 0x315   : > { %5896 = vst [vmem:[#allocation75_spill] sm:$0xff] %v5277_v60 }
 0x316   : > { %v5260_v15 = vpop.f32.mrf.mxu1 }
 0x317   : > { %5890 = vst [vmem:[#allocation71_spill] sm:$0xff] %v5260_v15  ;;  %v2576_v15 = vmul.f32 %v5894_v46, %v2544_v31  ;;  %v5900_v31 = vld [vmem:[#allocation9_spill] sm:$0xff] }
 0x318   : > { %3170 = vmatmul.f32.gmra.mxu2 %v3707_v11  ;;  %v2546_v11 = vld [vmem:[#allocation2 + $0xa1] sm:$0xff] }
 0x319   : > { %2922 = vmatmul.f32.gmra.mxu1 %v2543_v28  ;;  %v5274_v2 = vpop.f32.mrf.mxu0  ;;  %v3708_v28 = vld [vmem:[%s3857_s28 + $0x10] sm:$0xff]  ;;  %v2578_v46 = vmul.f32 %v5900_v31, %v2546_v11  ;;  %v5303_v31 = vld [vmem:[%s5757_s9] ss:$0 sm:$0xff] }
 0x31b   : > { %2863 = vmatmul.f32.gmra.mxu0 %v3706_v6  ;;  %v5287_v45 = vpop.f32.mrf.mxu3 }
 0x31c   : > { %5901 = vst [vmem:[#allocation9_spill] sm:$0xff] %v5287_v45 }
 0x31e   : > { %v5269_v29 = vpop.f32.mrf.mxu1 }
 0x31f   : > { %5893 = vst [vmem:[#allocation74_spill] sm:$0xff] %v5269_v29  ;;  %v5282_v29 = vpop.f32.mrf.mxu2 }
 0x320   : > { %3173 = vmatmul.f32.gmra.mxu2 %v3708_v28  ;;  %5898 = vst [vmem:[#allocation77_spill] sm:$0xff] %v5282_v29  ;;  %v2775_v28 = vadd.f32 %v5183_v12, %v5054_v13  ;;  %v3711_v13 = vld [vmem:[%s3857_s28 + $0x28] sm:$0xff]  ;;  %v5904_v29 = vld [vmem:[#allocation11_spill] sm:$0xff] }
 0x321   : > { %2925 = vmatmul.f32.gmra.mxu1 %v2576_v15 }
 0x323   : > { %2866 = vmatmul.f32.gmra.mxu0 %v3706_v6  ;;  %v3710_v6 = vld [vmem:[%s3857_s28 + $0x20] sm:$0xff] }
 0x326   : > { %v5279_v62 = vpop.f32.mrf.mxu1 }
 0x327   : > { %5897 = vst [vmem:[#allocation76_spill] sm:$0xff] %v5279_v62 }
 0x328   : > { %3176 = vmatmul.f32.gmra.mxu2 %v3709_v23  ;;  %v5297_v23 = vld [vmem:[%s5756_s8] ss:$0 sm:$0xff] }
 0x329   : > { %2928 = vmatmul.f32.gmra.mxu1 %v2545_v20  ;;  %v5292_v20 = vpop.f32.mrf.mxu2 }
 0x32a   : > { %5902 = vst [vmem:[#allocation79_spill] sm:$0xff] %v5292_v20 }
 0x32e   : > { %v5284_v15 = vpop.f32.mrf.mxu1 }
 0x32f   : > { %5899 = vst [vmem:[#allocation78_spill] sm:$0xff] %v5284_v15  ;;  %v2547_v15 = vld [vmem:[#allocation2 + $0xa9] sm:$0xff] }
 0x330   : > { %3179 = vmatmul.f32.gmra.mxu2 %v3710_v6  ;;  %v2778_v6 = vadd.f32 %v5200_v3, %v5066_v4  ;;  %v2781_v4 = vadd.f32 %v5209_v25, %v5080_v61  ;;  %v2784_v61 = vadd.f32 %v5223_v40, %v5097_v24  ;;  %v2787_v40 = vadd.f32 %v5238_v17, %v5104_v18  ;;  %v3715_v18 = vld [vmem:[%s3857_s28 + $0x48] sm:$0xff] }
 0x331   : > { %2931 = vmatmul.f32.gmra.mxu1 %v2578_v46  ;;  %v5305_v46 = vpop.f32.mrf.mxu3  ;;  %v5313_v63 = vpop.f32.mrf.mxu2  ;;  %v2790_v17 = vadd.f32 %v5248_v9, %v5122_v33  ;;  %v3716_v33 = vld [vmem:[%s3857_s28 + $0x50] sm:$0xff]  ;;  %v2793_v9 = vadd.f32 %v5264_v19, %v5135_v5  ;;  %v2796_v5 = vadd.f32 %v5274_v2, %v5162_v55  ;;  %v3718_v55 = vld [vmem:[%s3857_s28 + $0x60] sm:$0xff] }
 0x332   : > { %5903 = vst [vmem:[#allocation80_spill] sm:$0xff] %v5305_v46 }
 0x336   : > { %v2887_v62 = vpop.f32.mrf.mxu1 }
 0x337   : > { %v2888_v60 = vadd.f32 %v2887_v62, %v2775_v28  ;;  %v2548_v62 = vld [vmem:[#allocation2 + $0xb1] sm:$0xff] }
 0x338   : > { %3182 = vmatmul.f32.gmra.mxu2 %v3711_v13  ;;  %v2580_v45 = vmul.f32 %v5904_v29, %v2548_v62  ;;  %v3712_v13 = vld [vmem:[%s3857_s28 + $0x30] sm:$0xff] }
 0x339   : > { %v2983_v11 = vadd.f32 %v2888_v60, %v4967_v48  ;;  %2934 = vmatmul.f32.gmra.mxu1 %v2547_v15  ;;  %v5317_v46 = vpop.f32.mrf.mxu3 }
 0x33b   : > { %v3019_v12 = vmul.f32 %v5297_v23, %v2983_v11 }
 0x33d   : > { %v3055_v28 = vadd.f32 %v5303_v31, %v3019_v12  ;;  %v5323_v12 = vpop.f32.mrf.mxu0 }
 0x33e   : > { %v2890_v48 = vpop.f32.mrf.mxu1 }
 0x33f   : > { %v3087_v60 = vmax.f32 %v3055_v28, 0.0  ;;  %v2891_v20 = vadd.f32 %v2890_v48, %v2778_v6  ;;  %v2550_v48 = vld [vmem:[#allocation2 + $0xc1] sm:$0xff] }
 0x340   : > { %3185 = vmatmul.f32.gmra.mxu2 %v3712_v13 }
 0x341   : > { %v2984_v15 = vadd.f32 %v2891_v20, %v4979_v22  ;;  %2937 = vmatmul.f32.gmra.mxu1 %v2580_v45  ;;  %3280 = vmatmul.f32.vlgmr.msra.gmra.mxu3 %v3087_v60  ;;  %v2549_v22 = vld [vmem:[#allocation2 + $0xb9] sm:$0xff]  ;;  %v5326_v20 = vpop.f32.mrf.mxu2 }
 0x342   : > { %v3713_v60 = vld [vmem:[%s3857_s28 + $0x38] sm:$0xff] }
 0x343   : > { %v3020_v11 = vmul.f32 %v5297_v23, %v2984_v15  ;;  %v5333_v15 = vpop.f32.mrf.mxu3 }
 0x345   : > { %v3056_v3 = vadd.f32 %v5303_v31, %v3020_v11 }
 0x346   : > { %v2893_v29 = vpop.f32.mrf.mxu1 }
 0x347   : > { %v2894_v62 = vadd.f32 %v2893_v29, %v2781_v4  ;;  %v3088_v6 = vmax.f32 %v3056_v3, 0.0  ;;  %v5336_v29 = vpop.f32.mrf.mxu0 }
 0x348   : > { %3188 = vmatmul.f32.gmra.mxu2 %v3713_v60 }
 0x349   : > { %v2985_v45 = vadd.f32 %v2894_v62, %v4992_v8  ;;  %2940 = vmatmul.f32.gmra.mxu1 %v2549_v22  ;;  %3283 = vmatmul.f32.gmra.mxu3 %v3088_v6  ;;  %v5905_v8 = vld [vmem:[#allocation13_spill] sm:$0xff]  ;;  %v5343_v24 = vpop.f32.mrf.mxu2 }
 0x34a   : > { %v2582_v4 = vmul.f32 %v5905_v8, %v2550_v48  ;;  %v3714_v22 = vld [vmem:[%s3857_s28 + $0x40] sm:$0xff]  ;;  %v2552_v8 = vld [vmem:[#allocation2 + $0xd1] sm:$0xff] }
 0x34b   : > { %v3021_v28 = vmul.f32 %v5297_v23, %v2985_v45 }
 0x34d   : > { %v3057_v25 = vadd.f32 %v5303_v31, %v3021_v28 }
 0x34e   : > { %v2896_v11 = vpop.f32.mrf.mxu1 }
 0x34f   : > { %v2897_v13 = vadd.f32 %v2896_v11, %v2784_v61  ;;  %v3089_v3 = vmax.f32 %v3057_v25, 0.0  ;;  %v5346_v61 = vpop.f32.mrf.mxu3  ;;  %v5349_v11 = vpop.f32.mrf.mxu0 }
 0x350   : > { %3191 = vmatmul.f32.gmra.mxu2 %v3714_v22 }
 0x351   : > { %v2986_v62 = vadd.f32 %v2897_v13, %v5002_v49  ;;  %2943 = vmatmul.f32.gmra.mxu1 %v2582_v4  ;;  %3286 = vmatmul.f32.gmra.mxu3 %v3089_v3  ;;  %v2551_v49 = vld [vmem:[#allocation2 + $0xc9] sm:$0xff] }
 0x353   : > { %v3022_v6 = vmul.f32 %v5297_v23, %v2986_v62  ;;  %v5356_v62 = vpop.f32.mrf.mxu2 }
 0x355   : > { %v3058_v45 = vadd.f32 %v5303_v31, %v3022_v6 }
 0x356   : > { %v2899_v28 = vpop.f32.mrf.mxu1 }
 0x357   : > { %v2900_v48 = vadd.f32 %v2899_v28, %v2787_v40  ;;  %v3090_v60 = vmax.f32 %v3058_v45, 0.0  ;;  %v5360_v28 = vpop.f32.mrf.mxu3 }
 0x358   : > { %3194 = vmatmul.f32.gmra.mxu2 %v3715_v18 }
 0x359   : > { %v2987_v25 = vadd.f32 %v2900_v48, %v5013_v47  ;;  %2946 = vmatmul.f32.gmra.mxu1 %v2551_v49  ;;  %3289 = vmatmul.f32.gmra.mxu3 %v3090_v60  ;;  %v5906_v47 = vld [vmem:[#allocation15_spill] sm:$0xff]  ;;  %v5363_v60 = vpop.f32.mrf.mxu0 }
 0x35a   : > { %v2584_v22 = vmul.f32 %v5906_v47, %v2552_v8  ;;  %v3717_v47 = vld [vmem:[%s3857_s28 + $0x58] sm:$0xff] }
 0x35b   : > { %v3023_v13 = vmul.f32 %v5297_v23, %v2987_v25  ;;  %v5369_v18 = vpop.f32.mrf.mxu2 }
 0x35d   : > { %v3059_v4 = vadd.f32 %v5303_v31, %v3023_v13 }
 0x35e   : > { %v2902_v3 = vpop.f32.mrf.mxu1 }
 0x35f   : > { %v2903_v6 = vadd.f32 %v2902_v3, %v2790_v17  ;;  %v3091_v40 = vmax.f32 %v3059_v4, 0.0  ;;  %v5373_v3 = vpop.f32.mrf.mxu3 }
 0x360   : > { %3197 = vmatmul.f32.gmra.mxu2 %v3716_v33 }
 0x361   : > { %v2988_v45 = vadd.f32 %v2903_v6, %v5023_v58  ;;  %2949 = vmatmul.f32.gmra.mxu1 %v2584_v22  ;;  %3292 = vmatmul.f32.gmra.mxu3 %v3091_v40  ;;  %v2553_v58 = vld [vmem:[#allocation2 + $0xd9] sm:$0xff]  ;;  %v2554_v6 = vld [vmem:[#allocation2 + $0xe1] sm:$0xff]  ;;  %v5379_v22 = vpop.f32.mrf.mxu0 }
 0x363   : > { %v3024_v48 = vmul.f32 %v5297_v23, %v2988_v45 }
 0x365   : > { %v3060_v49 = vadd.f32 %v5303_v31, %v3024_v48 }
 0x366   : > { %v2905_v25 = vpop.f32.mrf.mxu1 }
 0x367   : > { %v2906_v13 = vadd.f32 %v2905_v25, %v2793_v9  ;;  %v3092_v8 = vmax.f32 %v3060_v49, 0.0  ;;  %v5908_v9 = vld [vmem:[#allocation29_spill] sm:$0xff] }
 0x368   : > { %3200 = vmatmul.f32.gmra.mxu2 %v3717_v47  ;;  %v2138_v49 = vadd.f32 %v4858_v10, %v5908_v9 }
 0x369   : > { %v2989_v17 = vadd.f32 %v2906_v13, %v5036_v34  ;;  %2952 = vmatmul.f32.gmra.mxu1 %v2553_v58  ;;  %3295 = vmatmul.f32.gmra.mxu3 %v3092_v8  ;;  %v5907_v34 = vld [vmem:[#allocation19_spill] sm:$0xff]  ;;  %v5386_v8 = vpop.f32.mrf.mxu2  ;;  %v2799_v58 = vadd.f32 %v5323_v12, %v5177_v30 }
 0x36a   : > { %v2586_v48 = vmul.f32 %v5907_v34, %v2554_v6  ;;  %v2251_v13 = vadd.f32 %v5056_v14, %v2138_v49  ;;  %v5396_v14 = vpop.f32.mrf.mxu0  ;;  %v2556_v34 = vld [vmem:[#allocation2 + $0xf1] sm:$0xff] }
 0x36b   : > { %v3025_v4 = vmul.f32 %v5297_v23, %v2989_v17 }
 0x36d   : > { %v3061_v19 = vadd.f32 %v5303_v31, %v3025_v4  ;;  %v5393_v4 = vpop.f32.mrf.mxu3 }
 0x36e   : > { %v2908_v40 = vpop.f32.mrf.mxu1 }
 0x36f   : > { %v2909_v45 = vadd.f32 %v2908_v40, %v2796_v5  ;;  %v3093_v33 = vmax.f32 %v3061_v19, 0.0  ;;  %v2555_v5 = vld [vmem:[#allocation2 + $0xe9] sm:$0xff] }
 0x370   : > { %3203 = vmatmul.f32.gmra.mxu2 %v3718_v55  ;;  %v5909_v19 = vld [vmem:[#allocation31_spill] sm:$0xff] }
 0x371   : > { %v2990_v25 = vadd.f32 %v2909_v45, %v5046_v41  ;;  %2955 = vmatmul.f32.gmra.mxu1 %v2586_v48  ;;  %3298 = vmatmul.f32.gmra.mxu3 %v3093_v33  ;;  %v2364_v41 = vadd.f32 %v5137_v26, %v2251_v13  ;;  %v2141_v40 = vadd.f32 %v4869_v32, %v5909_v19  ;;  %v3719_v48 = vld [vmem:[%s3857_s28 + $0x68] sm:$0xff]  ;;  %v5405_v33 = vpop.f32.mrf.mxu2  ;;  %v5910_v13 = vld [vmem:[#allocation23_spill] sm:$0xff] }
 0x372   : > { %v2802_v26 = vadd.f32 %v5336_v29, %v5188_v38  ;;  %v5414_v38 = vpop.f32.mrf.mxu0 }
 0x373   : > { %v3026_v2 = vmul.f32 %v5297_v23, %v2990_v25  ;;  %v2254_v30 = vadd.f32 %v5064_v59, %v2141_v40 }
 0x375   : > { %v3062_v17 = vadd.f32 %v5303_v31, %v3026_v2  ;;  %v2367_v32 = vadd.f32 %v5145_v27, %v2254_v30  ;;  %v2588_v2 = vmul.f32 %v5910_v13, %v2556_v34  ;;  %v5410_v55 = vpop.f32.mrf.mxu3  ;;  %v2805_v27 = vadd.f32 %v5349_v11, %v5202_v44  ;;  %v2557_v30 = vld [vmem:[#allocation2 + $0xf9] sm:$0xff] }
 0x376   : > { %v2911_v10 = vpop.f32.mrf.mxu1 }
 0x377   : > { %v2912_v6 = vadd.f32 %v2911_v10, %v2799_v58  ;;  %v3094_v47 = vmax.f32 %v3062_v17, 0.0  ;;  %v5911_v58 = vld [vmem:[#allocation33_spill] sm:$0xff] }
 0x378   : > { %3206 = vmatmul.f32.gmra.mxu2 %v3719_v48  ;;  %v2144_v17 = vadd.f32 %v4891_v39, %v5911_v58  ;;  %v5914_v58 = vld [vmem:[#allocation35_spill] sm:$0xff] }
 0x379   : > { %v2991_v45 = vadd.f32 %v2912_v6, %v2364_v41  ;;  %2958 = vmatmul.f32.gmra.mxu1 %v2555_v5  ;;  %3301 = vmatmul.f32.gmra.mxu3 %v3094_v47  ;;  %v3720_v6 = vld [vmem:[%s3857_s28 + $0x70] sm:$0xff]  ;;  %v5423_v19 = vpop.f32.mrf.mxu2 }
 0x37a   : > { %v2257_v29 = vadd.f32 %v5077_v36, %v2144_v17  ;;  %v2150_v17 = vadd.f32 %v4922_v57, %v5914_v58 }
 0x37b   : > { %v3027_v12 = vmul.f32 %v5297_v23, %v2991_v45 }
 0x37c   : > { %v2370_v39 = vadd.f32 %v5158_v54, %v2257_v29  ;;  %v2558_v54 = vld [vmem:[#allocation2 + $0x101] sm:$0xff] }
 0x37d   : > { %v3063_v9 = vadd.f32 %v5303_v31, %v3027_v12  ;;  %v5912_v12 = vld [vmem:[#allocation34_spill] sm:$0xff]  ;;  %v5427_v48 = vpop.f32.mrf.mxu3 }
 0x37e   : > { %v2914_v49 = vpop.f32.mrf.mxu1  ;;  %v2147_v36 = vadd.f32 %v4915_v43, %v5912_v12 }
 0x37f   : > { %v2915_v25 = vadd.f32 %v2914_v49, %v2802_v26  ;;  %v3095_v59 = vmax.f32 %v3063_v9, 0.0  ;;  %v5431_v26 = vpop.f32.mrf.mxu0  ;;  %v3721_v9 = vld [vmem:[%s3857_s28 + $0x78] sm:$0xff]  ;;  %v2808_v49 = vadd.f32 %v5363_v60, %v5217_v7 }
 0x380   : > { %3209 = vmatmul.f32.gmra.mxu2 %v3720_v6  ;;  %v2260_v44 = vadd.f32 %v5087_v56, %v2147_v36  ;;  %v3722_v6 = vld [vmem:[%s3857_s28 + $0x80] sm:$0xff]  ;;  %v2560_v36 = vld [vmem:[#allocation2 + $0x111] sm:$0xff] }
 0x381   : > { %v2992_v10 = vadd.f32 %v2915_v25, %v2367_v32  ;;  %2961 = vmatmul.f32.gmra.mxu1 %v2588_v2  ;;  %3304 = vmatmul.f32.gmra.mxu3 %v3095_v59  ;;  %v5913_v2 = vld [vmem:[#allocation28_spill] sm:$0xff] }
 0x382   : > { %v2373_v25 = vadd.f32 %v5173_v52, %v2260_v44  ;;  %v2590_v59 = vmul.f32 %v5913_v2, %v2558_v54  ;;  %v2811_v52 = vadd.f32 %v5379_v22, %v5225_v16 }
 0x383   : > { %v3028_v41 = vmul.f32 %v5297_v23, %v2992_v10  ;;  %v5441_v10 = vpop.f32.mrf.mxu2 }
 0x385   : > { %v3064_v47 = vadd.f32 %v5303_v31, %v3028_v41  ;;  %v2263_v41 = vadd.f32 %v5099_v21, %v2150_v17  ;;  %v5445_v60 = vpop.f32.mrf.mxu3  ;;  %v2559_v21 = vld [vmem:[#allocation2 + $0x109] sm:$0xff] }
 0x386   : > { %v2917_v5 = vpop.f32.mrf.mxu1 }
 0x387   : > { %v2918_v40 = vadd.f32 %v2917_v5, %v2805_v27  ;;  %v3096_v45 = vmax.f32 %v3064_v47, 0.0  ;;  %v5451_v57 = vpop.f32.mrf.mxu0  ;;  %v2376_v5 = vadd.f32 %v5181_v51, %v2263_v41  ;;  %v2814_v51 = vadd.f32 %v5396_v14, %v5242_v37  ;;  %v5916_v37 = vld [vmem:[#allocation14_spill] sm:$0xff] }
 0x388   : > { %3212 = vmatmul.f32.gmra.mxu2 %v3721_v9 }
 0x389   : > { %v2993_v34 = vadd.f32 %v2918_v40, %v2370_v39  ;;  %2964 = vmatmul.f32.gmra.mxu1 %v2557_v30  ;;  %3307 = vmatmul.f32.gmra.mxu3 %v3096_v45  ;;  %v2153_v45 = vadd.f32 %v4933_v0, %v4783_v42 }
 0x38b   : > { %v3029_v11 = vmul.f32 %v5297_v23, %v2993_v34  ;;  %v2266_v12 = vadd.f32 %v5106_v1, %v2153_v45  ;;  %v5457_v16 = vpop.f32.mrf.mxu2  ;;  %v3723_v34 = vld [vmem:[%s3857_s28 + $0x88] sm:$0xff]  ;;  %v5915_v1 = vld [vmem:[#allocation32_spill] sm:$0xff] }
 0x38c   : > { %v2592_v9 = vmul.f32 %v5915_v1, %v2560_v36 }
 0x38d   : > { %v3065_v43 = vadd.f32 %v5303_v31, %v3029_v11  ;;  %v5464_v11 = vpop.f32.mrf.mxu3  ;;  %v2379_v0 = vadd.f32 %v5198_v35, %v2266_v12  ;;  %v5917_v35 = vld [vmem:[#allocation7_spill] sm:$0xff]  ;;  %v3725_v12 = vld [vmem:[%s3857_s28 + $0x98] sm:$0xff] }
 0x38e   : > { %v2920_v32 = vpop.f32.mrf.mxu1 }
 0x38f   : > { %v2921_v13 = vadd.f32 %v2920_v32, %v2808_v49  ;;  %v3097_v56 = vmax.f32 %v3065_v43, 0.0  ;;  %v2825_v43 = vpop.f32.mrf.mxu0  ;;  %v2156_v32 = vadd.f32 %v4946_v53, %v4788_v50  ;;  %v5918_v50 = vld [vmem:[#allocation5_spill] sm:$0xff] }
 0x390   : > { %3215 = vmatmul.f32.gmra.mxu2 %v3722_v6 }
 0x391   : > { %v2994_v29 = vadd.f32 %v2921_v13, %v2373_v25  ;;  %2967 = vmatmul.f32.gmra.mxu1 %v2590_v59  ;;  %3310 = vmatmul.f32.gmra.mxu3 %v3097_v56  ;;  %v2269_v14 = vadd.f32 %v5916_v37, %v2156_v32  ;;  %v3724_v59 = vld [vmem:[%s3857_s28 + $0x90] sm:$0xff]  ;;  %v2817_v56 = vadd.f32 %v5414_v38, %v5917_v35  ;;  %v5921_v38 = vld [vmem:[#allocation18_spill] sm:$0xff] }
 0x392   : > { %v5926_v32 = vld [vmem:[#allocation54_spill] sm:$0xff] }
 0x393   : > { %v3030_v7 = vmul.f32 %v5297_v23, %v2994_v29  ;;  %v5472_v2 = vpop.f32.mrf.mxu2  ;;  %v2561_v29 = vld [vmem:[#allocation2 + $0x119] sm:$0xff]  ;;  %v2382_v53 = vadd.f32 %v5918_v50, %v2269_v14 }
 0x395   : > { %v3066_v27 = vadd.f32 %v5303_v31, %v3030_v7  ;;  %v5479_v6 = vpop.f32.mrf.mxu3 }
 0x396   : > { %v2923_v47 = vpop.f32.mrf.mxu1 }
 0x397   : > { %v2924_v39 = vadd.f32 %v2923_v47, %v2811_v52  ;;  %v3098_v40 = vmax.f32 %v3066_v27, 0.0  ;;  %v5919_v52 = vld [vmem:[#allocation37_spill] sm:$0xff]  ;;  %v5920_v27 = vld [vmem:[#allocation52_spill] sm:$0xff] }
 0x398   : > { %3218 = vmatmul.f32.gmra.mxu2 %v3723_v34  ;;  %v2159_v47 = vadd.f32 %v5920_v27, %v5919_v52  ;;  %v5923_v34 = vld [vmem:[#allocation36_spill] sm:$0xff] }
 0x399   : > { %v2995_v30 = vadd.f32 %v2924_v39, %v2376_v5  ;;  %2970 = vmatmul.f32.gmra.mxu1 %v2559_v21  ;;  %3313 = vmatmul.f32.gmra.mxu3 %v3098_v40  ;;  %v2828_v39 = vpop.f32.mrf.mxu0  ;;  %v2562_v40 = vld [vmem:[#allocation2 + $0x121] sm:$0xff] }
 0x39a   : > { %v2272_v21 = vadd.f32 %v5921_v38, %v2159_v47  ;;  %v5930_v47 = vld [vmem:[#allocation39_spill] sm:$0xff] }
 0x39b   : > { %v3031_v22 = vmul.f32 %v5297_v23, %v2995_v30  ;;  %v5485_v30 = vpop.f32.mrf.mxu2 }
 0x39d   : > { %v3067_v44 = vadd.f32 %v5303_v31, %v3031_v22  ;;  %v5922_v22 = vld [vmem:[#allocation73_spill] sm:$0xff]  ;;  %v5495_v14 = vpop.f32.mrf.mxu3 }
 0x39e   : > { %v2926_v42 = vpop.f32.mrf.mxu1  ;;  %v2820_v36 = vadd.f32 %v5431_v26, %v5922_v22 }
 0x39f   : > { %v2927_v54 = vadd.f32 %v2926_v42, %v2814_v51  ;;  %v3099_v49 = vmax.f32 %v3067_v44, 0.0  ;;  %v2594_v51 = vmul.f32 %v5923_v34, %v2562_v40  ;;  %v5933_v34 = vld [vmem:[#allocation9_spill] sm:$0xff] }
 0x3a0   : > { %3221 = vmatmul.f32.gmra.mxu2 %v3724_v59 }
 0x3a1   : > { %v2996_v25 = vadd.f32 %v2927_v54, %v2379_v0  ;;  %2973 = vmatmul.f32.gmra.mxu1 %v2592_v9  ;;  %3316 = vmatmul.f32.gmra.mxu3 %v3099_v49  ;;  %v5924_v0 = vld [vmem:[#allocation66_spill] sm:$0xff] }
 0x3a2   : > { %v2385_v54 = vadd.f32 %v5924_v0, %v2272_v21  ;;  %v5925_v49 = vld [vmem:[#allocation38_spill] sm:$0xff] }
 0x3a3   : > { %v3032_v13 = vmul.f32 %v5297_v23, %v2996_v25  ;;  %v2162_v25 = vadd.f32 %v5926_v32, %v5925_v49  ;;  %v5499_v35 = vpop.f32.mrf.mxu2  ;;  %v5935_v32 = vld [vmem:[#allocation40_spill] sm:$0xff] }
 0x3a5   : > { %v3068_v58 = vadd.f32 %v5303_v31, %v3032_v13  ;;  %v5927_v13 = vld [vmem:[#allocation24_spill] sm:$0xff]  ;;  %v5508_v21 = vpop.f32.mrf.mxu3 }
 0x3a6   : > { %v2929_v17 = vpop.f32.mrf.mxu1  ;;  %v2275_v26 = vadd.f32 %v5927_v13, %v2162_v25  ;;  %v5936_v25 = vld [vmem:[#allocation17_spill] sm:$0xff] }
 0x3a7   : > { %v2930_v41 = vadd.f32 %v2929_v17, %v2817_v56  ;;  %v3100_v7 = vmax.f32 %v3068_v58, 0.0  ;;  %v2831_v56 = vpop.f32.mrf.mxu0  ;;  %v3726_v58 = vld [vmem:[%s3857_s28 + $0xa0] sm:$0xff]  ;;  %v5928_v17 = vld [vmem:[#allocation75_spill] sm:$0xff] }
 0x3a8   : > { %3224 = vmatmul.f32.gmra.mxu2 %v3725_v12 }
 0x3a9   : > { %v2997_v5 = vadd.f32 %v2930_v41, %v2382_v53  ;;  %2976 = vmatmul.f32.gmra.mxu1 %v2561_v29  ;;  %3319 = vmatmul.f32.gmra.mxu3 %v3100_v7  ;;  %v2823_v29 = vadd.f32 %v5451_v57, %v5928_v17  ;;  %v5929_v41 = vld [vmem:[#allocation6_spill] sm:$0xff] }
 0x3aa   : > { %v2388_v7 = vadd.f32 %v5929_v41, %v2275_v26  ;;  %v3727_v57 = vld [vmem:[%s3857_s28 + $0xa8] sm:$0xff]  ;;  %v5937_v26 = vld [vmem:[#allocation59_spill] sm:$0xff] }
 0x3ab   : > { %v3033_v45 = vmul.f32 %v5297_v23, %v2997_v5  ;;  %v5931_v5 = vld [vmem:[#allocation56_spill] sm:$0xff] }
 0x3ac   : > { %v2165_v40 = vadd.f32 %v5931_v5, %v5930_v47  ;;  %v5939_v47 = vld [vmem:[#allocation72_spill] sm:$0xff] }
 0x3ad   : > { %v3069_v44 = vadd.f32 %v5303_v31, %v3033_v45  ;;  %v5932_v45 = vld [vmem:[#allocation57_spill] sm:$0xff] }
 0x3ae   : > { %v2932_v42 = vpop.f32.mrf.mxu1  ;;  %v2278_v12 = vadd.f32 %v5932_v45, %v2165_v40 }
 0x3af   : > { %v2933_v1 = vadd.f32 %v2932_v42, %v2820_v36  ;;  %v3101_v9 = vmax.f32 %v3069_v44, 0.0  ;;  %v5512_v36 = vpop.f32.mrf.mxu2  ;;  %v2834_v42 = vpop.f32.mrf.mxu0 }
 0x3b0   : > { %3227 = vmatmul.f32.gmra.mxu2 %v3726_v58 }
 0x3b1   : > { %v2998_v37 = vadd.f32 %v2933_v1, %v2385_v54  ;;  %2979 = vmatmul.f32.gmra.mxu1 %v2594_v51  ;;  %3322 = vmatmul.f32.gmra.mxu3 %v3101_v9  ;;  %v2826_v51 = vadd.f32 %v2825_v43, %v5933_v34  ;;  %v5934_v54 = vld [vmem:[#allocation70_spill] sm:$0xff]  ;;  %v5525_v43 = vld [vmem:[%s5759_s11] ss:$0 sm:$0xff] }
 0x3b2   : > { %v2391_v1 = vadd.f32 %v5934_v54, %v2278_v12  ;;  %v5940_v12 = vld [vmem:[#allocation41_spill] sm:$0xff] }
 0x3b3   : > { %v3034_v59 = vmul.f32 %v5297_v23, %v2998_v37  ;;  %v2168_v37 = vadd.f32 %v5936_v25, %v5935_v32  ;;  %v5942_v34 = vld [vmem:[#allocation61_spill] sm:$0xff] }
 0x3b5   : > { %v3070_v50 = vadd.f32 %v5303_v31, %v3034_v59  ;;  %v2281_v59 = vadd.f32 %v5937_v26, %v2168_v37  ;;  %v5943_v37 = vld [vmem:[#allocation8_spill] sm:$0xff] }
 0x3b6   : > { %v2935_v53 = vpop.f32.mrf.mxu1 }
 0x3b7   : > { %v2936_v52 = vadd.f32 %v2935_v53, %v2823_v29  ;;  %v3102_v27 = vmax.f32 %v3070_v50, 0.0  ;;  %v5527_v17 = vpop.f32.mrf.mxu2  ;;  %v3728_v50 = vld [vmem:[%s3857_s28 + $0xb0] sm:$0xff]  ;;  %v5938_v53 = vld [vmem:[#allocation80_spill] sm:$0xff]  ;;  %v2394_v5 = vadd.f32 %v5939_v47, %v2281_v59  ;;  %v3730_v47 = vld [vmem:[%s3857_s28 + $0xc0] sm:$0xff] }
 0x3b8   : > { %3230 = vmatmul.f32.gmra.mxu2 %v3727_v57  ;;  %v2829_v41 = vadd.f32 %v2828_v39, %v5938_v53  ;;  %v2837_v39 = vpop.f32.mrf.mxu0 }
 0x3b9   : > { %v2999_v38 = vadd.f32 %v2936_v52, %v2388_v7  ;;  %3325 = vmatmul.f32.gmra.mxu3 %v3102_v27 }
 0x3bb   : > { %v3035_v22 = vmul.f32 %v5297_v23, %v2999_v38 }
 0x3bd   : > { %v3071_v44 = vadd.f32 %v5303_v31, %v3035_v22 }
 0x3be   : > { %v2938_v0 = vpop.f32.mrf.mxu1 }
 0x3bf   : > { %v2939_v9 = vadd.f32 %v2938_v0, %v2826_v51  ;;  %v3103_v49 = vmax.f32 %v3071_v44, 0.0  ;;  %v5547_v0 = vpop.f32.mrf.mxu2 }
 0x3c0   : > { %3233 = vmatmul.f32.gmra.mxu2 %v3728_v50  ;;  %v5945_v50 = vld [vmem:[#allocation20_spill] sm:$0xff] }
 0x3c1   : > { %v3000_v13 = vadd.f32 %v2939_v9, %v2391_v1  ;;  %3328 = vmatmul.f32.gmra.mxu3 %v3103_v49  ;;  %v3729_v1 = vld [vmem:[%s3857_s28 + $0xb8] sm:$0xff]  ;;  %v2832_v9 = vadd.f32 %v2831_v56, %v5317_v46  ;;  %v5946_v46 = vld [vmem:[#allocation62_spill] sm:$0xff] }
 0x3c3   : > { %v3036_v58 = vmul.f32 %v5297_v23, %v3000_v13 }
 0x3c4   : > { %v3281_v29 = vpop.f32.mrf.mxu3 }
 0x3c5   : > { %v3282_v7 = vadd.f32 %v3281_v29, %v5472_v2  ;;  %v3072_v52 = vadd.f32 %v5303_v31, %v3036_v58  ;;  %v5941_v2 = vld [vmem:[#allocation10_spill] sm:$0xff] }
 0x3c6   : > { %v2941_v27 = vpop.f32.mrf.mxu1  ;;  %v2171_v22 = vadd.f32 %v5941_v2, %v5940_v12  ;;  %v5944_v29 = vld [vmem:[#allocation42_spill] sm:$0xff]  ;;  %v5947_v12 = vld [vmem:[#allocation77_spill] sm:$0xff] }
 0x3c7   : > { %v3381_v40 = vadd.f32 %v5525_v43, %v3282_v7  ;;  %v2942_v38 = vadd.f32 %v2941_v27, %v2829_v41  ;;  %v3104_v45 = vmax.f32 %v3072_v52, 0.0  ;;  %v2174_v53 = vadd.f32 %v5945_v50, %v5944_v29  ;;  %v2840_v7 = vpop.f32.mrf.mxu0  ;;  %v5560_v52 = vpop.f32.mrf.mxu2 }
 0x3c8   : > { %v2284_v51 = vadd.f32 %v5942_v34, %v2171_v22  ;;  %3236 = vmatmul.f32.gmra.mxu2 %v3729_v1 }
 0x3c9   : > { %3413 = vst [vmem:[%s5538_s26] sm:$0xff] %v3381_v40  ;;  %v3001_v57 = vadd.f32 %v2942_v38, %v2394_v5  ;;  %3331 = vmatmul.f32.gmra.mxu3 %v3104_v45  ;;  %v2835_v5 = vadd.f32 %v2834_v42, %v5333_v15 }
 0x3ca   : > { %v2397_v13 = vadd.f32 %v5943_v37, %v2284_v51  ;;  %v5948_v51 = vld [vmem:[#allocation43_spill] sm:$0xff]  ;;  %v2838_v37 = vadd.f32 %v2837_v39, %v5346_v61 }
 0x3cb   : > { %v3037_v44 = vmul.f32 %v5297_v23, %v3001_v57 }
 0x3cc   : > { %v3284_v54 = vpop.f32.mrf.mxu3 }
 0x3cd   : > { %v3285_v49 = vadd.f32 %v3284_v54, %v5485_v30  ;;  %v3073_v32 = vadd.f32 %v5303_v31, %v3037_v44  ;;  %v2287_v30 = vadd.f32 %v5946_v46, %v2174_v53  ;;  %v5949_v44 = vld [vmem:[#allocation16_spill] sm:$0xff] }
 0x3ce   : > { %v2944_v25 = vpop.f32.mrf.mxu1  ;;  %v2177_v54 = vadd.f32 %v5949_v44, %v5948_v51  ;;  %v5952_v46 = vld [vmem:[#allocation44_spill] sm:$0xff] }
 0x3cf   : > { %v3382_v26 = vadd.f32 %v5525_v43, %v3285_v49  ;;  %v2945_v59 = vadd.f32 %v2944_v25, %v2832_v9  ;;  %v3105_v58 = vmax.f32 %v3073_v32, 0.0  ;;  %v2400_v2 = vadd.f32 %v5947_v12, %v2287_v30  ;;  %v5950_v9 = vld [vmem:[#allocation63_spill] sm:$0xff]  ;;  %v5573_v42 = vpop.f32.mrf.mxu2  ;;  %v2843_v49 = vpop.f32.mrf.mxu0  ;;  %v3731_v25 = vld [vmem:[%s3857_s28 + $0xc8] sm:$0xff] }
 0x3d0   : > { %3239 = vmatmul.f32.gmra.mxu2 %v3730_v47  ;;  %v2290_v15 = vadd.f32 %v5950_v9, %v2177_v54  ;;  %v5953_v30 = vld [vmem:[#allocation22_spill] sm:$0xff]  ;;  %v5954_v47 = vld [vmem:[#allocation4_spill] sm:$0xff]  ;;  %v5955_v54 = vld [vmem:[#allocation45_spill] sm:$0xff] }
 0x3d1   : > { %3414 = vst [vmem:[%s5538_s26 + $0x8] sm:$0xff] %v3382_v26  ;;  %v3002_v41 = vadd.f32 %v2945_v59, %v2397_v13  ;;  %3334 = vmatmul.f32.gmra.mxu3 %v3105_v58  ;;  %v5951_v58 = vld [vmem:[#allocation79_spill] sm:$0xff] }
 0x3d2   : > { %v2403_v29 = vadd.f32 %v5951_v58, %v2290_v15 }
 0x3d3   : > { %v3038_v56 = vmul.f32 %v5297_v23, %v3002_v41 }
 0x3d4   : > { %v3287_v27 = vpop.f32.mrf.mxu3 }
 0x3d5   : > { %v3288_v40 = vadd.f32 %v3287_v27, %v5499_v35  ;;  %v3074_v38 = vadd.f32 %v5303_v31, %v3038_v56  ;;  %v2180_v56 = vadd.f32 %v5953_v30, %v5952_v46  ;;  %v5959_v46 = vld [vmem:[#allocation25_spill] sm:$0xff] }
 0x3d6   : > { %v2947_v45 = vpop.f32.mrf.mxu1 }
 0x3d7   : > { %v3383_v22 = vadd.f32 %v5525_v43, %v3288_v40  ;;  %v2948_v57 = vadd.f32 %v2947_v45, %v2835_v5  ;;  %v3106_v34 = vmax.f32 %v3074_v38, 0.0  ;;  %v2293_v61 = vadd.f32 %v5954_v47, %v2180_v56  ;;  %v5586_v39 = vpop.f32.mrf.mxu2  ;;  %v3732_v40 = vld [vmem:[%s3857_s28 + $0xd0] sm:$0xff] }
 0x3d8   : > { %3242 = vmatmul.f32.gmra.mxu2 %v3731_v25  ;;  %v2841_v38 = vadd.f32 %v2840_v7, %v5360_v28  ;;  %v5957_v28 = vld [vmem:[#allocation64_spill] sm:$0xff] }
 0x3d9   : > { %3415 = vst [vmem:[%s5538_s26 + $0x10] sm:$0xff] %v3383_v22  ;;  %v3003_v1 = vadd.f32 %v2948_v57, %v2400_v2  ;;  %3337 = vmatmul.f32.gmra.mxu3 %v3106_v34  ;;  %v2846_v2 = vpop.f32.mrf.mxu0  ;;  %v2406_v57 = vadd.f32 %v5313_v63, %v2293_v61  ;;  %v3733_v25 = vld [vmem:[%s3857_s28 + $0xd8] sm:$0xff]  ;;  %v2844_v63 = vadd.f32 %v2843_v49, %v5373_v3  ;;  %v5960_v3 = vld [vmem:[#allocation65_spill] sm:$0xff] }
 0x3da   : > { %v2847_v61 = vadd.f32 %v2846_v2, %v5393_v4  ;;  %v5963_v4 = vld [vmem:[#allocation67_spill] sm:$0xff] }
 0x3db   : > { %v3039_v35 = vmul.f32 %v5297_v23, %v3003_v1  ;;  %v5956_v1 = vld [vmem:[#allocation12_spill] sm:$0xff] }
 0x3dc   : > { %v3290_v32 = vpop.f32.mrf.mxu3  ;;  %v2183_v9 = vadd.f32 %v5956_v1, %v5955_v54 }
 0x3dd   : > { %v3291_v13 = vadd.f32 %v3290_v32, %v5512_v36  ;;  %v3075_v26 = vadd.f32 %v5303_v31, %v3039_v35 }
 0x3de   : > { %v2950_v59 = vpop.f32.mrf.mxu1  ;;  %v2296_v7 = vadd.f32 %v5957_v28, %v2183_v9 }
 0x3df   : > { %v3384_v50 = vadd.f32 %v5525_v43, %v3291_v13  ;;  %v2951_v53 = vadd.f32 %v2950_v59, %v2838_v37  ;;  %v3107_v41 = vmax.f32 %v3075_v26, 0.0  ;;  %v5599_v35 = vpop.f32.mrf.mxu2 }
 0x3e0   : > { %3245 = vmatmul.f32.gmra.mxu2 %v3732_v40  ;;  %v2409_v59 = vadd.f32 %v5326_v20, %v2296_v7  ;;  %v3734_v20 = vld [vmem:[%s3857_s28 + $0xe0] sm:$0xff] }
 0x3e1   : > { %3416 = vst [vmem:[%s5538_s26 + $0x18] sm:$0xff] %v3384_v50  ;;  %v3004_v27 = vadd.f32 %v2951_v53, %v2403_v29  ;;  %3340 = vmatmul.f32.gmra.mxu3 %v3107_v41  ;;  %v2849_v53 = vpop.f32.mrf.mxu0  ;;  %v5958_v41 = vld [vmem:[#allocation46_spill] sm:$0xff] }
 0x3e2   : > { %v2186_v30 = vadd.f32 %v5959_v46, %v5958_v41 }
 0x3e3   : > { %v3040_v36 = vmul.f32 %v5297_v23, %v3004_v27 }
 0x3e4   : > { %v3293_v5 = vpop.f32.mrf.mxu3 }
 0x3e5   : > { %v3294_v45 = vadd.f32 %v3293_v5, %v5527_v17  ;;  %v3076_v12 = vadd.f32 %v5303_v31, %v3040_v36 }
 0x3e6   : > { %v2953_v22 = vpop.f32.mrf.mxu1 }
 0x3e7   : > { %v3385_v34 = vadd.f32 %v5525_v43, %v3294_v45  ;;  %v2954_v51 = vadd.f32 %v2953_v22, %v2841_v38  ;;  %v3108_v44 = vmax.f32 %v3076_v12, 0.0  ;;  %v5612_v27 = vpop.f32.mrf.mxu2 }
 0x3e8   : > { %3248 = vmatmul.f32.gmra.mxu2 %v3733_v25 }
 0x3e9   : > { %3417 = vst [vmem:[%s5538_s26 + $0x20] sm:$0xff] %v3385_v34  ;;  %v3005_v15 = vadd.f32 %v2954_v51, %v2406_v57  ;;  %3343 = vmatmul.f32.gmra.mxu3 %v3108_v44  ;;  %v5961_v57 = vld [vmem:[#allocation47_spill] sm:$0xff]  ;;  %v5962_v34 = vld [vmem:[#allocation21_spill] sm:$0xff]  ;;  %v2852_v54 = vpop.f32.mrf.mxu0 }
 0x3ea   : > { %v2189_v51 = vadd.f32 %v5962_v34, %v5961_v57  ;;  %v2853_v46 = vadd.f32 %v2852_v54, %v5427_v48 }
 0x3eb   : > { %v3041_v17 = vmul.f32 %v5297_v23, %v3005_v15  ;;  %v2850_v15 = vadd.f32 %v2849_v53, %v5410_v55 }
 0x3ec   : > { %v3296_v32 = vpop.f32.mrf.mxu3 }
 0x3ed   : > { %v3297_v37 = vadd.f32 %v3296_v32, %v5547_v0  ;;  %v3077_v13 = vadd.f32 %v5303_v31, %v3041_v17  ;;  %v2299_v0 = vadd.f32 %v5960_v3, %v2186_v30 }
 0x3ee   : > { %v2956_v26 = vpop.f32.mrf.mxu1 }
 0x3ef   : > { %v3386_v58 = vadd.f32 %v5525_v43, %v3297_v37  ;;  %v2957_v29 = vadd.f32 %v2956_v26, %v2844_v63  ;;  %v3109_v50 = vmax.f32 %v3077_v13, 0.0  ;;  %v2412_v38 = vadd.f32 %v5343_v24, %v2299_v0  ;;  %v5625_v1 = vpop.f32.mrf.mxu2  ;;  %v3735_v24 = vld [vmem:[%s3857_s28 + $0xe8] sm:$0xff]  ;;  %v5964_v13 = vld [vmem:[#allocation48_spill] sm:$0xff]  ;;  %v5965_v26 = vld [vmem:[#allocation27_spill] sm:$0xff] }
 0x3f0   : > { %3251 = vmatmul.f32.gmra.mxu2 %v3734_v20 }
 0x3f1   : > { %3418 = vst [vmem:[%s5538_s26 + $0x28] sm:$0xff] %v3386_v58  ;;  %v3006_v56 = vadd.f32 %v2957_v29, %v2409_v59  ;;  %3346 = vmatmul.f32.gmra.mxu3 %v3109_v50  ;;  %v2192_v59 = vadd.f32 %v5965_v26, %v5964_v13  ;;  %v5966_v29 = vld [vmem:[#allocation68_spill] sm:$0xff]  ;;  %v2855_v53 = vpop.f32.mrf.mxu0 }
 0x3f3   : > { %v3042_v49 = vmul.f32 %v5297_v23, %v3006_v56  ;;  %v2305_v55 = vadd.f32 %v5966_v29, %v2192_v59 }
 0x3f4   : > { %v3299_v47 = vpop.f32.mrf.mxu3 }
 0x3f5   : > { %v3300_v36 = vadd.f32 %v3299_v47, %v5560_v52  ;;  %v3078_v5 = vadd.f32 %v5303_v31, %v3042_v49  ;;  %v2302_v52 = vadd.f32 %v5963_v4, %v2189_v51  ;;  %v2418_v0 = vadd.f32 %v5369_v18, %v2305_v55  ;;  %v5973_v55 = vld [vmem:[#allocation51_spill] sm:$0xff] }
 0x3f6   : > { %v2959_v40 = vpop.f32.mrf.mxu1  ;;  %v2856_v18 = vadd.f32 %v2855_v53, %v5445_v60  ;;  %v5972_v60 = vld [vmem:[#allocation71_spill] sm:$0xff] }
 0x3f7   : > { %v3387_v45 = vadd.f32 %v5525_v43, %v3300_v36  ;;  %v2960_v12 = vadd.f32 %v2959_v40, %v2847_v61  ;;  %v3110_v22 = vmax.f32 %v3078_v5, 0.0  ;;  %v2415_v32 = vadd.f32 %v5356_v62, %v2302_v52  ;;  %v5638_v50 = vpop.f32.mrf.mxu2  ;;  %v3736_v62 = vld [vmem:[%s3857_s28 + $0xf0] sm:$0xff]  ;;  %v5967_v61 = vld [vmem:[#allocation49_spill] sm:$0xff]  ;;  %v5968_v36 = vld [vmem:[#allocation26_spill] sm:$0xff] }
 0x3f8   : > { %3254 = vmatmul.f32.gmra.mxu2 %v3735_v24  ;;  %v2195_v5 = vadd.f32 %v5968_v36, %v5967_v61  ;;  %v5971_v24 = vld [vmem:[#allocation30_spill] sm:$0xff]  ;;  %v5976_v36 = vld [vmem:[#allocation53_spill] sm:$0xff] }
 0x3f9   : > { %3419 = vst [vmem:[%s5538_s26 + $0x30] sm:$0xff] %v3387_v45  ;;  %v3007_v44 = vadd.f32 %v2960_v12, %v2412_v38  ;;  %3349 = vmatmul.f32.gmra.mxu3 %v3110_v22  ;;  %v5969_v38 = vld [vmem:[#allocation69_spill] sm:$0xff]  ;;  %v3737_v22 = vld [vmem:[%s3857_s28 + $0xf8] sm:$0xff]  ;;  %v2858_v51 = vpop.f32.mrf.mxu0 }
 0x3fa   : > { %v2308_v48 = vadd.f32 %v5969_v38, %v2195_v5  ;;  %v5977_v5 = vld [vmem:[#allocation60_spill] sm:$0xff] }
 0x3fb   : > { %v3043_v2 = vmul.f32 %v5297_v23, %v3007_v44 }
 0x3fc   : > { %v3302_v9 = vpop.f32.mrf.mxu3  ;;  %v2421_v54 = vadd.f32 %v5386_v8, %v2308_v48  ;;  %v2859_v8 = vadd.f32 %v2858_v51, %v5464_v11  ;;  %v5975_v11 = vld [vmem:[#allocation74_spill] sm:$0xff] }
 0x3fd   : > { %v3303_v28 = vadd.f32 %v3302_v9, %v5573_v42  ;;  %v3079_v7 = vadd.f32 %v5303_v31, %v3043_v2  ;;  %v5970_v9 = vld [vmem:[#allocation50_spill] sm:$0xff] }
 0x3fe   : > { %v2962_v17 = vpop.f32.mrf.mxu1 }
 0x3ff   : > { %v3388_v25 = vadd.f32 %v5525_v43, %v3303_v28  ;;  %v2963_v63 = vadd.f32 %v2962_v17, %v2850_v15  ;;  %v3111_v37 = vmax.f32 %v3079_v7, 0.0  ;;  %v5651_v45 = vpop.f32.mrf.mxu2  ;;  %v2198_v15 = vadd.f32 %v5971_v24, %v5970_v9 }
 0x400   : > { %3257 = vmatmul.f32.gmra.mxu2 %v3736_v62 }
 0x401   : > { %3420 = vst [vmem:[%s5538_s26 + $0x38] sm:$0xff] %v3388_v25  ;;  %v3008_v58 = vadd.f32 %v2963_v63, %v2415_v32  ;;  %3352 = vmatmul.f32.gmra.mxu3 %v3111_v37  ;;  %v2311_v7 = vadd.f32 %v5972_v60, %v2198_v15  ;;  %v2861_v29 = vpop.f32.mrf.mxu0 }
 0x403   : > { %v3044_v42 = vmul.f32 %v5297_v23, %v3008_v58  ;;  %v2424_v13 = vadd.f32 %v5405_v33, %v2311_v7  ;;  %v2862_v33 = vadd.f32 %v2861_v29, %v5479_v6  ;;  %v5978_v6 = vld [vmem:[#allocation76_spill] sm:$0xff] }
 0x404   : > { %v3305_v41 = vpop.f32.mrf.mxu3 }
 0x405   : > { %v3306_v30 = vadd.f32 %v3305_v41, %v5586_v39  ;;  %v3080_v56 = vadd.f32 %v5303_v31, %v3044_v42  ;;  %v5974_v42 = vld [vmem:[#allocation58_spill] sm:$0xff] }
 0x406   : > { %v2965_v3 = vpop.f32.mrf.mxu1  ;;  %v2201_v53 = vadd.f32 %v5974_v42, %v5973_v55 }
 0x407   : > { %v3389_v49 = vadd.f32 %v5525_v43, %v3306_v30  ;;  %v2966_v47 = vadd.f32 %v2965_v3, %v2853_v46  ;;  %v3112_v20 = vmax.f32 %v3080_v56, 0.0  ;;  %v5664_v17 = vpop.f32.mrf.mxu2 }
 0x408   : > { %3260 = vmatmul.f32.gmra.mxu2 %v3737_v22  ;;  %v2314_v62 = vadd.f32 %v5975_v11, %v2201_v53 }
 0x409   : > { %3421 = vst [vmem:[%s5538_s26 + $0x40] sm:$0xff] %v3389_v49  ;;  %v3009_v40 = vadd.f32 %v2966_v47, %v2418_v0  ;;  %3355 = vmatmul.f32.gmra.mxu3 %v3112_v20  ;;  %v2864_v48 = vpop.f32.mrf.mxu0 }
 0x40a   : > { %v2427_v49 = vadd.f32 %v5423_v19, %v2314_v62  ;;  %v2865_v19 = vadd.f32 %v2864_v48, %v5495_v14  ;;  %v5981_v14 = vld [vmem:[#allocation78_spill] sm:$0xff] }
 0x40b   : > { %v3045_v39 = vmul.f32 %v5297_v23, %v3009_v40  ;;  %v2204_v40 = vadd.f32 %v5977_v5, %v5976_v36 }
 0x40c   : > { %v3308_v12 = vpop.f32.mrf.mxu3 }
 0x40d   : > { %v3309_v57 = vadd.f32 %v3308_v12, %v5599_v35  ;;  %v3081_v34 = vadd.f32 %v5303_v31, %v3045_v39  ;;  %v2317_v39 = vadd.f32 %v5978_v6, %v2204_v40 }
 0x40e   : > { %v2968_v44 = vpop.f32.mrf.mxu1 }
 0x40f   : > { %v3390_v4 = vadd.f32 %v5525_v43, %v3309_v57  ;;  %v2969_v52 = vadd.f32 %v2968_v44, %v2856_v18  ;;  %v3113_v2 = vmax.f32 %v3081_v34, 0.0  ;;  %v3213_v46 = vpop.f32.mrf.mxu2  ;;  %v2430_v51 = vadd.f32 %v5441_v10, %v2317_v39 }
 0x411   : > { %3422 = vst [vmem:[%s5538_s26 + $0x48] sm:$0xff] %v3390_v4  ;;  %v3010_v28 = vadd.f32 %v2969_v52, %v2421_v54  ;;  %3358 = vmatmul.f32.gmra.mxu3 %v3113_v2  ;;  %v5979_v52 = vld [vmem:[#allocation55_spill] sm:$0xff]  ;;  %v2867_v15 = vpop.f32.mrf.mxu0 }
 0x412   : > { %v5980_v2 = vld [vmem:[#allocation3_spill] sm:$0xff]  ;;  %v2868_v7 = vadd.f32 %v2867_v15, %v5508_v21 }
 0x413   : > { %v3046_v35 = vmul.f32 %v5297_v23, %v3010_v28  ;;  %v2207_v9 = vadd.f32 %v5980_v2, %v5979_v52 }
 0x414   : > { %v3311_v32 = vpop.f32.mrf.mxu3 }
 0x415   : > { %v3312_v25 = vadd.f32 %v3311_v32, %v5612_v27  ;;  %v3082_v63 = vadd.f32 %v5303_v31, %v3046_v35  ;;  %v2320_v28 = vadd.f32 %v5981_v14, %v2207_v9 }
 0x416   : > { %v2971_v37 = vpop.f32.mrf.mxu1 }
 0x417   : > { %v3391_v26 = vadd.f32 %v5525_v43, %v3312_v25  ;;  %v2972_v59 = vadd.f32 %v2971_v37, %v2859_v8  ;;  %v3114_v58 = vmax.f32 %v3082_v63, 0.0  ;;  %v3216_v22 = vpop.f32.mrf.mxu2  ;;  %v2433_v25 = vadd.f32 %v5457_v16, %v2320_v28  ;;  %v3739_v16 = vld [vmem:[%s5757_s9] ss:$0 sm:$0xff] }
 0x419   : > { %3423 = vst [vmem:[%s5538_s26 + $0x50] sm:$0xff] %v3391_v26  ;;  %v3011_v41 = vadd.f32 %v2972_v59, %v2424_v13  ;;  %3361 = vmatmul.f32.gmra.mxu3 %v3114_v58 }
 0x41b   : > { %v3047_v27 = vmul.f32 %v5297_v23, %v3011_v41 }
 0x41c   : > { %v3314_v30 = vpop.f32.mrf.mxu3 }
 0x41d   : > { %v3315_v56 = vadd.f32 %v3314_v30, %v5625_v1  ;;  %v3083_v3 = vadd.f32 %v5303_v31, %v3047_v27 }
 0x41e   : > { %v2974_v0 = vpop.f32.mrf.mxu1 }
 0x41f   : > { %v3392_v47 = vadd.f32 %v5525_v43, %v3315_v56  ;;  %v2975_v20 = vadd.f32 %v2974_v0, %v2862_v33  ;;  %v3115_v61 = vmax.f32 %v3083_v3, 0.0  ;;  %v3219_v8 = vpop.f32.mrf.mxu2 }
 0x421   : > { %3424 = vst [vmem:[%s5538_s26 + $0x58] sm:$0xff] %v3392_v47  ;;  %v3012_v38 = vadd.f32 %v2975_v20, %v2427_v49  ;;  %3364 = vmatmul.f32.gmra.mxu3 %v3115_v61 }
 0x423   : > { %v3048_v1 = vmul.f32 %v5297_v23, %v3012_v38 }
 0x424   : > { %v3317_v12 = vpop.f32.mrf.mxu3 }
 0x425   : > { %v3318_v18 = vadd.f32 %v3317_v12, %v5638_v50  ;;  %v3084_v57 = vadd.f32 %v5303_v31, %v3048_v1 }
 0x426   : > { %v2977_v34 = vpop.f32.mrf.mxu1 }
 0x427   : > { %v3393_v44 = vadd.f32 %v5525_v43, %v3318_v18  ;;  %v2978_v54 = vadd.f32 %v2977_v34, %v2865_v19  ;;  %v3116_v4 = vmax.f32 %v3084_v57, 0.0  ;;  %v3222_v55 = vpop.f32.mrf.mxu2 }
 0x429   : > { %3425 = vst [vmem:[%s5538_s26 + $0x60] sm:$0xff] %v3393_v44  ;;  %v3013_v24 = vadd.f32 %v2978_v54, %v2430_v51  ;;  %3367 = vmatmul.f32.gmra.mxu3 %v3116_v4 }
 0x42b   : > { %v3049_v50 = vmul.f32 %v5297_v23, %v3013_v24  ;;  %v3738_v23 = vld [vmem:[%s5756_s8] ss:$0 sm:$0xff] }
 0x42c   : > { %v3320_v60 = vpop.f32.mrf.mxu3 }
 0x42d   : > { %v3321_v10 = vadd.f32 %v3320_v60, %v5651_v45  ;;  %v3085_v35 = vadd.f32 %v5303_v31, %v3049_v50 }
 0x42e   : > { %v2980_v32 = vpop.f32.mrf.mxu1 }
 0x42f   : > { %v3394_v63 = vadd.f32 %v5525_v43, %v3321_v10  ;;  %v2981_v37 = vadd.f32 %v2980_v32, %v2868_v7  ;;  %v3117_v13 = vmax.f32 %v3085_v35, 0.0 }
 0x431   : > { %3426 = vst [vmem:[%s5538_s26 + $0x68] sm:$0xff] %v3394_v63  ;;  %v3014_v26 = vadd.f32 %v2981_v37, %v2433_v25  ;;  %3370 = vmatmul.f32.gmra.mxu3 %v3117_v13 }
 0x433   : > { %v3050_v21 = vmul.f32 %v3738_v23, %v3014_v26 }
 0x434   : > { %v3323_v45 = vpop.f32.mrf.mxu3 }
 0x435   : > { %v3324_v31 = vadd.f32 %v3323_v45, %v5664_v17  ;;  %v3086_v59 = vadd.f32 %v3739_v16, %v3050_v21  ;;  %v3225_v17 = vpop.f32.mrf.mxu2 }
 0x437   : > { %v3395_v58 = vadd.f32 %v5525_v43, %v3324_v31  ;;  %v3118_v29 = vmax.f32 %v3086_v59, 0.0 }
 0x439   : > { %3427 = vst [vmem:[%s5538_s26 + $0x70] sm:$0xff] %v3395_v58  ;;  %3373 = vmatmul.f32.gmra.mxu3 %v3118_v29 }
 0x43c   : > { %v3326_v42 = vpop.f32.mrf.mxu3 }
 0x43d   : > { %v3327_v53 = vadd.f32 %v3326_v42, %v3213_v46  ;;  %v3228_v33 = vpop.f32.mrf.mxu2 }
 0x43f   : > { %v3396_v41 = vadd.f32 %v5525_v43, %v3327_v53 }
 0x441   : > { %3428 = vst [vmem:[%s5538_s26 + $0x78] sm:$0xff] %v3396_v41 }
 0x444   : > { %v3329_v11 = vpop.f32.mrf.mxu3 }
 0x445   : > { %v3330_v62 = vadd.f32 %v3329_v11, %v3216_v22  ;;  %v3231_v49 = vpop.f32.mrf.mxu2 }
 0x447   : > { %v3397_v27 = vadd.f32 %v5525_v43, %v3330_v62 }
 0x449   : > { %3429 = vst [vmem:[%s5538_s26 + $0x80] sm:$0xff] %v3397_v27 }
 0x44c   : > { %v3332_v30 = vpop.f32.mrf.mxu3 }
 0x44d   : > { %v3333_v56 = vadd.f32 %v3332_v30, %v3219_v8  ;;  %v3234_v5 = vpop.f32.mrf.mxu2 }
 0x44f   : > { %v3398_v3 = vadd.f32 %v5525_v43, %v3333_v56 }
 0x451   : > { %3430 = vst [vmem:[%s5538_s26 + $0x88] sm:$0xff] %v3398_v3 }
 0x454   : > { %v3335_v0 = vpop.f32.mrf.mxu3 }
 0x455   : > { %v3336_v46 = vadd.f32 %v3335_v0, %v3222_v55  ;;  %v3237_v6 = vpop.f32.mrf.mxu2 }
 0x457   : > { %v3399_v47 = vadd.f32 %v5525_v43, %v3336_v46 }
 0x459   : > { %3431 = vst [vmem:[%s5538_s26 + $0x90] sm:$0xff] %v3399_v47 }
 0x45c   : > { %v3338_v20 = vpop.f32.mrf.mxu3 }
 0x45d   : > { %v3339_v61 = vadd.f32 %v3338_v20, %v3225_v17  ;;  %v3240_v19 = vpop.f32.mrf.mxu2 }
 0x45f   : > { %v3400_v36 = vadd.f32 %v5525_v43, %v3339_v61 }
 0x461   : > { %3432 = vst [vmem:[%s5538_s26 + $0x98] sm:$0xff] %v3400_v36 }
 0x464   : > { %v3341_v40 = vpop.f32.mrf.mxu3 }
 0x465   : > { %v3342_v38 = vadd.f32 %v3341_v40, %v3228_v33  ;;  %v3243_v44 = vpop.f32.mrf.mxu2 }
 0x467   : > { %v3401_v48 = vadd.f32 %v5525_v43, %v3342_v38 }
 0x469   : > { %3433 = vst [vmem:[%s5538_s26 + $0xa0] sm:$0xff] %v3401_v48 }
 0x46c   : > { %v3344_v39 = vpop.f32.mrf.mxu3 }
 0x46d   : > { %v3345_v1 = vadd.f32 %v3344_v39, %v3231_v49  ;;  %v3246_v9 = vpop.f32.mrf.mxu2 }
 0x46f   : > { %v3402_v12 = vadd.f32 %v5525_v43, %v3345_v1 }
 0x471   : > { %3434 = vst [vmem:[%s5538_s26 + $0xa8] sm:$0xff] %v3402_v12 }
 0x474   : > { %v3347_v22 = vpop.f32.mrf.mxu3 }
 0x475   : > { %v3348_v18 = vadd.f32 %v3347_v22, %v3234_v5  ;;  %v3249_v28 = vpop.f32.mrf.mxu2 }
 0x477   : > { %v3403_v57 = vadd.f32 %v5525_v43, %v3348_v18 }
 0x479   : > { %3435 = vst [vmem:[%s5538_s26 + $0xb0] sm:$0xff] %v3403_v57 }
 0x47c   : > { %v3350_v34 = vpop.f32.mrf.mxu3 }
 0x47d   : > { %v3351_v51 = vadd.f32 %v3350_v34, %v3237_v6  ;;  %v3252_v35 = vpop.f32.mrf.mxu2 }
 0x47f   : > { %v3404_v54 = vadd.f32 %v5525_v43, %v3351_v51 }
 0x481   : > { %3436 = vst [vmem:[%s5538_s26 + $0xb8] sm:$0xff] %v3404_v54 }
 0x484   : > { %v3353_v4 = vpop.f32.mrf.mxu3 }
 0x485   : > { %v3354_v52 = vadd.f32 %v3353_v4, %v3240_v19  ;;  %v3255_v37 = vpop.f32.mrf.mxu2 }
 0x487   : > { %v3405_v2 = vadd.f32 %v5525_v43, %v3354_v52 }
 0x489   : > { %3437 = vst [vmem:[%s5538_s26 + $0xc0] sm:$0xff] %v3405_v2 }
 0x48c   : > { %v3356_v24 = vpop.f32.mrf.mxu3 }
 0x48d   : > { %v3357_v15 = vadd.f32 %v3356_v24, %v3243_v44  ;;  %v3258_v45 = vpop.f32.mrf.mxu2 }
 0x48f   : > { %v3406_v14 = vadd.f32 %v5525_v43, %v3357_v15 }
 0x491   : > { %3438 = vst [vmem:[%s5538_s26 + $0xc8] sm:$0xff] %v3406_v14 }
 0x494   : > { %v3359_v50 = vpop.f32.mrf.mxu3 }
 0x495   : > { %v3360_v60 = vadd.f32 %v3359_v50, %v3246_v9  ;;  %v3261_v58 = vpop.f32.mrf.mxu2 }
 0x497   : > { %v3407_v7 = vadd.f32 %v5525_v43, %v3360_v60 }
 0x499   : > { %3439 = vst [vmem:[%s5538_s26 + $0xd0] sm:$0xff] %v3407_v7 }
 0x49c   : > { %v3362_v10 = vpop.f32.mrf.mxu3 }
 0x49d   : > { %v3363_v32 = vadd.f32 %v3362_v10, %v3249_v28 }
 0x49f   : > { %v3408_v8 = vadd.f32 %v5525_v43, %v3363_v32 }
 0x4a1   : > { %3440 = vst [vmem:[%s5538_s26 + $0xd8] sm:$0xff] %v3408_v8 }
 0x4a4   : > { %v3365_v25 = vpop.f32.mrf.mxu3 }
 0x4a5   : > { %v3366_v63 = vadd.f32 %v3365_v25, %v3252_v35 }
 0x4a7   : > { %v3409_v13 = vadd.f32 %v5525_v43, %v3366_v63 }
 0x4a9   : > { %3441 = vst [vmem:[%s5538_s26 + $0xe0] sm:$0xff] %v3409_v13 }
 0x4ac   : > { %v3368_v26 = vpop.f32.mrf.mxu3 }
 0x4ad   : > { %v3369_v23 = vadd.f32 %v3368_v26, %v3255_v37 }
 0x4af   : > { %v3410_v21 = vadd.f32 %v5525_v43, %v3369_v23 }
 0x4b1   : > { %3442 = vst [vmem:[%s5538_s26 + $0xe8] sm:$0xff] %v3410_v21 }
 0x4b4   : > { %v3371_v31 = vpop.f32.mrf.mxu3 }
 0x4b5   : > { %v3372_v16 = vadd.f32 %v3371_v31, %v3258_v45 }
 0x4b7   : > { %v3411_v59 = vadd.f32 %v5525_v43, %v3372_v16 }
 0x4b9   : > { %3443 = vst [vmem:[%s5538_s26 + $0xf0] sm:$0xff] %v3411_v59 }
 0x4bc   : > { %v3374_v29 = vpop.f32.mrf.mxu3 }
 0x4bd   : > { %v3375_v55 = vadd.f32 %v3374_v29, %v3261_v58 }
 0x4bf   : > { %v3412_v42 = vadd.f32 %v5525_v43, %v3375_v55 }
 0x4c1   : > { %3444 = vst [vmem:[%s5538_s26 + $0xf8] sm:$0xff] %v3412_v42 }
 0x4c2 PF: > { %s22_s21 = sadd.s32 1, %s3746_s21  }
 0x4c3   : > { %p19_p4 = scmp.ge.s32.totalorder %s22_s21, 4  }
 0x4c5   :  { %21 = sbr.rel (!%p19_p4) target bundleno = 1 (0x1), region = 100 }

</bundles_post_ra>
